<compile_context>
chip_gen: v7x
topology: tpu7x:2x2x1
jax: 0.10.0
libtpu: 0.0.40
codegen_flags: <defaults>
</compile_context>

<pallas_src>
import jax
import jax.numpy as jnp
from jax.experimental import pallas as pl
from jax.experimental.pallas import tpu as pltpu


def usmf_kernel(users_ref, items_ref, uembT_ref, iembT_ref, out_ref):
    """One batch tile: gather rows via one-hot matmul, then dot-product score.

    Per grid step:
      users_ref, items_ref : (1, 1, bt)    int32  lane-dense index tiles
      uembT_ref            : (Fp, n_users) f32    factor-major user table
      iembT_ref            : (Fp, n_items) f32    factor-major item table
      out_ref              : (1, 1, bt)    f32    lane-dense scores
    """
    users = users_ref[0]             # (1, bt) int32
    items = items_ref[0]             # (1, bt) int32
    uemb_t = uembT_ref[...]          # (Fp, n_users) f32
    iemb_t = iembT_ref[...]          # (Fp, n_items) f32

    bt = users.shape[-1]
    n_users = uemb_t.shape[-1]
    n_items = iemb_t.shape[-1]

    # Transposed one-hot selectors: oh[r, b] = (r == idx[b]).
    # Note: an out-of-range index yields an all-zero column -> score 0.0,
    # whereas torch.nn.Embedding would raise.
    u_oh = (jax.lax.broadcasted_iota(jnp.int32, (n_users, bt), 0)
            == users).astype(jnp.float32)                        # (n_users, bt)
    i_oh = (jax.lax.broadcasted_iota(jnp.int32, (n_items, bt), 0)
            == items).astype(jnp.float32)                        # (n_items, bt)

    # MXU row gathers: (Fp, n_rows) x (n_rows, bt) -> (Fp, bt).
    ues_t = jnp.dot(uemb_t, u_oh, preferred_element_type=jnp.float32)
    uis_t = jnp.dot(iemb_t, i_oh, preferred_element_type=jnp.float32)

    # (ues * uis).sum over the factor (sublane) axis -> lane-dense (1, bt).
    out_ref[0] = jnp.sum(ues_t * uis_t, axis=0, keepdims=True)


def _build_call(num_blocks, block_b, Fp, n_users, n_items, *, single_buffer_tables):
    table_mode = pl.Buffered(1) if single_buffer_tables else None
    return pl.pallas_call(
        usmf_kernel,
        out_shape=jax.ShapeDtypeStruct((num_blocks, 1, block_b), jnp.float32),
        grid=(num_blocks,),
        in_specs=[
            # Lane-dense (1, 1, block_b) int32 index tiles.
            pl.BlockSpec((1, 1, block_b), lambda i: (i, 0, 0)),
            pl.BlockSpec((1, 1, block_b), lambda i: (i, 0, 0)),
            # Full VMEM-resident tables; constant index map, single-buffered.
            pl.BlockSpec((Fp, n_users), lambda i: (0, 0), pipeline_mode=table_mode),
            pl.BlockSpec((Fp, n_items), lambda i: (0, 0), pipeline_mode=table_mode),
        ],
        out_specs=pl.BlockSpec((1, 1, block_b), lambda i: (i, 0, 0)),
        compiler_params=pltpu.CompilerParams(
            dimension_semantics=("parallel",),
            # Default scoped VMEM is 16 MiB (v5e) / 32 MiB (v6e, v7x); raise it so
            # table-resident configs don't spill. 48 MiB stays under v7x's 64 MiB.
            vmem_limit_bytes=48 * 1024 * 1024,
        ),
    )


def usmf_forward(users, items, user_emb, item_emb, *, block_b=256):
    """Pallas implementation of USMF.forward -> (B,) f32 scores."""
    assert block_b % 128 == 0, "block_b must be a multiple of the 128-lane width"
    B = users.shape[0]
    n_users, F = user_emb.shape
    n_items, F_i = item_emb.shape
    assert F == F_i

    # Pad the factor axis to a multiple of 128 lanes (zero columns contribute 0
    # to the dot product) and store the tables factor-major: (Fp, n_rows).
    Fp = ((F + 127) // 128) * 128
    uemb_t = jnp.pad(user_emb.astype(jnp.float32), ((0, 0), (0, Fp - F))).T
    iemb_t = jnp.pad(item_emb.astype(jnp.float32), ((0, 0), (0, Fp - F))).T

    # Pad the batch to a multiple of block_b with a valid row index (0); the
    # padded outputs are sliced away below.  Indices are cast to int32 (fine
    # for tables < 2^31 rows).
    num_blocks = pl.cdiv(B, block_b)
    Bp = num_blocks * block_b
    users3 = jnp.pad(users.astype(jnp.int32), (0, Bp - B)).reshape(num_blocks, 1, block_b)
    items3 = jnp.pad(items.astype(jnp.int32), (0, Bp - B)).reshape(num_blocks, 1, block_b)

    try:
        call = _build_call(num_blocks, block_b, Fp, n_users, n_items,
                           single_buffer_tables=True)
        out = call(users3, items3, uemb_t, iemb_t)
    except Exception:  # fallback if Buffered(1) is unsupported in this jax build
        call = _build_call(num_blocks, block_b, Fp, n_users, n_items,
                           single_buffer_tables=False)
        out = call(users3, items3, uemb_t, iemb_t)

    # (num_blocks, 1, block_b) -> (B,)   [== preds.squeeze(1) in the module]
    return out.reshape(-1)[:B]


if __name__ == "__main__":
    # Small, forward-consistent shapes (n_factors matches the module default).
    n_users, n_items, n_factors = 300, 500, 80
    batch = 500   # deliberately not a multiple of block_b to exercise padding

    key = jax.random.PRNGKey(0)
    k_ue, k_ie, k_u, k_i = jax.random.split(key, 4)

    # nn.init.normal_(weight, std=0.01), float32 (PyTorch default dtype).
    user_emb = 0.01 * jax.random.normal(k_ue, (n_users, n_factors), jnp.float32)
    item_emb = 0.01 * jax.random.normal(k_ie, (n_items, n_factors), jnp.float32)

    users = jax.random.randint(k_u, (batch,), 0, n_users, dtype=jnp.int32)
    items = jax.random.randint(k_i, (batch,), 0, n_items, dtype=jnp.int32)

    preds = usmf_forward(users, items, user_emb, item_emb)
    preds = jax.block_until_ready(preds)

    # Pure-JAX reference.
    ref = jnp.sum(user_emb[users] * item_emb[items], axis=1)
    assert preds.shape == (batch,)
    assert jnp.allclose(preds, ref, atol=1e-6, rtol=1e-5)

    print("KERNEL_OK")
</pallas_src>

<mosaic_0001>
module attributes {stable_mosaic.version = 11 : i64} {
  func.func @usmf_kernel(%arg0: i32, %arg1: memref<1x1x256xi32, #tpu.memory_space<vmem>>, %arg2: memref<1x1x256xi32, #tpu.memory_space<vmem>>, %arg3: memref<128x300xf32, #tpu.memory_space<vmem>>, %arg4: memref<128x500xf32, #tpu.memory_space<vmem>>, %arg5: memref<1x1x256xf32, #tpu.memory_space<vmem>>) attributes {dimension_semantics = [#tpu.dimension_semantics<parallel>], iteration_bounds = array<i64: 2>, scalar_prefetch = 0 : i64, scratch_operands = 0 : i64, tpu.core_type = #tpu.core_type<tc>, window_params = [{transform_indices = @transform_0, window_bounds = array<i64: 1, 1, 256>}, {transform_indices = @transform_1, window_bounds = array<i64: 1, 1, 256>}, {pipeline_mode = #tpu.pipeline_mode<synchronous>, transform_indices = @transform_2, window_bounds = array<i64: 128, 300>}, {pipeline_mode = #tpu.pipeline_mode<synchronous>, transform_indices = @transform_3, window_bounds = array<i64: 128, 500>}, {transform_indices = @transform_4, window_bounds = array<i64: 1, 1, 256>}]} {
    %c0 = arith.constant 0 : index
    %c0_0 = arith.constant 0 : index
    %c0_1 = arith.constant 0 : index
    %0 = vector.load %arg1[%c0, %c0_0, %c0_1] : memref<1x1x256xi32, #tpu.memory_space<vmem>>, vector<1x1x256xi32>
    %1 = vector.shape_cast %0 : vector<1x1x256xi32> to vector<1x256xi32>
    %c0_2 = arith.constant 0 : index
    %c0_3 = arith.constant 0 : index
    %c0_4 = arith.constant 0 : index
    %2 = vector.load %arg2[%c0_2, %c0_3, %c0_4] : memref<1x1x256xi32, #tpu.memory_space<vmem>>, vector<1x1x256xi32>
    %3 = vector.shape_cast %2 : vector<1x1x256xi32> to vector<1x256xi32>
    %c0_5 = arith.constant 0 : index
    %c0_6 = arith.constant 0 : index
    %4 = vector.load %arg3[%c0_5, %c0_6] : memref<128x300xf32, #tpu.memory_space<vmem>>, vector<128x300xf32>
    %c0_7 = arith.constant 0 : index
    %c0_8 = arith.constant 0 : index
    %5 = vector.load %arg4[%c0_7, %c0_8] : memref<128x500xf32, #tpu.memory_space<vmem>>, vector<128x500xf32>
    %6 = tpu.iota {dimensions = array<i32: 0>} : vector<300x256xi32>
    %7 = vector.broadcast %1 : vector<1x256xi32> to vector<300x256xi32>
    %8 = arith.cmpi eq, %6, %7 : vector<300x256xi32>
    %9 = arith.extui %8 : vector<300x256xi1> to vector<300x256xi32>
    %10 = arith.sitofp %9 : vector<300x256xi32> to vector<300x256xf32>
    %11 = tpu.iota {dimensions = array<i32: 0>} : vector<500x256xi32>
    %12 = vector.broadcast %3 : vector<1x256xi32> to vector<500x256xi32>
    %13 = arith.cmpi eq, %11, %12 : vector<500x256xi32>
    %14 = arith.extui %13 : vector<500x256xi1> to vector<500x256xi32>
    %15 = arith.sitofp %14 : vector<500x256xi32> to vector<500x256xf32>
    %cst = arith.constant dense<0.000000e+00> : vector<128x256xf32>
    %16 = tpu.matmul %4, %10, %cst {dimension_numbers = #tpu.dot_dimension_numbers<[1], [0], [0], [1], [0, 0, 1, 1], [], []>} : vector<128x300xf32>, vector<300x256xf32>, vector<128x256xf32> -> vector<128x256xf32>
    %cst_9 = arith.constant dense<0.000000e+00> : vector<128x256xf32>
    %17 = tpu.matmul %5, %15, %cst_9 {dimension_numbers = #tpu.dot_dimension_numbers<[1], [0], [0], [1], [0, 0, 1, 1], [], []>} : vector<128x500xf32>, vector<500x256xf32>, vector<128x256xf32> -> vector<128x256xf32>
    %18 = arith.mulf %16, %17 : vector<128x256xf32>
    %cst_10 = arith.constant dense<0.000000e+00> : vector<256xf32>
    %19 = vector.multi_reduction <add>, %18, %cst_10 [0] : vector<128x256xf32> to vector<256xf32>
    %20 = vector.shape_cast %19 : vector<256xf32> to vector<1x256xf32>
    %c0_11 = arith.constant 0 : index
    %c0_12 = arith.constant 0 : index
    %c0_13 = arith.constant 0 : index
    %21 = vector.load %arg5[%c0_11, %c0_12, %c0_13] : memref<1x1x256xf32, #tpu.memory_space<vmem>>, vector<1x1x256xf32>
    %22 = vector.shape_cast %21 : vector<1x1x256xf32> to vector<1x256xf32>
    %23 = vector.shape_cast %20 : vector<1x256xf32> to vector<1x1x256xf32>
    tpu.vector_store %arg5[%c0_11, %c0_12, %c0_13], %23 {strides = array<i32>} : memref<1x1x256xf32, #tpu.memory_space<vmem>>, vector<1x1x256xf32>,
    return
  }
  func.func @transform_0(%arg0: i32) -> (i32, i32, i32) {
    %c0_i32 = arith.constant 0 : i32
    %c0_i32_0 = arith.constant 0 : i32
    %c0_i32_1 = arith.constant 0 : i32
    return %arg0, %c0_i32, %c0_i32_0 : i32, i32, i32
  }
  func.func @transform_1(%arg0: i32) -> (i32, i32, i32) {
    %c0_i32 = arith.constant 0 : i32
    %c0_i32_0 = arith.constant 0 : i32
    %c0_i32_1 = arith.constant 0 : i32
    return %arg0, %c0_i32, %c0_i32_0 : i32, i32, i32
  }
  func.func @transform_2(%arg0: i32) -> (i32, i32) {
    %c0_i32 = arith.constant 0 : i32
    %c0_i32_0 = arith.constant 0 : i32
    %c0_i32_1 = arith.constant 0 : i32
    return %c0_i32, %c0_i32_0 : i32, i32
  }
  func.func @transform_3(%arg0: i32) -> (i32, i32) {
    %c0_i32 = arith.constant 0 : i32
    %c0_i32_0 = arith.constant 0 : i32
    %c0_i32_1 = arith.constant 0 : i32
    return %c0_i32, %c0_i32_0 : i32, i32
  }
  func.func @transform_4(%arg0: i32) -> (i32, i32, i32) {
    %c0_i32 = arith.constant 0 : i32
    %c0_i32_0 = arith.constant 0 : i32
    %c0_i32_1 = arith.constant 0 : i32
    return %arg0, %c0_i32, %c0_i32_0 : i32, i32, i32
  }
}

module attributes {stable_mosaic.version = 11 : i64} {
  func.func @usmf_kernel(%arg0: i32, %arg1: memref<1x1x256xi32, #tpu.memory_space<vmem>>, %arg2: memref<1x1x256xi32, #tpu.memory_space<vmem>>, %arg3: memref<128x300xf32, #tpu.memory_space<vmem>>, %arg4: memref<128x500xf32, #tpu.memory_space<vmem>>, %arg5: memref<1x1x256xf32, #tpu.memory_space<vmem>>) attributes {dimension_semantics = [#tpu.dimension_semantics<parallel>], iteration_bounds = array<i64: 2>, scalar_prefetch = 0 : i64, scratch_operands = 0 : i64, tpu.core_type = #tpu.core_type<tc>, window_params = [{transform_indices = @transform_0, window_bounds = array<i64: 1, 1, 256>}, {transform_indices = @transform_1, window_bounds = array<i64: 1, 1, 256>}, {pipeline_mode = #tpu.pipeline_mode<synchronous>, transform_indices = @transform_2, window_bounds = array<i64: 128, 300>}, {pipeline_mode = #tpu.pipeline_mode<synchronous>, transform_indices = @transform_3, window_bounds = array<i64: 128, 500>}, {transform_indices = @transform_4, window_bounds = array<i64: 1, 1, 256>}]} {
    %c0 = arith.constant 0 : index
    %c0_0 = arith.constant 0 : index
    %c0_1 = arith.constant 0 : index
    %0 = vector.load %arg1[%c0, %c0_0, %c0_1] : memref<1x1x256xi32, #tpu.memory_space<vmem>>, vector<1x1x256xi32>
    %1 = vector.shape_cast %0 : vector<1x1x256xi32> to vector<1x256xi32>
    %c0_2 = arith.constant 0 : index
    %c0_3 = arith.constant 0 : index
    %c0_4 = arith.constant 0 : index
    %2 = vector.load %arg2[%c0_2, %c0_3, %c0_4] : memref<1x1x256xi32, #tpu.memory_space<vmem>>, vector<1x1x256xi32>
    %3 = vector.shape_cast %2 : vector<1x1x256xi32> to vector<1x256xi32>
    %c0_5 = arith.constant 0 : index
    %c0_6 = arith.constant 0 : index
    %4 = vector.load %arg3[%c0_5, %c0_6] : memref<128x300xf32, #tpu.memory_space<vmem>>, vector<128x300xf32>
    %c0_7 = arith.constant 0 : index
    %c0_8 = arith.constant 0 : index
    %5 = vector.load %arg4[%c0_7, %c0_8] : memref<128x500xf32, #tpu.memory_space<vmem>>, vector<128x500xf32>
    %6 = tpu.iota {dimensions = array<i32: 0>} : vector<300x256xi32>
    %7 = vector.broadcast %1 : vector<1x256xi32> to vector<300x256xi32>
    %8 = arith.cmpi eq, %6, %7 : vector<300x256xi32>
    %9 = arith.extui %8 : vector<300x256xi1> to vector<300x256xi32>
    %10 = arith.sitofp %9 : vector<300x256xi32> to vector<300x256xf32>
    %11 = tpu.iota {dimensions = array<i32: 0>} : vector<500x256xi32>
    %12 = vector.broadcast %3 : vector<1x256xi32> to vector<500x256xi32>
    %13 = arith.cmpi eq, %11, %12 : vector<500x256xi32>
    %14 = arith.extui %13 : vector<500x256xi1> to vector<500x256xi32>
    %15 = arith.sitofp %14 : vector<500x256xi32> to vector<500x256xf32>
    %cst = arith.constant dense<0.000000e+00> : vector<128x256xf32>
    %16 = tpu.matmul %4, %10, %cst {dimension_numbers = #tpu.dot_dimension_numbers<[1], [0], [0], [1], [0, 0, 1, 1], [], []>} : vector<128x300xf32>, vector<300x256xf32>, vector<128x256xf32> -> vector<128x256xf32>
    %cst_9 = arith.constant dense<0.000000e+00> : vector<128x256xf32>
    %17 = tpu.matmul %5, %15, %cst_9 {dimension_numbers = #tpu.dot_dimension_numbers<[1], [0], [0], [1], [0, 0, 1, 1], [], []>} : vector<128x500xf32>, vector<500x256xf32>, vector<128x256xf32> -> vector<128x256xf32>
    %18 = arith.mulf %16, %17 : vector<128x256xf32>
    %cst_10 = arith.constant dense<0.000000e+00> : vector<256xf32>
    %19 = vector.multi_reduction <add>, %18, %cst_10 [0] : vector<128x256xf32> to vector<256xf32>
    %20 = vector.shape_cast %19 : vector<256xf32> to vector<1x256xf32>
    %c0_11 = arith.constant 0 : index
    %c0_12 = arith.constant 0 : index
    %c0_13 = arith.constant 0 : index
    %21 = vector.load %arg5[%c0_11, %c0_12, %c0_13] : memref<1x1x256xf32, #tpu.memory_space<vmem>>, vector<1x1x256xf32>
    %22 = vector.shape_cast %21 : vector<1x1x256xf32> to vector<1x256xf32>
    %23 = vector.shape_cast %20 : vector<1x256xf32> to vector<1x1x256xf32>
    tpu.vector_store %arg5[%c0_11, %c0_12, %c0_13], %23 {strides = array<i32>} : memref<1x1x256xf32, #tpu.memory_space<vmem>>, vector<1x1x256xf32>,
    return
  }
  func.func @transform_0(%arg0: i32) -> (i32, i32, i32) {
    %c0_i32 = arith.constant 0 : i32
    %c0_i32_0 = arith.constant 0 : i32
    %c0_i32_1 = arith.constant 0 : i32
    return %arg0, %c0_i32, %c0_i32_0 : i32, i32, i32
  }
  func.func @transform_1(%arg0: i32) -> (i32, i32, i32) {
    %c0_i32 = arith.constant 0 : i32
    %c0_i32_0 = arith.constant 0 : i32
    %c0_i32_1 = arith.constant 0 : i32
    return %arg0, %c0_i32, %c0_i32_0 : i32, i32, i32
  }
  func.func @transform_2(%arg0: i32) -> (i32, i32) {
    %c0_i32 = arith.constant 0 : i32
    %c0_i32_0 = arith.constant 0 : i32
    %c0_i32_1 = arith.constant 0 : i32
    return %c0_i32, %c0_i32_0 : i32, i32
  }
  func.func @transform_3(%arg0: i32) -> (i32, i32) {
    %c0_i32 = arith.constant 0 : i32
    %c0_i32_0 = arith.constant 0 : i32
    %c0_i32_1 = arith.constant 0 : i32
    return %c0_i32, %c0_i32_0 : i32, i32
  }
  func.func @transform_4(%arg0: i32) -> (i32, i32, i32) {
    %c0_i32 = arith.constant 0 : i32
    %c0_i32_0 = arith.constant 0 : i32
    %c0_i32_1 = arith.constant 0 : i32
    return %arg0, %c0_i32, %c0_i32_0 : i32, i32, i32
  }
}

</mosaic_0001>

<bundles_post_ra>
// kernel: tpu_custom_call.1
= control target key start
LH: loop header
LB: loop body
LE: loop exit
PB: predicated region body
PF: predicated region fallthrough
CT: control target
= control target key end

     0   :  { %9 = vsyncpa [#allocation3], 0  ;;  %s3866_s0 = inlined_call_operand.vmem [shape: s32[2,1,256], index: 0, kind: input, shape index: {}]   ;;  %s3867_s1 = inlined_call_operand.vmem [shape: s32[2,1,256], index: 1, kind: input, shape index: {}]   ;;  %s3868_s2 = inlined_call_operand.vmem [shape: f32[128,300], index: 2, kind: input, shape index: {}]   ;;  %s3869_s3 = inlined_call_operand.vmem [shape: f32[128,500], index: 3, kind: input, shape index: {}]   ;;  %s3870_s4 = inlined_call_operand.hbm [shape: f32[2,1,256], index: 4, kind: output, shape index: {}]  }
   0x1   :  { %11 = vsyncpa [#allocation3 + $0x1], 0  ;;  %s2800_s15 = smov 0   ;;  %s2802_s16 = smov 0  }
   0x2   :  { %s2804_s17 = smov 0   ;;  %s2806_s18 = smov 0  }
   0x3 LB: > { %s2821_s19 = sadd.s32 4294967295, %s2768_s18   ;;  %s1948_s20 = sadd.s32 4294967294, %s2768_s18   ;;  %s2768_s18 = sphi %s2806_s18, %s3902_s18   ;;  %s2764_s17 = sphi %s2804_s17, %s3901_s17   ;;  %s2760_s16 = sphi %s2802_s16, %s3900_s16   ;;  %s2756_s15 = sphi %s2800_s15, %s3899_s15  }
   0x4   : > { %s2825_s21 = sadd.s32 1, %s2768_s18   ;;  %s118_s22 = sadd.s32 1, %s2764_s17 }
   0x5   : > { %s115_s23 = ssub.s32 %s2768_s18, %s2825_s21  ;;  %p128_p0 = scmp.ne.s32.totalorder %s2764_s17, %s2760_s16 }
   0x6   : > { %p116_p1 = scmp.eq.s32.totalorder %s115_s23, 0  ;;  %p129_p2 = scmp.eq.s32.totalorder %s2821_s19, 1 }
   0x7   : > { %p134_p3 = scmp.ne.s32.totalorder %s2760_s16, %s2756_s15  ;;  %p135_p4 = scmp.eq.s32.totalorder %s1948_s20, 1 }
   0x8   : > { %s2836_s24 = scalar_select %p116_p1, %s2764_s17, %s118_s22  }
   0x9   : > { %p2838_p5 = por %p129_p2, %p128_p0  ;;  %p2842_p6 = por %p135_p4, %p134_p3 }
   0xa   : > { %p1951_p7 = scmp.ge.s32.totalorder %s2768_s18, 1  ;;  %p173_p8 = scmp.lt.s32.totalorder %s2768_s18, 3 }
   0xc   : > { %p174_p9 = pnand %p1951_p7, %p173_p8 }
   0xd   : > { %p202_p10 = scmp.lt.s32.totalorder (!%p174_p9), %s2821_s19, 1  ;;  %v324_v0 = vlaneseq (!%p174_p9)  ;;  %v213_v1 = vld [vmem:[%s3868_s2 + $0x8] sm:$0xff] (!%p174_p9)  ;;  %v2770_v15 = vmov (!%p174_p9), 1.0|1.0   ;;  %v212_v48 = vld [vmem:[%s3868_s2] sm:$0xff] (!%p174_p9)  ;;  %v215_v54 = vld [vmem:[%s3868_s2 + $0x18] sm:$0xff] (!%p174_p9) }
   0xe   : > { %177 = sbr.rel (%p174_p9) target bundleno = 469 (0x1d5), region = 36  ;;  %v261_v2 = vld [vmem:[%s3869_s3 + $0x8] sm:$0xff] (!%p174_p9)  ;;  %1130 = vmatprep.mubr.f32.mxu0 (!%p174_p9), %v213_v1  ;;  %v260_v51 = vld [vmem:[%s3869_s3] sm:$0xff] (!%p174_p9)  ;;  %v219_v58 = vld [vmem:[%s3868_s2 + $0x38] sm:$0xff] (!%p174_p9)  ;;  %s2396_s14 = sshll.u32 (!%p174_p9), %s2821_s19, 5 }
   0xf   : > { %1507 = vmatprep.mubr.f32.mxu1 (!%p174_p9), %v261_v2  ;;  %v2857_v3 = vshrl.u32 (!%p174_p9), %v324_v0, 7  ;;  %v216_v52 = vld [vmem:[%s3868_s2 + $0x20] sm:$0xff] (!%p174_p9)  ;;  %v265_v53 = vld [vmem:[%s3869_s3 + $0x28] sm:$0xff] (!%p174_p9)  ;;  %v218_v62 = vld [vmem:[%s3868_s2 + $0x30] sm:$0xff] (!%p174_p9)  ;;  %s3824_s28 = scalar_lea.hbm (!%p174_p9), %s3870_s4, %s2396_s14 }
  0x10   : > { %v264_v57 = vld [vmem:[%s3869_s3 + $0x20] sm:$0xff] (!%p174_p9)  ;;  %v269_v59 = vld [vmem:[%s3869_s3 + $0x48] sm:$0xff] (!%p174_p9)  ;;  %v222_v1 = vld [vmem:[%s3868_s2 + $0x50] sm:$0xff] (!%p174_p9) }
  0x11   : > { %v369_v4 = vsub.s32 (!%p174_p9), 1, %v2857_v3  ;;  %v365_v5 = vsub.s32 (!%p174_p9), 0, %v2857_v3  ;;  %v326_v6 = vadd.s32 (!%p174_p9), 8, %v2857_v3  ;;  %v327_v9 = vadd.s32 (!%p174_p9), 16, %v2857_v3  ;;  %v268_v63 = vld [vmem:[%s3869_s3 + $0x40] sm:$0xff] (!%p174_p9)  ;;  %v273_v2 = vld [vmem:[%s3869_s3 + $0x68] sm:$0xff] (!%p174_p9) }
  0x12   : > { %v328_v10 = vadd.s32 (!%p174_p9), 24, %v2857_v3  ;;  %v329_v16 = vadd.s32 (!%p174_p9), 32, %v2857_v3  ;;  %v330_v17 = vadd.s32 (!%p174_p9), 40, %v2857_v3  ;;  %v331_v18 = vadd.s32 (!%p174_p9), 48, %v2857_v3 }
  0x13   : > { %v332_v19 = vadd.s32 (!%p174_p9), 56, %v2857_v3  ;;  %v333_v20 = vadd.s32 (!%p174_p9), 64, %v2857_v3  ;;  %v334_v21 = vadd.s32 (!%p174_p9), 72, %v2857_v3  ;;  %v335_v22 = vadd.s32 (!%p174_p9), 80, %v2857_v3 }
  0x14   : > { %v336_v23 = vadd.s32 (!%p174_p9), 88, %v2857_v3  ;;  %v337_v24 = vadd.s32 (!%p174_p9), 96, %v2857_v3  ;;  %v338_v25 = vadd.s32 (!%p174_p9), 104, %v2857_v3  ;;  %v339_v26 = vadd.s32 (!%p174_p9), 112, %v2857_v3 }
  0x15   : > { %s203_s5 = scalar_select %p202_p10, %s2821_s19, 1  ;;  %v340_v27 = vadd.s32 120, %v2857_v3  ;;  %v341_v28 = vadd.s32 128, %v2857_v3  ;;  %v342_v29 = vadd.s32 136, %v2857_v3  ;;  %v343_v30 = vadd.s32 144, %v2857_v3 }
  0x16   : > { %v344_v31 = vadd.s32 152, %v2857_v3  ;;  %v345_v32 = vadd.s32 160, %v2857_v3  ;;  %v346_v33 = vadd.s32 168, %v2857_v3  ;;  %v347_v34 = vadd.s32 176, %v2857_v3  ;;  %s2774_s19 = smov [#allocation2]  }
  0x17   : > { %s1953_s6 = sshll.u32 %s203_s5, 1  ;;  %v348_v35 = vadd.s32 184, %v2857_v3  ;;  %v349_v36 = vadd.s32 192, %v2857_v3  ;;  %v350_v37 = vadd.s32 200, %v2857_v3  ;;  %v351_v38 = vadd.s32 208, %v2857_v3  ;;  %s2710_s5 = sshll.u32 %s2774_s19, 4  ;;  %s2711_s5 = int_to_ptr.vmem [resolvable:$false] %s2710_s5 }
  0x18   : > { %s205_s9 = scalar_lea.vmem %s3866_s0, %s1953_s6  ;;  %s209_s12 = scalar_lea.vmem %s3867_s1, %s1953_s6  ;;  %v352_v39 = vadd.s32 216, %v2857_v3  ;;  %v353_v40 = vadd.s32 224, %v2857_v3  ;;  %v354_v41 = vadd.s32 232, %v2857_v3  ;;  %v355_v42 = vadd.s32 240, %v2857_v3 }
  0x19   : > { %v210_v7 = vld [vmem:[%s205_s9] sm:$0x3]  ;;  %v356_v43 = vadd.s32 248, %v2857_v3  ;;  %v357_v44 = vadd.s32 256, %v2857_v3  ;;  %v358_v45 = vadd.s32 264, %v2857_v3  ;;  %v3104_v46 = vadd.s32 272, %v2857_v3 }
  0x1a   : > { %v211_v8 = vld [vmem:[%s209_s12] sm:$0x3]  ;;  %v2870_v11 = vrot.slane %v210_v7, %v369_v4  ;;  %v2874_v13 = vrot.slane %v210_v7, %v365_v5  ;;  %v3107_v47 = vadd.s32 280, %v2857_v3  ;;  %v3119_v49 = vadd.s32 288, %v2857_v3  ;;  %s199_s12 = sand.u32 1, %s2760_s16   ;;  %s2712_s6 = scalar_lea.vmem %s2711_s5, 64 }
  0x1b   : > { %v2872_v12 = vrot.slane %v211_v8, %v369_v4  ;;  %v2876_v14 = vrot.slane %v211_v8, %v365_v5  ;;  %v3122_v50 = vadd.s32 296, %v2857_v3  ;;  %v599_v55 = vadd.s32 304, %v2857_v3  ;;  %v272_v7 = vld [vmem:[%s3869_s3 + $0x60] sm:$0xff]  ;;  %s1952_s13 = sshll.u32 %s199_s12, 1  ;;  %s1863_s29 = scalar_lea.sflag [#allocation3], %s199_s12 }
  0x1c   : > { %vm372_vm0 = vcmp.eq.s32.totalorder %v2857_v3, %v2870_v11  ;;  %vm374_vm1 = vcmp.eq.s32.totalorder %v326_v6, %v2870_v11  ;;  %vm371_vm5 = vcmp.eq.s32.totalorder %v2857_v3, %v2874_v13  ;;  %vm373_vm6 = vcmp.eq.s32.totalorder %v326_v6, %v2874_v13  ;;  %s201_s20 = scalar_lea.vmem [#allocation2], %s1952_s13 }
  0x1d   : > { %vm633_vm2 = vcmp.eq.s32.totalorder %v2857_v3, %v2872_v12  ;;  %vm635_vm3 = vcmp.eq.s32.totalorder %v326_v6, %v2872_v12  ;;  %vm2397_vm4 = vmpackc.low %vm374_vm1, %vm372_vm0  ;;  %vm632_vm7 = vcmp.eq.s32.totalorder %v2857_v3, %v2876_v14  ;;  %vm634_vm8 = vcmp.eq.s32.totalorder %v326_v6, %v2876_v14  ;;  %v221_v6 = vld [vmem:[%s3868_s2 + $0x48] sm:$0xff]  ;;  %s1877_s22 = sshll.u32 %s201_s20, 4  ;;  %s3826_s22 = int_to_ptr.vmem [resolvable:$true] %s1877_s22 }
  0x1e   : > { %2398 = vmatprep.subr.msk.bf16.mxu0 %vm2397_vm4, %v2770_v15  ;;  %vm2475_vm9 = vmpackc.low %vm635_vm3, %vm633_vm2  ;;  %vm376_vm10 = vcmp.eq.s32.totalorder %v327_v9, %v2870_v11  ;;  %vm378_vm11 = vcmp.eq.s32.totalorder %v328_v10, %v2870_v11  ;;  %vm637_vm13 = vcmp.eq.s32.totalorder %v327_v9, %v2872_v12  ;;  %vm639_vm14 = vcmp.eq.s32.totalorder %v328_v10, %v2872_v12  ;;  %s2706_s30 = scalar_lea.vmem %s3826_s22, 32  ;;  %p2713_p0 = scmp.lt.s32.totalorder %s3826_s22, %s2711_s5 }
  0x1f   : > { %2476 = vmatprep.subr.msk.bf16.mxu1 %vm2475_vm9, %v2770_v15  ;;  %vm2399_vm12 = vmpackc.low %vm373_vm6, %vm371_vm5  ;;  %vm375_vm0 = vcmp.eq.s32.totalorder %v327_v9, %v2874_v13  ;;  %vm377_vm1 = vcmp.eq.s32.totalorder %v328_v10, %v2874_v13  ;;  %vm636_vm3 = vcmp.eq.s32.totalorder %v327_v9, %v2876_v14  ;;  %vm638_vm4 = vcmp.eq.s32.totalorder %v328_v10, %v2876_v14  ;;  %v225_v9 = vld [vmem:[%s3868_s2 + $0x68] sm:$0xff]  ;;  %p2707_p11 = scmp.ne.s32.totalorder %s3826_s22, %s2706_s30  ;;  %p2714_p1 = scmp.lt.s32.totalorder %s2712_s6, %s2706_s30 }
  0x20   : > { %2400 = vmatpush1.bf16.msk.msra.mxu0 %vm2399_vm12, %v2770_v15  ;;  %vm2477_vm15 = vmpackc.low %vm634_vm8, %vm632_vm7  ;;  %vm380_vm6 = vcmp.eq.s32.totalorder %v329_v16, %v2870_v11  ;;  %vm382_vm9 = vcmp.eq.s32.totalorder %v330_v17, %v2870_v11  ;;  %vm641_vm8 = vcmp.eq.s32.totalorder %v329_v16, %v2872_v12  ;;  %vm379_vm12 = vcmp.eq.s32.totalorder %v329_v16, %v2874_v13  ;;  %v277_v10 = vld [vmem:[%s3869_s3 + $0x88] sm:$0xff] }
  0x21   : > { %2478 = vmatpush1.bf16.msk.msra.mxu1 %vm2477_vm15, %v2770_v15  ;;  %vm2401_vm2 = vmpackc.low %vm378_vm11, %vm376_vm10  ;;  %vm643_vm10 = vcmp.eq.s32.totalorder %v330_v17, %v2872_v12  ;;  %vm640_vm15 = vcmp.eq.s32.totalorder %v329_v16, %v2876_v14  ;;  %v600_v56 = vadd.s32 312, %v2857_v3  ;;  %v601_v60 = vadd.s32 320, %v2857_v3  ;;  %v305_v16 = vld [vmem:[%s3869_s3 + $0x168] sm:$0xff]  ;;  %p2708_p12 = pnand %p2707_p11, %p2838_p5  ;;  %p2715_p2 = por %p2714_p1, %p2713_p0 }
  0x22   : > { %2402 = vmatprep.subr.msk.bf16.mxu0 %vm2401_vm2, %v2770_v15  ;;  %vm2479_vm5 = vmpackc.low %vm639_vm14, %vm637_vm13  ;;  %vm381_vm13 = vcmp.eq.s32.totalorder %v330_v17, %v2874_v13  ;;  %vm642_vm2 = vcmp.eq.s32.totalorder %v330_v17, %v2876_v14  ;;  %v602_v61 = vadd.s32 328, %v2857_v3  ;;  %v603_v4 = vadd.s32 336, %v2857_v3  ;;  %v245_v17 = vld [vmem:[%s3868_s2 + $0x108] sm:$0xff] }
  0x23   : > { %2480 = vmatprep.subr.msk.bf16.mxu1 %vm2479_vm5, %v2770_v15  ;;  %vm2403_vm7 = vmpackc.low %vm377_vm1, %vm375_vm0  ;;  %vm384_vm1 = vcmp.eq.s32.totalorder %v331_v18, %v2870_v11  ;;  %vm386_vm5 = vcmp.eq.s32.totalorder %v332_v19, %v2870_v11  ;;  %v604_v5 = vadd.s32 344, %v2857_v3  ;;  %v618_v8 = vadd.s32 456, %v2857_v3  ;;  %p2709_p13 = pneg %p2708_p12 }
  0x24   : > { %2404 = vmatpush1.bf16.msk.msra.mxu0 %vm2403_vm7, %v2770_v15  ;;  %vm2481_vm11 = vmpackc.low %vm638_vm4, %vm636_vm3  ;;  %vm645_vm4 = vcmp.eq.s32.totalorder %v331_v18, %v2872_v12  ;;  %vm383_vm7 = vcmp.eq.s32.totalorder %v331_v18, %v2874_v13 }
  0x25   : > { %2482 = vmatpush1.bf16.msk.msra.mxu1 %vm2481_vm11, %v2770_v15  ;;  %vm2405_vm14 = vmpackc.low %vm382_vm9, %vm380_vm6  ;;  %vm647_vm6 = vcmp.eq.s32.totalorder %v332_v19, %v2872_v12  ;;  %vm644_vm11 = vcmp.eq.s32.totalorder %v331_v18, %v2876_v14  ;;  %v224_v18 = vld [vmem:[%s3868_s2 + $0x60] sm:$0xff]  ;;  %p2716_p3 = pnand %p2715_p2, %p2709_p13 }
  0x26   : > { %2406 = vmatprep.subr.msk.bf16.mxu0 %vm2405_vm14, %v2770_v15  ;;  %vm2483_vm0 = vmpackc.low %vm643_vm10, %vm641_vm8  ;;  %vm385_vm8 = vcmp.eq.s32.totalorder %v332_v19, %v2874_v13  ;;  %vm646_vm14 = vcmp.eq.s32.totalorder %v332_v19, %v2876_v14  ;;  %v605_v19 = vadd.s32 352, %v2857_v3 }
  0x27   : > { %2484 = vmatprep.subr.msk.bf16.mxu1 %vm2483_vm0, %v2770_v15  ;;  %vm2407_vm3 = vmpackc.low %vm381_vm13, %vm379_vm12  ;;  %vm388_vm13 = vcmp.eq.s32.totalorder %v333_v20, %v2870_v11  ;;  %vm390_vm0 = vcmp.eq.s32.totalorder %v334_v21, %v2870_v11 }
  0x28   : > { %2408 = vmatpush1.bf16.msk.msra.mxu0 %vm2407_vm3, %v2770_v15  ;;  %vm2485_vm9 = vmpackc.low %vm642_vm2, %vm640_vm15  ;;  %vm649_vm2 = vcmp.eq.s32.totalorder %v333_v20, %v2872_v12  ;;  %vm387_vm3 = vcmp.eq.s32.totalorder %v333_v20, %v2874_v13 }
  0x29   : > { %2486 = vmatpush1.bf16.msk.msra.mxu1 %vm2485_vm9, %v2770_v15  ;;  %vm2409_vm10 = vmpackc.low %vm386_vm5, %vm384_vm1  ;;  %vm651_vm1 = vcmp.eq.s32.totalorder %v334_v21, %v2872_v12  ;;  %vm648_vm9 = vcmp.eq.s32.totalorder %v333_v20, %v2876_v14  ;;  %v606_v20 = vadd.s32 360, %v2857_v3 }
  0x2a   : > { %2410 = vmatprep.subr.msk.bf16.mxu0 %vm2409_vm10, %v2770_v15  ;;  %vm2487_vm12 = vmpackc.low %vm647_vm6, %vm645_vm4  ;;  %vm389_vm4 = vcmp.eq.s32.totalorder %v334_v21, %v2874_v13  ;;  %vm650_vm10 = vcmp.eq.s32.totalorder %v334_v21, %v2876_v14  ;;  %v276_v21 = vld [vmem:[%s3869_s3 + $0x80] sm:$0xff] }
  0x2b   : > { %2488 = vmatprep.subr.msk.bf16.mxu1 %vm2487_vm12, %v2770_v15  ;;  %vm2411_vm15 = vmpackc.low %vm385_vm8, %vm383_vm7  ;;  %vm392_vm8 = vcmp.eq.s32.totalorder %v335_v22, %v2870_v11  ;;  %vm394_vm12 = vcmp.eq.s32.totalorder %v336_v23, %v2870_v11 }
  0x2c   : > { %2412 = vmatpush1.bf16.msk.msra.mxu0 %vm2411_vm15, %v2770_v15  ;;  %vm2489_vm5 = vmpackc.low %vm646_vm14, %vm644_vm11  ;;  %vm653_vm14 = vcmp.eq.s32.totalorder %v335_v22, %v2872_v12  ;;  %vm391_vm15 = vcmp.eq.s32.totalorder %v335_v22, %v2874_v13 }
  0x2d   : > { %2490 = vmatpush1.bf16.msk.msra.mxu1 %vm2489_vm5, %v2770_v15  ;;  %vm2413_vm6 = vmpackc.low %vm390_vm0, %vm388_vm13  ;;  %vm655_vm13 = vcmp.eq.s32.totalorder %v336_v23, %v2872_v12  ;;  %vm652_vm5 = vcmp.eq.s32.totalorder %v335_v22, %v2876_v14  ;;  %v309_v22 = vld [vmem:[%s3869_s3 + $0x188] sm:$0xff] }
  0x2e   : > { %2414 = vmatprep.subr.msk.bf16.mxu0 %vm2413_vm6, %v2770_v15  ;;  %vm2491_vm7 = vmpackc.low %vm651_vm1, %vm649_vm2  ;;  %vm393_vm2 = vcmp.eq.s32.totalorder %v336_v23, %v2874_v13  ;;  %vm654_vm6 = vcmp.eq.s32.totalorder %v336_v23, %v2876_v14  ;;  %v228_v23 = vld [vmem:[%s3868_s2 + $0x80] sm:$0xff] }
  0x2f   : > { %2492 = vmatprep.subr.msk.bf16.mxu1 %vm2491_vm7, %v2770_v15  ;;  %vm2415_vm11 = vmpackc.low %vm389_vm4, %vm387_vm3  ;;  %vm396_vm4 = vcmp.eq.s32.totalorder %v337_v24, %v2870_v11  ;;  %vm398_vm7 = vcmp.eq.s32.totalorder %v338_v25, %v2870_v11 }
  0x30   : > { %2416 = vmatpush1.bf16.msk.msra.mxu0 %vm2415_vm11, %v2770_v15  ;;  %vm2493_vm0 = vmpackc.low %vm650_vm10, %vm648_vm9  ;;  %vm657_vm10 = vcmp.eq.s32.totalorder %v337_v24, %v2872_v12  ;;  %vm395_vm11 = vcmp.eq.s32.totalorder %v337_v24, %v2874_v13 }
  0x31   : > { %2494 = vmatpush1.bf16.msk.msra.mxu1 %vm2493_vm0, %v2770_v15  ;;  %vm2417_vm1 = vmpackc.low %vm394_vm12, %vm392_vm8  ;;  %vm659_vm8 = vcmp.eq.s32.totalorder %v338_v25, %v2872_v12  ;;  %vm656_vm0 = vcmp.eq.s32.totalorder %v337_v24, %v2876_v14  ;;  %v281_v24 = vld [vmem:[%s3869_s3 + $0xa8] sm:$0xff] }
  0x32   : > { %2418 = vmatprep.subr.msk.bf16.mxu0 %vm2417_vm1, %v2770_v15  ;;  %vm2495_vm3 = vmpackc.low %vm655_vm13, %vm653_vm14  ;;  %vm397_vm14 = vcmp.eq.s32.totalorder %v338_v25, %v2874_v13  ;;  %vm658_vm1 = vcmp.eq.s32.totalorder %v338_v25, %v2876_v14  ;;  %v622_v25 = vadd.s32 488, %v2857_v3 }
  0x33   : > { %2496 = vmatprep.subr.msk.bf16.mxu1 %vm2495_vm3, %v2770_v15  ;;  %vm2419_vm9 = vmpackc.low %vm393_vm2, %vm391_vm15  ;;  %vm400_vm2 = vcmp.eq.s32.totalorder %v339_v26, %v2870_v11  ;;  %vm402_vm3 = vcmp.eq.s32.totalorder %v340_v27, %v2870_v11 }
  0x34   : > { %2420 = vmatpush1.bf16.msk.msra.mxu0 %vm2419_vm9, %v2770_v15  ;;  %vm2497_vm12 = vmpackc.low %vm654_vm6, %vm652_vm5  ;;  %vm661_vm6 = vcmp.eq.s32.totalorder %v339_v26, %v2872_v12  ;;  %vm399_vm9 = vcmp.eq.s32.totalorder %v339_v26, %v2874_v13 }
  0x35   : > { %2498 = vmatpush1.bf16.msk.msra.mxu1 %vm2497_vm12, %v2770_v15  ;;  %vm2421_vm13 = vmpackc.low %vm398_vm7, %vm396_vm4  ;;  %vm663_vm4 = vcmp.eq.s32.totalorder %v340_v27, %v2872_v12  ;;  %vm660_vm12 = vcmp.eq.s32.totalorder %v339_v26, %v2876_v14  ;;  %v308_v26 = vld [vmem:[%s3869_s3 + $0x180] sm:$0xff] }
  0x36   : > { %2422 = vmatprep.subr.msk.bf16.mxu0 %vm2421_vm13, %v2770_v15  ;;  %vm2499_vm15 = vmpackc.low %vm659_vm8, %vm657_vm10  ;;  %vm401_vm10 = vcmp.eq.s32.totalorder %v340_v27, %v2874_v13  ;;  %vm662_vm13 = vcmp.eq.s32.totalorder %v340_v27, %v2876_v14  ;;  %v607_v27 = vadd.s32 368, %v2857_v3 }
  0x37   : > { %2500 = vmatprep.subr.msk.bf16.mxu1 %vm2499_vm15, %v2770_v15  ;;  %vm2423_vm5 = vmpackc.low %vm397_vm14, %vm395_vm11  ;;  %vm404_vm14 = vcmp.eq.s32.totalorder %v341_v28, %v2870_v11  ;;  %vm406_vm15 = vcmp.eq.s32.totalorder %v342_v29, %v2870_v11 }
  0x38   : > { %2424 = vmatpush1.bf16.msk.msra.mxu0 %vm2423_vm5, %v2770_v15  ;;  %vm2501_vm7 = vmpackc.low %vm658_vm1, %vm656_vm0  ;;  %vm665_vm1 = vcmp.eq.s32.totalorder %v341_v28, %v2872_v12  ;;  %vm403_vm5 = vcmp.eq.s32.totalorder %v341_v28, %v2874_v13 }
  0x39   : > { %2502 = vmatpush1.bf16.msk.msra.mxu1 %vm2501_vm7, %v2770_v15  ;;  %vm2425_vm8 = vmpackc.low %vm402_vm3, %vm400_vm2  ;;  %vm667_vm2 = vcmp.eq.s32.totalorder %v342_v29, %v2872_v12  ;;  %vm664_vm7 = vcmp.eq.s32.totalorder %v341_v28, %v2876_v14  ;;  %v608_v28 = vadd.s32 376, %v2857_v3 }
  0x3a   : > { %2426 = vmatprep.subr.msk.bf16.mxu0 %vm2425_vm8, %v2770_v15  ;;  %vm2503_vm11 = vmpackc.low %vm663_vm4, %vm661_vm6  ;;  %vm405_vm6 = vcmp.eq.s32.totalorder %v342_v29, %v2874_v13  ;;  %vm666_vm8 = vcmp.eq.s32.totalorder %v342_v29, %v2876_v14  ;;  %v227_v29 = vld [vmem:[%s3868_s2 + $0x78] sm:$0xff] }
  0x3b   : > { %2504 = vmatprep.subr.msk.bf16.mxu1 %vm2503_vm11, %v2770_v15  ;;  %vm2427_vm0 = vmpackc.low %vm401_vm10, %vm399_vm9  ;;  %vm408_vm10 = vcmp.eq.s32.totalorder %v343_v30, %v2870_v11  ;;  %vm410_vm11 = vcmp.eq.s32.totalorder %v344_v31, %v2870_v11 }
  0x3c   : > { %2428 = vmatpush1.bf16.msk.msra.mxu0 %vm2427_vm0, %v2770_v15  ;;  %vm2505_vm3 = vmpackc.low %vm662_vm13, %vm660_vm12  ;;  %vm669_vm13 = vcmp.eq.s32.totalorder %v343_v30, %v2872_v12  ;;  %vm407_vm0 = vcmp.eq.s32.totalorder %v343_v30, %v2874_v13 }
  0x3d   : > { %2506 = vmatpush1.bf16.msk.msra.mxu1 %vm2505_vm3, %v2770_v15  ;;  %vm2429_vm4 = vmpackc.low %vm406_vm15, %vm404_vm14  ;;  %vm671_vm14 = vcmp.eq.s32.totalorder %v344_v31, %v2872_v12  ;;  %vm668_vm3 = vcmp.eq.s32.totalorder %v343_v30, %v2876_v14  ;;  %v280_v30 = vld [vmem:[%s3869_s3 + $0xa0] sm:$0xff] }
  0x3e   : > { %2430 = vmatprep.subr.msk.bf16.mxu0 %vm2429_vm4, %v2770_v15  ;;  %vm2507_vm9 = vmpackc.low %vm667_vm2, %vm665_vm1  ;;  %vm409_vm1 = vcmp.eq.s32.totalorder %v344_v31, %v2874_v13  ;;  %vm670_vm4 = vcmp.eq.s32.totalorder %v344_v31, %v2876_v14  ;;  %v231_v31 = vld [vmem:[%s3868_s2 + $0x98] sm:$0xff] }
  0x3f   : > { %2508 = vmatprep.subr.msk.bf16.mxu1 %vm2507_vm9, %v2770_v15  ;;  %vm2431_vm12 = vmpackc.low %vm405_vm6, %vm403_vm5  ;;  %vm412_vm6 = vcmp.eq.s32.totalorder %v345_v32, %v2870_v11  ;;  %vm414_vm9 = vcmp.eq.s32.totalorder %v346_v33, %v2870_v11 }
  0x40   : > { %2432 = vmatpush1.bf16.msk.msra.mxu0 %vm2431_vm12, %v2770_v15  ;;  %vm2509_vm15 = vmpackc.low %vm666_vm8, %vm664_vm7  ;;  %vm673_vm8 = vcmp.eq.s32.totalorder %v345_v32, %v2872_v12  ;;  %vm411_vm12 = vcmp.eq.s32.totalorder %v345_v32, %v2874_v13 }
  0x41   : > { %2510 = vmatpush1.bf16.msk.msra.mxu1 %vm2509_vm15, %v2770_v15  ;;  %vm2433_vm2 = vmpackc.low %vm410_vm11, %vm408_vm10  ;;  %vm675_vm10 = vcmp.eq.s32.totalorder %v346_v33, %v2872_v12  ;;  %vm672_vm15 = vcmp.eq.s32.totalorder %v345_v32, %v2876_v14  ;;  %v255_v32 = vld [vmem:[%s3868_s2 + $0x158] sm:$0xff] }
  0x42   : > { %2434 = vmatprep.subr.msk.bf16.mxu0 %vm2433_vm2, %v2770_v15  ;;  %vm2511_vm5 = vmpackc.low %vm671_vm14, %vm669_vm13  ;;  %vm413_vm13 = vcmp.eq.s32.totalorder %v346_v33, %v2874_v13  ;;  %vm674_vm2 = vcmp.eq.s32.totalorder %v346_v33, %v2876_v14  ;;  %v285_v33 = vld [vmem:[%s3869_s3 + $0xc8] sm:$0xff] }
  0x43   : > { %2512 = vmatprep.subr.msk.bf16.mxu1 %vm2511_vm5, %v2770_v15  ;;  %vm2435_vm7 = vmpackc.low %vm409_vm1, %vm407_vm0  ;;  %vm416_vm1 = vcmp.eq.s32.totalorder %v347_v34, %v2870_v11  ;;  %vm418_vm5 = vcmp.eq.s32.totalorder %v348_v35, %v2870_v11 }
  0x44   : > { %2436 = vmatpush1.bf16.msk.msra.mxu0 %vm2435_vm7, %v2770_v15  ;;  %vm2513_vm11 = vmpackc.low %vm670_vm4, %vm668_vm3  ;;  %vm677_vm4 = vcmp.eq.s32.totalorder %v347_v34, %v2872_v12  ;;  %vm415_vm7 = vcmp.eq.s32.totalorder %v347_v34, %v2874_v13 }
  0x45   : > { %2514 = vmatpush1.bf16.msk.msra.mxu1 %vm2513_vm11, %v2770_v15  ;;  %vm2437_vm14 = vmpackc.low %vm414_vm9, %vm412_vm6  ;;  %vm679_vm6 = vcmp.eq.s32.totalorder %v348_v35, %v2872_v12  ;;  %vm676_vm11 = vcmp.eq.s32.totalorder %v347_v34, %v2876_v14  ;;  %v3357_v34 = vadd.s32 384, %v2857_v3 }
  0x46   : > { %2438 = vmatprep.subr.msk.bf16.mxu0 %vm2437_vm14, %v2770_v15  ;;  %vm2515_vm0 = vmpackc.low %vm675_vm10, %vm673_vm8  ;;  %vm417_vm8 = vcmp.eq.s32.totalorder %v348_v35, %v2874_v13  ;;  %vm678_vm14 = vcmp.eq.s32.totalorder %v348_v35, %v2876_v14  ;;  %v316_v35 = vld [vmem:[%s3869_s3 + $0x1c0] sm:$0xff] }
  0x47   : > { %2516 = vmatprep.subr.msk.bf16.mxu1 %vm2515_vm0, %v2770_v15  ;;  %vm2439_vm3 = vmpackc.low %vm413_vm13, %vm411_vm12  ;;  %vm420_vm13 = vcmp.eq.s32.totalorder %v349_v36, %v2870_v11  ;;  %vm422_vm0 = vcmp.eq.s32.totalorder %v350_v37, %v2870_v11 }
  0x48   : > { %2440 = vmatpush1.bf16.msk.msra.mxu0 %vm2439_vm3, %v2770_v15  ;;  %vm2517_vm9 = vmpackc.low %vm674_vm2, %vm672_vm15  ;;  %vm681_vm2 = vcmp.eq.s32.totalorder %v349_v36, %v2872_v12  ;;  %vm419_vm3 = vcmp.eq.s32.totalorder %v349_v36, %v2874_v13 }
  0x49   : > { %2518 = vmatpush1.bf16.msk.msra.mxu1 %vm2517_vm9, %v2770_v15  ;;  %vm2441_vm10 = vmpackc.low %vm418_vm5, %vm416_vm1  ;;  %vm683_vm1 = vcmp.eq.s32.totalorder %v350_v37, %v2872_v12  ;;  %vm680_vm9 = vcmp.eq.s32.totalorder %v349_v36, %v2876_v14  ;;  %v610_v36 = vadd.s32 392, %v2857_v3 }
  0x4a   : > { %2442 = vmatprep.subr.msk.bf16.mxu0 %vm2441_vm10, %v2770_v15  ;;  %vm2519_vm12 = vmpackc.low %vm679_vm6, %vm677_vm4  ;;  %vm421_vm4 = vcmp.eq.s32.totalorder %v350_v37, %v2874_v13  ;;  %vm682_vm10 = vcmp.eq.s32.totalorder %v350_v37, %v2876_v14  ;;  %v2771_v37 = vmov 0.0  }
  0x4b   : > { %2520 = vmatprep.subr.msk.bf16.mxu1 %vm2519_vm12, %v2770_v15  ;;  %vm2443_vm15 = vmpackc.low %vm417_vm8, %vm415_vm7  ;;  %vm424_vm8 = vcmp.eq.s32.totalorder %v351_v38, %v2870_v11  ;;  %vm426_vm12 = vcmp.eq.s32.totalorder %v352_v39, %v2870_v11 }
  0x4c   : > { %2444 = vmatpush1.bf16.msk.msra.mxu0 %vm2443_vm15, %v2770_v15  ;;  %vm2521_vm5 = vmpackc.low %vm678_vm14, %vm676_vm11  ;;  %vm685_vm14 = vcmp.eq.s32.totalorder %v351_v38, %v2872_v12  ;;  %vm423_vm15 = vcmp.eq.s32.totalorder %v351_v38, %v2874_v13 }
  0x4d   : > { %2522 = vmatpush1.bf16.msk.msra.mxu1 %vm2521_vm5, %v2770_v15  ;;  %vm2445_vm6 = vmpackc.low %vm422_vm0, %vm420_vm13  ;;  %vm687_vm13 = vcmp.eq.s32.totalorder %v352_v39, %v2872_v12  ;;  %vm684_vm5 = vcmp.eq.s32.totalorder %v351_v38, %v2876_v14 }
  0x4e   : > { %2446 = vmatprep.subr.msk.bf16.mxu0 %vm2445_vm6, %v2770_v15  ;;  %vm2523_vm7 = vmpackc.low %vm683_vm1, %vm681_vm2  ;;  %vm425_vm2 = vcmp.eq.s32.totalorder %v352_v39, %v2874_v13  ;;  %vm686_vm6 = vcmp.eq.s32.totalorder %v352_v39, %v2876_v14  ;;  %v230_v39 = vld [vmem:[%s3868_s2 + $0x90] sm:$0xff] }
  0x4f   : > { %2524 = vmatprep.subr.msk.bf16.mxu1 %vm2523_vm7, %v2770_v15  ;;  %vm2447_vm11 = vmpackc.low %vm421_vm4, %vm419_vm3  ;;  %vm428_vm4 = vcmp.eq.s32.totalorder %v353_v40, %v2870_v11  ;;  %vm430_vm7 = vcmp.eq.s32.totalorder %v354_v41, %v2870_v11 }
  0x50   : > { %2448 = vmatpush1.bf16.msk.msra.mxu0 %vm2447_vm11, %v2770_v15  ;;  %vm2525_vm0 = vmpackc.low %vm682_vm10, %vm680_vm9  ;;  %vm689_vm10 = vcmp.eq.s32.totalorder %v353_v40, %v2872_v12  ;;  %vm427_vm11 = vcmp.eq.s32.totalorder %v353_v40, %v2874_v13 }
  0x51   : > { %2526 = vmatpush1.bf16.msk.msra.mxu1 %vm2525_vm0, %v2770_v15  ;;  %vm2449_vm1 = vmpackc.low %vm426_vm12, %vm424_vm8  ;;  %vm691_vm8 = vcmp.eq.s32.totalorder %v354_v41, %v2872_v12  ;;  %vm688_vm0 = vcmp.eq.s32.totalorder %v353_v40, %v2876_v14  ;;  %v284_v40 = vld [vmem:[%s3869_s3 + $0xc0] sm:$0xff] }
  0x52   : > { %2450 = vmatprep.subr.msk.bf16.mxu0 %vm2449_vm1, %v2770_v15  ;;  %vm2527_vm3 = vmpackc.low %vm687_vm13, %vm685_vm14  ;;  %vm429_vm14 = vcmp.eq.s32.totalorder %v354_v41, %v2874_v13  ;;  %vm690_vm1 = vcmp.eq.s32.totalorder %v354_v41, %v2876_v14 }
  0x53   : > { %2528 = vmatprep.subr.msk.bf16.mxu1 %vm2527_vm3, %v2770_v15  ;;  %vm2451_vm9 = vmpackc.low %vm425_vm2, %vm423_vm15  ;;  %vm432_vm2 = vcmp.eq.s32.totalorder %v355_v42, %v2870_v11  ;;  %vm434_vm3 = vcmp.eq.s32.totalorder %v356_v43, %v2870_v11 }
  0x54   : > { %2452 = vmatpush1.bf16.msk.msra.mxu0 %vm2451_vm9, %v2770_v15  ;;  %vm2529_vm12 = vmpackc.low %vm686_vm6, %vm684_vm5  ;;  %vm693_vm6 = vcmp.eq.s32.totalorder %v355_v42, %v2872_v12  ;;  %vm695_vm9 = vcmp.eq.s32.totalorder %v356_v43, %v2872_v12 }
  0x55   : > { %2530 = vmatpush1.bf16.msk.msra.mxu1 %vm2529_vm12, %v2770_v15  ;;  %vm2453_vm13 = vmpackc.low %vm430_vm7, %vm428_vm4  ;;  %vm431_vm7 = vcmp.eq.s32.totalorder %v355_v42, %v2874_v13  ;;  %vm692_vm12 = vcmp.eq.s32.totalorder %v355_v42, %v2876_v14  ;;  %v234_v42 = vld [vmem:[%s3868_s2 + $0xb0] sm:$0xff] }
  0x56   : > { %2454 = vmatprep.subr.msk.bf16.mxu0 %vm2453_vm13, %v2770_v15  ;;  %vm2531_vm15 = vmpackc.low %vm691_vm8, %vm689_vm10  ;;  %vm433_vm10 = vcmp.eq.s32.totalorder %v356_v43, %v2874_v13  ;;  %vm436_vm13 = vcmp.eq.s32.totalorder %v357_v44, %v2870_v11 }
  0x57   : > { %2532 = vmatprep.subr.msk.bf16.mxu1 %vm2531_vm15, %v2770_v15  ;;  %vm2455_vm5 = vmpackc.low %vm429_vm14, %vm427_vm11  ;;  %vm694_vm11 = vcmp.eq.s32.totalorder %v356_v43, %v2876_v14  ;;  %vm438_vm15 = vcmp.eq.s32.totalorder %v358_v45, %v2870_v11  ;;  %v289_v43 = vld [vmem:[%s3869_s3 + $0xe8] sm:$0xff] }
  0x58   : > { %2456 = vmatpush1.bf16.msk.msra.mxu0 %vm2455_vm5, %v2770_v15  ;;  %vm2533_vm4 = vmpackc.low %vm690_vm1, %vm688_vm0  ;;  %vm697_vm1 = vcmp.eq.s32.totalorder %v357_v44, %v2872_v12  ;;  %vm435_vm5 = vcmp.eq.s32.totalorder %v357_v44, %v2874_v13 }
  0x59   : > { %2534 = vmatpush1.bf16.msk.msra.mxu1 %vm2533_vm4, %v2770_v15  ;;  %vm2457_vm8 = vmpackc.low %vm434_vm3, %vm432_vm2  ;;  %vm699_vm2 = vcmp.eq.s32.totalorder %v358_v45, %v2872_v12  ;;  %vm696_vm4 = vcmp.eq.s32.totalorder %v357_v44, %v2876_v14  ;;  %v217_v44 = vld [vmem:[%s3868_s2 + $0x28] sm:$0xff] }
  0x5a   : > { %2458 = vmatprep.subr.msk.bf16.mxu0 %vm2457_vm8, %v2770_v15  ;;  %vm2535_vm14 = vmpackc.low %vm695_vm9, %vm693_vm6  ;;  %vm437_vm6 = vcmp.eq.s32.totalorder %v358_v45, %v2874_v13  ;;  %vm701_vm8 = vcmp.eq.s32.totalorder %v3104_v46, %v2872_v12 }
  0x5b   : > { %2536 = vmatprep.subr.msk.bf16.mxu1 %vm2535_vm14, %v2770_v15  ;;  %vm2459_vm0 = vmpackc.low %vm433_vm10, %vm431_vm7  ;;  %vm698_vm7 = vcmp.eq.s32.totalorder %v358_v45, %v2876_v14  ;;  %vm700_vm14 = vcmp.eq.s32.totalorder %v3104_v46, %v2876_v14  ;;  %v2772_v45 = vmov 1.0  }
  0x5c   : > { %2460 = vmatpush1.bf16.msk.msra.mxu0 %vm2459_vm0, %v2770_v15  ;;  %vm2537_vm3 = vmpackc.low %vm694_vm11, %vm692_vm12  ;;  %vm703_vm12 = vcmp.eq.s32.totalorder %v3107_v47, %v2872_v12  ;;  %vm705_vm0 = vcmp.eq.s32.totalorder %v3119_v49, %v2872_v12 }
  0x5d   : > { %2538 = vmatpush1.bf16.msk.msra.mxu1 %vm2537_vm3, %v2770_v15  ;;  %vm2461_vm9 = vmpackc.low %vm438_vm15, %vm436_vm13  ;;  %vm702_vm13 = vcmp.eq.s32.totalorder %v3107_v47, %v2876_v14 }
  0x5e   : > { %2462 = vmatprep.subr.msk.bf16.mxu0 %vm2461_vm9, %v2770_v15  ;;  %vm2539_vm10 = vmpackc.low %vm699_vm2, %vm697_vm1  ;;  %vm707_vm1 = vcmp.eq.s32.totalorder %v3122_v50, %v2872_v12  ;;  %vm706_vm9 = vcmp.eq.s32.totalorder %v3122_v50, %v2876_v14 }
  0x5f   : > { %1131 = vmatmul.mubr.f32.vlgmr.msra.gmra.mrb[0].mxu0 %v212_v48  ;;  %2540 = vmatprep.subr.msk.bf16.mxu1 %vm2539_vm10, %v2770_v15  ;;  %vm2463_vm11 = vmpackc.low %vm437_vm6, %vm435_vm5  ;;  %vm704_vm6 = vcmp.eq.s32.totalorder %v3119_v49, %v2876_v14  ;;  %v270_v48 = vld [vmem:[%s3869_s3 + $0x50] sm:$0xff] }
  0x60   : > { %1508 = vmatmul.mubr.f32.vlgmr.msra.gmra.mrb[0].mxu1 %v260_v51  ;;  %2464 = vmatpush1.bf16.msk.msra.mxu0 %vm2463_vm11, %v2770_v15  ;;  %vm2541_vm15 = vmpackc.low %vm698_vm7, %vm696_vm4  ;;  %vm709_vm4 = vcmp.eq.s32.totalorder %v599_v55, %v2872_v12  ;;  %vm711_vm7 = vcmp.eq.s32.totalorder %v600_v56, %v2872_v12  ;;  %v233_v51 = vld [vmem:[%s3868_s2 + $0xa8] sm:$0xff] }
  0x61   : > { %2542 = vmatpush1.bf16.msk.msra.mxu1 %vm2541_vm15, %v2770_v15  ;;  %1136 = vmatprep.mubr.f32.mxu0 %v216_v52  ;;  %vm2543_vm2 = vmpackc.low %vm703_vm12, %vm701_vm8  ;;  %vm708_vm8 = vcmp.eq.s32.totalorder %v599_v55, %v2876_v14  ;;  %vm710_vm12 = vcmp.eq.s32.totalorder %v600_v56, %v2876_v14  ;;  %vm440_vm15 = vcmp.eq.s32.totalorder %v3104_v46, %v2870_v11  ;;  %v611_v52 = vadd.s32 400, %v2857_v3  ;;  %v236_v56 = vld [vmem:[%s3868_s2 + $0xc0] sm:$0xff] }
  0x62   : > { %1513 = vmatprep.mubr.f32.mxu1 %v265_v53  ;;  %2544 = vmatprep.subr.msk.bf16.mxu1 %vm2543_vm2, %v2770_v15  ;;  %vm2545_vm3 = vmpackc.low %vm702_vm13, %vm700_vm14  ;;  %vm713_vm14 = vcmp.eq.s32.totalorder %v601_v60, %v2872_v12  ;;  %vm715_vm13 = vcmp.eq.s32.totalorder %v602_v61, %v2872_v12  ;;  %v612_v53 = vadd.s32 408, %v2857_v3 }
  0x63   : > { %1137 = vmatmul.mubr.f32.gmra.mrb[2].mxu0 %v215_v54  ;;  %vm2547_vm5 = vmpackc.low %vm707_vm1, %vm705_vm0  ;;  %vm442_vm0 = vcmp.eq.s32.totalorder %v3107_v47, %v2870_v11  ;;  %v229_v54 = vld [vmem:[%s3868_s2 + $0x88] sm:$0xff] }
  0x64   : > { %1514 = vmatmul.mubr.f32.gmra.mrb[2].mxu1 %v264_v57  ;;  %1142 = vmatprep.mubr.f32.mxu0 %v219_v58  ;;  %vm2549_vm10 = vmpackc.low %vm706_vm9, %vm704_vm6  ;;  %vm717_vm6 = vcmp.eq.s32.totalorder %v603_v4, %v2872_v12  ;;  %vm719_vm9 = vcmp.eq.s32.totalorder %v604_v5, %v2872_v12  ;;  %v613_v57 = vadd.s32 416, %v2857_v3  ;;  %v614_v58 = vadd.s32 424, %v2857_v3 }
  0x65   : > { %2546 = vmatpush1.bf16.msk.msra.mxu1 %vm2545_vm3, %v2770_v15  ;;  %1519 = vmatprep.mubr.f32.mxu1 %v269_v59  ;;  %vm2551_vm11 = vmpackc.low %vm711_vm7, %vm709_vm4  ;;  %vm712_vm3 = vcmp.eq.s32.totalorder %v601_v60, %v2876_v14  ;;  %vm439_vm7 = vcmp.eq.s32.totalorder %v3104_v46, %v2874_v13  ;;  %v292_v59 = vld [vmem:[%s3869_s3 + $0x100] sm:$0xff] }
  0x66   : > { %2548 = vmatprep.subr.msk.bf16.mxu1 %vm2547_vm5, %v2770_v15  ;;  %vm3234_vm1 = vmpackc.low %vm710_vm12, %vm708_vm8  ;;  %vm714_vm5 = vcmp.eq.s32.totalorder %v602_v61, %v2876_v14  ;;  %v240_v60 = vld [vmem:[%s3868_s2 + $0xe0] sm:$0xff]  ;;  %v297_v61 = vld [vmem:[%s3869_s3 + $0x128] sm:$0xff] }
  0x67   : > { %1143 = vmatmul.mubr.f32.gmra.mrb[4].mxu0 %v218_v62  ;;  %vm3249_vm2 = vmpackc.low %vm715_vm13, %vm713_vm14  ;;  %vm718_vm14 = vcmp.eq.s32.totalorder %v604_v5, %v2876_v14  ;;  %v239_v62 = vld [vmem:[%s3868_s2 + $0xd8] sm:$0xff]  ;;  %v301_v5 = vld [vmem:[%s3869_s3 + $0x148] sm:$0xff] }
  0x68   : > { %1520 = vmatmul.mubr.f32.gmra.mrb[4].mxu1 %v268_v63  ;;  %1148 = vmatprep.mubr.f32.mxu0 %v222_v1  ;;  %vm3260_vm4 = vmpackc.low %vm442_vm0, %vm440_vm15  ;;  %vm721_vm15 = vcmp.eq.s32.totalorder %v605_v19, %v2872_v12  ;;  %vm723_vm0 = vcmp.eq.s32.totalorder %v606_v20, %v2872_v12  ;;  %v615_v63 = vadd.s32 432, %v2857_v3  ;;  %v616_v1 = vadd.s32 440, %v2857_v3 }
  0x69   : > { %2550 = vmatpush1.bf16.msk.msra.mxu1 %vm2549_vm10, %v2770_v15  ;;  %1525 = vmatprep.mubr.f32.mxu1 %v273_v2  ;;  %vm441_vm10 = vcmp.eq.s32.totalorder %v3107_v47, %v2874_v13  ;;  %vm3283_vm8 = vmpackc.low %vm714_vm5, %vm712_vm3  ;;  %vm720_vm3 = vcmp.eq.s32.totalorder %v605_v19, %v2876_v14  ;;  %vm722_vm5 = vcmp.eq.s32.totalorder %v606_v20, %v2876_v14  ;;  %v296_v2 = vld [vmem:[%s3869_s3 + $0x120] sm:$0xff]  ;;  %v620_v19 = vadd.s32 472, %v2857_v3 }
  0x6a   : > { %2552 = vmatprep.subr.msk.bf16.mxu1 %vm2551_vm11, %v2770_v15  ;;  %vm3300_vm12 = vmpackc.low %vm719_vm9, %vm717_vm6  ;;  %2466 = vmatprep.subr.msk.bf16.mxu0 %vm3260_vm4, %v2770_v15  ;;  %vm716_vm11 = vcmp.eq.s32.totalorder %v603_v4, %v2876_v14  ;;  %vm725_vm9 = vcmp.eq.s32.totalorder %v607_v27, %v2872_v12  ;;  %vm727_vm4 = vcmp.eq.s32.totalorder %v608_v28, %v2872_v12  ;;  %v243_v4 = vld [vmem:[%s3868_s2 + $0xf8] sm:$0xff]  ;;  %v304_v20 = vld [vmem:[%s3869_s3 + $0x160] sm:$0xff] }
  0x6b   : > { %1149 = vmatmul.mubr.f32.gmra.mrb[6].mxu0 %v221_v6  ;;  %vm3315_vm13 = vmpackc.low %vm441_vm10, %vm439_vm7  ;;  %vm444_vm7 = vcmp.eq.s32.totalorder %v3119_v49, %v2870_v11  ;;  %vm445_vm10 = vcmp.eq.s32.totalorder %v3122_v50, %v2874_v13  ;;  %v242_v6 = vld [vmem:[%s3868_s2 + $0xf0] sm:$0xff] }
  0x6c   : > { %1526 = vmatmul.mubr.f32.gmra.mrb[6].mxu1 %v272_v7  ;;  %1154 = vmatprep.mubr.f32.mxu0 %v225_v9  ;;  %vm3361_vm6 = vmpackc.low %vm723_vm0, %vm721_vm15  ;;  %vm729_vm15 = vcmp.eq.s32.totalorder %v3357_v34, %v2872_v12  ;;  %vm731_vm0 = vcmp.eq.s32.totalorder %v610_v36, %v2872_v12  ;;  %v2029_v47 = vsel %vm445_vm10, 1.0, %v2771_v37  ;;  %vm735_vm10 = vcmp.eq.s32.totalorder %v612_v53, %v2872_v12  ;;  %v300_v9 = vld [vmem:[%s3869_s3 + $0x140] sm:$0xff] }
  0x6d   : > { %2554 = vmatpush1.bf16.msk.msra.mxu1 %vm3234_vm1, %v2770_v15  ;;  %1531 = vmatprep.mubr.f32.mxu1 %v277_v10  ;;  %vm446_vm1 = vcmp.eq.s32.totalorder %v3122_v50, %v2870_v11  ;;  %v288_v11 = vld [vmem:[%s3869_s3 + $0xe0] sm:$0xff]  ;;  %v2472_v55 = vpack.c.bf16 %v2029_v47, %v2772_v45  ;;  %v617_v7 = vadd.s32 448, %v2857_v3  ;;  %v246_v10 = vld [vmem:[%s3868_s2 + $0x110] sm:$0xff] }
  0x6e   : > { %2556 = vmatprep.subr.msk.bf16.mxu1 %vm3249_vm2, %v2770_v15  ;;  %vm3344_vm2 = vmpackc.low %vm718_vm14, %vm716_vm11  ;;  %2468 = vmatpush1.bf16.msk.msra.mxu0 %vm3315_vm13, %v2770_v15  ;;  %v2030_v38 = vsel %vm446_vm1, 1.0, %v2771_v37  ;;  %vm724_vm14 = vcmp.eq.s32.totalorder %v607_v27, %v2876_v14  ;;  %vm726_vm13 = vcmp.eq.s32.totalorder %v608_v28, %v2876_v14  ;;  %v252_v27 = vld [vmem:[%s3868_s2 + $0x140] sm:$0xff]  ;;  %v313_v28 = vld [vmem:[%s3869_s3 + $0x1a8] sm:$0xff] }
  0x6f   : > { %1155 = vmatmul.mubr.f32.gmra.mrb[8].mxu0 %v224_v18  ;;  %vm3406_vm11 = vmpackc.low %vm727_vm4, %vm725_vm9  ;;  %v2469_v46 = vpack.c.bf16 %v2030_v38, %v2772_v45  ;;  %vm730_vm9 = vcmp.eq.s32.totalorder %v610_v36, %v2876_v14  ;;  %v619_v18 = vadd.s32 464, %v2857_v3  ;;  %v258_v36 = vld [vmem:[%s3868_s2 + $0x170] sm:$0xff]  ;;  %v321_v38 = vld [vmem:[%s3869_s3 + $0x1e8] sm:$0xff] }
  0x70   : > { %1532 = vmatmul.mubr.f32.gmra.mrb[8].mxu1 %v276_v21  ;;  %1160 = vmatprep.mubr.f32.mxu0 %v228_v23  ;;  %v249_v21 = vld [vmem:[%s3868_s2 + $0x128] sm:$0xff]  ;;  %v248_v23 = vld [vmem:[%s3868_s2 + $0x120] sm:$0xff]  ;;  %v266_v45 = vld [vmem:[%s3869_s3 + $0x30] sm:$0xff] }
  0x71   : > { %2558 = vmatpush1.bf16.msk.msra.mxu1 %vm3283_vm8, %v2770_v15  ;;  %1537 = vmatprep.mubr.f32.mxu1 %v281_v24  ;;  %vm1059_vm8 = vcmask 1043456   ;;  %v621_v24 = vadd.s32 480, %v2857_v3  ;;  %v220_v47 = vld [vmem:[%s3868_s2 + $0x40] sm:$0xff]  ;;  %v226_v50 = vld [vmem:[%s3868_s2 + $0x70] sm:$0xff] }
  0x72   : > { %2560 = vmatprep.subr.msk.bf16.mxu1 %vm3300_vm12, %v2770_v15  ;;  %vm3389_vm12 = vmpackc.low %vm722_vm5, %vm720_vm3 }
  0x73   : > { %1161 = vmatmul.mubr.f32.gmra.mrb[10].mxu0 %v227_v29  ;;  %vm3423_vm1 = vmpackc.low %vm1059_vm8, %vm444_vm7  ;;  %vm733_vm7 = vcmp.eq.s32.totalorder %v611_v52, %v2872_v12  ;;  %v251_v29 = vld [vmem:[%s3868_s2 + $0x138] sm:$0xff] }
  0x74   : > { %1538 = vmatmul.mubr.f32.gmra.mrb[10].mxu1 %v280_v30  ;;  %1166 = vmatprep.mubr.f32.mxu0 %v231_v31  ;;  %vm3444_vm3 = vmpackc.low %vm726_vm13, %vm724_vm14  ;;  %vm732_vm14 = vcmp.eq.s32.totalorder %v611_v52, %v2876_v14  ;;  %vm734_vm13 = vcmp.eq.s32.totalorder %v612_v53, %v2876_v14  ;;  %v623_v30 = vadd.s32 496, %v2857_v3  ;;  %v312_v31 = vld [vmem:[%s3869_s3 + $0x1a0] sm:$0xff]  ;;  %v223_v52 = vld [vmem:[%s3868_s2 + $0x58] sm:$0xff] }
  0x75   : > { %2562 = vmatpush1.bf16.msk.msra.mxu1 %vm3344_vm2, %v2770_v15  ;;  %1543 = vmatprep.mubr.f32.mxu1 %v285_v33  ;;  %vm443_vm2 = vcmp.eq.s32.totalorder %v3119_v49, %v2874_v13  ;;  %v237_v13 = vld [vmem:[%s3868_s2 + $0xc8] sm:$0xff]  ;;  %vm3462_vm5 = vmpackc.low %vm731_vm0, %vm729_vm15  ;;  %vm737_vm15 = vcmp.eq.s32.totalorder %v613_v57, %v2872_v12  ;;  %vm739_vm0 = vcmp.eq.s32.totalorder %v614_v58, %v2872_v12  ;;  %v274_v53 = vld [vmem:[%s3869_s3 + $0x70] sm:$0xff] }
  0x76   : > { %2564 = vmatprep.subr.msk.bf16.mxu1 %vm3361_vm6, %v2770_v15  ;;  %v293_v49 = vld [vmem:[%s3869_s3 + $0x108] sm:$0xff]  ;;  %2471 = vmatprep.subr.msk.bf16.mxu0 %vm3423_vm1, %v2469_v46  ;;  %vm728_vm6 = vcmp.eq.s32.totalorder %v3357_v34, %v2876_v14  ;;  %vm2473_vm4 = vmpackc.low %vm1059_vm8, %vm443_vm2  ;;  %v254_v34 = vld [vmem:[%s3868_s2 + $0x150] sm:$0xff] }
  0x77   : > { %1167 = vmatmul.mubr.f32.gmra.mrb[12].mxu0 %v230_v39  ;;  %vm2577_vm1 = vmpackc.low %vm734_vm13, %vm732_vm14  ;;  %vm747_vm14 = vcmp.eq.s32.totalorder %v618_v8, %v2872_v12  ;;  %v317_v33 = vld [vmem:[%s3869_s3 + $0x1c8] sm:$0xff]  ;;  %v271_v46 = vld [vmem:[%s3869_s3 + $0x58] sm:$0xff] }
  0x78   : > { %1544 = vmatmul.mubr.f32.gmra.mrb[12].mxu1 %v284_v40  ;;  %1172 = vmatprep.mubr.f32.mxu0 %v234_v42  ;;  %vm2579_vm2 = vmpackc.low %vm739_vm0, %vm737_vm15  ;;  %vm744_vm0 = vcmp.eq.s32.totalorder %v617_v7, %v2876_v14  ;;  %v257_v39 = vld [vmem:[%s3868_s2 + $0x168] sm:$0xff]  ;;  %v320_v40 = vld [vmem:[%s3869_s3 + $0x1e0] sm:$0xff] }
  0x79   : > { %2566 = vmatpush1.bf16.msk.msra.mxu1 %vm3389_vm12, %v2770_v15  ;;  %1549 = vmatprep.mubr.f32.mxu1 %v289_v43  ;;  %vm2573_vm12 = vmpackc.low %vm730_vm9, %vm728_vm6  ;;  %vm741_vm6 = vcmp.eq.s32.totalorder %v615_v63, %v2872_v12  ;;  %vm743_vm9 = vcmp.eq.s32.totalorder %v616_v1, %v2872_v12  ;;  %v262_v42 = vld [vmem:[%s3869_s3 + $0x10] sm:$0xff]  ;;  %v267_v43 = vld [vmem:[%s3869_s3 + $0x38] sm:$0xff] }
  0x7a   : > { %2568 = vmatprep.subr.msk.bf16.mxu1 %vm3406_vm11, %v2770_v15  ;;  %2474 = vmatpush1.bf16.msk.msra.mxu0 %vm2473_vm4, %v2472_v55  ;;  %vm2575_vm11 = vmpackc.low %vm735_vm10, %vm733_vm7  ;;  %vm740_vm10 = vcmp.eq.s32.totalorder %v615_v63, %v2876_v14  ;;  %v282_v55 = vld [vmem:[%s3869_s3 + $0xb0] sm:$0xff] }
  0x7b   : > { %1173 = vmatmul.mubr.f32.gmra.mrb[14].mxu0 %v233_v51  ;;  %vm2583_vm7 = vmpackc.low %vm743_vm9, %vm741_vm6  ;;  %vm748_vm9 = vcmp.eq.s32.totalorder %v619_v18, %v2876_v14  ;;  %v275_v51 = vld [vmem:[%s3869_s3 + $0x78] sm:$0xff]  ;;  %v238_v63 = vld [vmem:[%s3868_s2 + $0xd0] sm:$0xff] }
  0x7c   : > { %1550 = vmatmul.mubr.f32.gmra.mrb[14].mxu1 %v288_v11  ;;  %1178 = vmatprep.mubr.f32.mxu0 %v237_v13  ;;  %v279_v11 = vld [vmem:[%s3869_s3 + $0x98] sm:$0xff]  ;;  %v278_v13 = vld [vmem:[%s3869_s3 + $0x90] sm:$0xff] }
  0x7d   : > { %2570 = vmatpush1.bf16.msk.msra.mxu1 %vm3444_vm3, %v2770_v15  ;;  %1555 = vmatprep.mubr.f32.mxu1 %v293_v49  ;;  %vm736_vm3 = vcmp.eq.s32.totalorder %v613_v57, %v2876_v14  ;;  %v283_v49 = vld [vmem:[%s3869_s3 + $0xb8] sm:$0xff]  ;;  %v232_v57 = vld [vmem:[%s3868_s2 + $0xa0] sm:$0xff] }
  0x7e   : > { %2572 = vmatprep.subr.msk.bf16.mxu1 %vm3462_vm5, %v2770_v15  ;;  %vm738_vm5 = vcmp.eq.s32.totalorder %v614_v58, %v2876_v14  ;;  %v286_v58 = vld [vmem:[%s3869_s3 + $0xd0] sm:$0xff] }
  0x7f   : > { %1179 = vmatmul.mubr.f32.gmra.mrb[16].mxu0 %v236_v56  ;;  %vm2581_vm4 = vmpackc.low %vm738_vm5, %vm736_vm3  ;;  %vm751_vm3 = vcmp.eq.s32.totalorder %v620_v19, %v2872_v12  ;;  %v287_v56 = vld [vmem:[%s3869_s3 + $0xd8] sm:$0xff] }
  0x80   : > { %1556 = vmatmul.mubr.f32.gmra.mrb[16].mxu1 %v292_v59  ;;  %1184 = vmatprep.mubr.f32.mxu0 %v240_v60  ;;  %v291_v59 = vld [vmem:[%s3869_s3 + $0xf8] sm:$0xff] }
  0x81   : > { %2574 = vmatpush1.bf16.msk.msra.mxu1 %vm2573_vm12, %v2770_v15  ;;  %1561 = vmatprep.mubr.f32.mxu1 %v297_v61  ;;  %vm742_vm12 = vcmp.eq.s32.totalorder %v616_v1, %v2876_v14  ;;  %v235_v60 = vld [vmem:[%s3868_s2 + $0xb8] sm:$0xff]  ;;  %v290_v61 = vld [vmem:[%s3869_s3 + $0xf0] sm:$0xff] }
  0x82   : > { %2576 = vmatprep.subr.msk.bf16.mxu1 %vm2575_vm11, %v2770_v15  ;;  %vm745_vm11 = vcmp.eq.s32.totalorder %v617_v7, %v2872_v12  ;;  %vm2585_vm13 = vmpackc.low %vm742_vm12, %vm740_vm10  ;;  %vm755_vm10 = vcmp.eq.s32.totalorder %v622_v25, %v2872_v12  ;;  %v294_v1 = vld [vmem:[%s3869_s3 + $0x110] sm:$0xff]  ;;  %v244_v7 = vld [vmem:[%s3868_s2 + $0x100] sm:$0xff] }
  0x83   : > { %1185 = vmatmul.mubr.f32.gmra.mrb[18].mxu0 %v239_v62  ;;  %vm2587_vm15 = vmpackc.low %vm747_vm14, %vm745_vm11  ;;  %vm752_vm14 = vcmp.eq.s32.totalorder %v621_v24, %v2876_v14  ;;  %v295_v62 = vld [vmem:[%s3869_s3 + $0x118] sm:$0xff] }
  0x84   : > { %1562 = vmatmul.mubr.f32.gmra.mrb[18].mxu1 %v296_v2  ;;  %1190 = vmatprep.mubr.f32.mxu0 %v243_v4  ;;  %v299_v2 = vld [vmem:[%s3869_s3 + $0x138] sm:$0xff]  ;;  %v241_v4 = vld [vmem:[%s3868_s2 + $0xe8] sm:$0xff] }
  0x85   : > { %2578 = vmatpush1.bf16.msk.msra.mxu1 %vm2577_vm1, %v2770_v15  ;;  %1567 = vmatprep.mubr.f32.mxu1 %v301_v5  ;;  %vm746_vm1 = vcmp.eq.s32.totalorder %v618_v8, %v2876_v14  ;;  %v298_v5 = vld [vmem:[%s3869_s3 + $0x130] sm:$0xff] }
  0x86   : > { %2580 = vmatprep.subr.msk.bf16.mxu1 %vm2579_vm2, %v2770_v15  ;;  %vm749_vm2 = vcmp.eq.s32.totalorder %v619_v18, %v2872_v12  ;;  %vm2589_vm5 = vmpackc.low %vm746_vm1, %vm744_vm0  ;;  %vm756_vm1 = vcmp.eq.s32.totalorder %v623_v30, %v2876_v14  ;;  %v302_v8 = vld [vmem:[%s3869_s3 + $0x150] sm:$0xff] }
  0x87   : > { %1191 = vmatmul.mubr.f32.gmra.mrb[20].mxu0 %v242_v6  ;;  %vm2591_vm6 = vmpackc.low %vm751_vm3, %vm749_vm2  ;;  %v2155_v41 = vsel %vm756_vm1, 1.0, %v2771_v37  ;;  %vm1388_vm2 = vcmask 949248   ;;  %vm1010_vm3 = vcmask 359424   ;;  %v303_v6 = vld [vmem:[%s3869_s3 + $0x158] sm:$0xff]  ;;  %v250_v18 = vld [vmem:[%s3868_s2 + $0x130] sm:$0xff] }
  0x88   : > { %1568 = vmatmul.mubr.f32.gmra.mrb[20].mxu1 %v300_v9  ;;  %1196 = vmatprep.mubr.f32.mxu0 %v246_v10  ;;  %v307_v9 = vld [vmem:[%s3869_s3 + $0x178] sm:$0xff] }
  0x89   : > { %2582 = vmatpush1.bf16.msk.msra.mxu1 %vm2581_vm4, %v2770_v15  ;;  %1573 = vmatprep.mubr.f32.mxu1 %v305_v16  ;;  %vm750_vm4 = vcmp.eq.s32.totalorder %v620_v19, %v2876_v14  ;;  %v247_v10 = vld [vmem:[%s3868_s2 + $0x118] sm:$0xff]  ;;  %v306_v16 = vld [vmem:[%s3869_s3 + $0x170] sm:$0xff] }
  0x8a   : > { %2584 = vmatprep.subr.msk.bf16.mxu1 %vm2583_vm7, %v2770_v15  ;;  %vm753_vm7 = vcmp.eq.s32.totalorder %v621_v24, %v2872_v12  ;;  %vm2593_vm12 = vmpackc.low %vm750_vm4, %vm748_vm9  ;;  %v310_v19 = vld [vmem:[%s3869_s3 + $0x190] sm:$0xff]  ;;  %v256_v24 = vld [vmem:[%s3868_s2 + $0x160] sm:$0xff] }
  0x8b   : > { %1197 = vmatmul.mubr.f32.gmra.mrb[22].mxu0 %v245_v17  ;;  %vm2595_vm11 = vmpackc.low %vm755_vm10, %vm753_vm7  ;;  %v311_v17 = vld [vmem:[%s3869_s3 + $0x198] sm:$0xff] }
  0x8c   : > { %1574 = vmatmul.mubr.f32.gmra.mrb[22].mxu1 %v304_v20  ;;  %1202 = vmatprep.mubr.f32.mxu0 %v249_v21  ;;  %v315_v20 = vld [vmem:[%s3869_s3 + $0x1b8] sm:$0xff]  ;;  %v253_v21 = vld [vmem:[%s3868_s2 + $0x148] sm:$0xff] }
  0x8d   : > { %2586 = vmatpush1.bf16.msk.msra.mxu1 %vm2585_vm13, %v2770_v15  ;;  %1579 = vmatprep.mubr.f32.mxu1 %v309_v22  ;;  %vm754_vm13 = vcmp.eq.s32.totalorder %v622_v25, %v2876_v14  ;;  %v263_v14 = vld [vmem:[%s3869_s3 + $0x18] sm:$0xff]  ;;  %v314_v22 = vld [vmem:[%s3869_s3 + $0x1b0] sm:$0xff] }
  0x8e   : > { %2588 = vmatprep.subr.msk.bf16.mxu1 %vm2587_vm15, %v2770_v15  ;;  %vm757_vm15 = vcmp.eq.s32.totalorder %v623_v30, %v2872_v12  ;;  %vm2597_vm0 = vmpackc.low %vm754_vm13, %vm752_vm14  ;;  %v318_v25 = vld [vmem:[%s3869_s3 + $0x1d0] sm:$0xff] }
  0x8f   : > { %1203 = vmatmul.mubr.f32.gmra.mrb[24].mxu0 %v248_v23  ;;  %v2156_v12 = vsel %vm757_vm15, 1.0, %v2771_v37  ;;  %v319_v23 = vld [vmem:[%s3869_s3 + $0x1d8] sm:$0xff] }
  0x90   : > { %1580 = vmatmul.mubr.f32.gmra.mrb[24].mxu1 %v308_v26  ;;  %1208 = vmatprep.mubr.f32.mxu0 %v252_v27  ;;  %v323_v26 = vld [vmem:[%s3869_s3 + $0x1f8] sm:$0xff] }
  0x91   : > { %2590 = vmatpush1.bf16.msk.msra.mxu1 %vm2589_vm5, %v2770_v15  ;;  %1585 = vmatprep.mubr.f32.mxu1 %v313_v28  ;;  %v259_v27 = vld [vmem:[%s3868_s2 + $0x178] sm:$0xff]  ;;  %v322_v28 = vld [vmem:[%s3869_s3 + $0x1f0] sm:$0xff] }
  0x92   : > { %2592 = vmatprep.subr.msk.bf16.mxu1 %vm2591_vm6, %v2770_v15 }
  0x93   : > { %1209 = vmatmul.mubr.f32.gmra.mrb[26].mxu0 %v251_v29 }
  0x94   : > { %1586 = vmatmul.mubr.f32.gmra.mrb[26].mxu1 %v312_v31  ;;  %1214 = vmatprep.mubr.f32.mxu0 %v255_v32 }
  0x95   : > { %2594 = vmatpush1.bf16.msk.msra.mxu1 %vm2593_vm12, %v2770_v15  ;;  %1591 = vmatprep.mubr.f32.mxu1 %v317_v33 }
  0x96   : > { %2596 = vmatprep.subr.msk.bf16.mxu1 %vm2595_vm11, %v2770_v15 }
  0x97   : > { %1215 = vmatmul.mubr.f32.gmra.mrb[28].mxu0 %v254_v34 }
  0x98   : > { %1592 = vmatmul.mubr.f32.gmra.mrb[28].mxu1 %v316_v35  ;;  %1220 = vmatprep.mubr.f32.mxu0 %v258_v36 }
  0x99   : > { %2598 = vmatpush1.bf16.msk.msra.mxu1 %vm2597_vm0, %v2770_v15  ;;  %1597 = vmatprep.mubr.f32.mxu1 %v321_v38  ;;  %v214_v15 = vld [vmem:[%s3868_s2 + $0x10] sm:$0xff] }
  0x9a   : > { %2373 = vmatprep.subr.msk.mxu1 %vm1059_vm8, %v2156_v12 }
  0x9b   : > { %1221 = vmatmul.mubr.f32.gmra.mrb[30].mxu0 %v257_v39 }
  0x9c   : > { %1598 = vmatmul.mubr.f32.gmra.mrb[30].mxu1 %v320_v40  ;;  %1291 = vmatprep.mubr.f32.mxu0 %v2771_v37 }
  0x9d   : > { %2374 = vmatpush1.msk.msra.mxu1 %vm1059_vm8, %v2155_v41  ;;  %2375 = vmatprep.mubr.msk.f32.mxu1 %vm1388_vm2, %v263_v14  ;;  %vm1859_vm8 = vcmp.lt.s32.totalorder %v324_v0, 256 }
  0x9f   : > { %2233 = vmatmul.mubr.msk.f32.vlgmr.msra.gmra.mrb[0].mxu0 %vm1010_vm3, %v214_v15 }
  0xa0   : > { %1669 = vmatmul.mubr.f32.vlgmr.msra.gmra.mrb[0].mxu1 %v262_v42  ;;  %1297 = vmatprep.mubr.f32.mxu0 %v2771_v37 }
  0xa1   : > { %2376 = vmatprep.mubr.msk.f32.mxu1 %vm1388_vm2, %v267_v43 }
  0xa3   : > { %2234 = vmatmul.mubr.msk.f32.gmra.mrb[2].mxu0 %vm1010_vm3, %v217_v44 }
  0xa4   : > { %1675 = vmatmul.mubr.f32.gmra.mrb[2].mxu1 %v266_v45  ;;  %1303 = vmatprep.mubr.f32.mxu0 %v2771_v37 }
  0xa5   : > { %2377 = vmatprep.mubr.msk.f32.mxu1 %vm1388_vm2, %v271_v46 }
  0xa7   : > { %2235 = vmatmul.mubr.msk.f32.gmra.mrb[4].mxu0 %vm1010_vm3, %v220_v47 }
  0xa8   : > { %1681 = vmatmul.mubr.f32.gmra.mrb[4].mxu1 %v270_v48  ;;  %1309 = vmatprep.mubr.f32.mxu0 %v2771_v37 }
  0xa9   : > { %2378 = vmatprep.mubr.msk.f32.mxu1 %vm1388_vm2, %v275_v51 }
  0xab   : > { %2236 = vmatmul.mubr.msk.f32.gmra.mrb[6].mxu0 %vm1010_vm3, %v223_v52 }
  0xac   : > { %1687 = vmatmul.mubr.f32.gmra.mrb[6].mxu1 %v274_v53  ;;  %1315 = vmatprep.mubr.f32.mxu0 %v2771_v37 }
  0xad   : > { %2379 = vmatprep.mubr.msk.f32.mxu1 %vm1388_vm2, %v279_v11 }
  0xaf   : > { %2237 = vmatmul.mubr.msk.f32.gmra.mrb[8].mxu0 %vm1010_vm3, %v226_v50 }
  0xb0   : > { %1693 = vmatmul.mubr.f32.gmra.mrb[8].mxu1 %v278_v13  ;;  %1321 = vmatprep.mubr.f32.mxu0 %v2771_v37 }
  0xb1   : > { %2380 = vmatprep.mubr.msk.f32.mxu1 %vm1388_vm2, %v283_v49 }
  0xb3   : > { %2238 = vmatmul.mubr.msk.f32.gmra.mrb[10].mxu0 %vm1010_vm3, %v229_v54 }
  0xb4   : > { %1699 = vmatmul.mubr.f32.gmra.mrb[10].mxu1 %v282_v55  ;;  %1327 = vmatprep.mubr.f32.mxu0 %v2771_v37 }
  0xb5   : > { %2381 = vmatprep.mubr.msk.f32.mxu1 %vm1388_vm2, %v287_v56 }
  0xb7   : > { %2239 = vmatmul.mubr.msk.f32.gmra.mrb[12].mxu0 %vm1010_vm3, %v232_v57 }
  0xb8   : > { %1705 = vmatmul.mubr.f32.gmra.mrb[12].mxu1 %v286_v58  ;;  %1333 = vmatprep.mubr.f32.mxu0 %v2771_v37 }
  0xb9   : > { %2382 = vmatprep.mubr.msk.f32.mxu1 %vm1388_vm2, %v291_v59 }
  0xbb   : > { %2240 = vmatmul.mubr.msk.f32.gmra.mrb[14].mxu0 %vm1010_vm3, %v235_v60 }
  0xbc   : > { %1711 = vmatmul.mubr.f32.gmra.mrb[14].mxu1 %v290_v61  ;;  %1339 = vmatprep.mubr.f32.mxu0 %v2771_v37 }
  0xbd   : > { %2383 = vmatprep.mubr.msk.f32.mxu1 %vm1388_vm2, %v295_v62 }
  0xbf   : > { %2241 = vmatmul.mubr.msk.f32.gmra.mrb[16].mxu0 %vm1010_vm3, %v238_v63 }
  0xc0   : > { %1717 = vmatmul.mubr.f32.gmra.mrb[16].mxu1 %v294_v1  ;;  %1345 = vmatprep.mubr.f32.mxu0 %v2771_v37 }
  0xc1   : > { %2384 = vmatprep.mubr.msk.f32.mxu1 %vm1388_vm2, %v299_v2 }
  0xc3   : > { %2242 = vmatmul.mubr.msk.f32.gmra.mrb[18].mxu0 %vm1010_vm3, %v241_v4 }
  0xc4   : > { %1723 = vmatmul.mubr.f32.gmra.mrb[18].mxu1 %v298_v5  ;;  %1351 = vmatprep.mubr.f32.mxu0 %v2771_v37 }
  0xc5   : > { %2385 = vmatprep.mubr.msk.f32.mxu1 %vm1388_vm2, %v303_v6 }
  0xc7   : > { %2243 = vmatmul.mubr.msk.f32.gmra.mrb[20].mxu0 %vm1010_vm3, %v244_v7 }
  0xc8   : > { %1729 = vmatmul.mubr.f32.gmra.mrb[20].mxu1 %v302_v8  ;;  %1357 = vmatprep.mubr.f32.mxu0 %v2771_v37 }
  0xc9   : > { %2386 = vmatprep.mubr.msk.f32.mxu1 %vm1388_vm2, %v307_v9 }
  0xcb   : > { %2244 = vmatmul.mubr.msk.f32.gmra.mrb[22].mxu0 %vm1010_vm3, %v247_v10 }
  0xcc   : > { %1735 = vmatmul.mubr.f32.gmra.mrb[22].mxu1 %v306_v16  ;;  %1363 = vmatprep.mubr.f32.mxu0 %v2771_v37 }
  0xcd   : > { %2387 = vmatprep.mubr.msk.f32.mxu1 %vm1388_vm2, %v311_v17 }
  0xcf   : > { %2245 = vmatmul.mubr.msk.f32.gmra.mrb[24].mxu0 %vm1010_vm3, %v250_v18 }
  0xd0   : > { %1741 = vmatmul.mubr.f32.gmra.mrb[24].mxu1 %v310_v19  ;;  %1369 = vmatprep.mubr.f32.mxu0 %v2771_v37 }
  0xd1   : > { %2388 = vmatprep.mubr.msk.f32.mxu1 %vm1388_vm2, %v315_v20 }
  0xd3   : > { %2246 = vmatmul.mubr.msk.f32.gmra.mrb[26].mxu0 %vm1010_vm3, %v253_v21 }
  0xd4   : > { %1747 = vmatmul.mubr.f32.gmra.mrb[26].mxu1 %v314_v22  ;;  %1375 = vmatprep.mubr.f32.mxu0 %v2771_v37 }
  0xd5   : > { %2389 = vmatprep.mubr.msk.f32.mxu1 %vm1388_vm2, %v319_v23 }
  0xd7   : > { %2247 = vmatmul.mubr.msk.f32.gmra.mrb[28].mxu0 %vm1010_vm3, %v256_v24 }
  0xd8   : > { %1753 = vmatmul.mubr.f32.gmra.mrb[28].mxu1 %v318_v25  ;;  %1381 = vmatprep.mubr.f32.mxu0 %v2771_v37 }
  0xd9   : > { %2390 = vmatprep.mubr.msk.f32.mxu1 %vm1388_vm2, %v323_v26 }
  0xdb   : > { %2248 = vmatmul.mubr.msk.f32.gmra.mrb[30].mxu0 %vm1010_vm3, %v259_v27 }
  0xdc   : > { %1759 = vmatmul.mubr.f32.gmra.mrb[30].mxu1 %v322_v28 }
 0x172   : > { %v1293_v29 = vpop.f32.mrb[0].mxu0 }
 0x173   : > { %v1670_v30 = vpop.f32.mrb[0].mxu1  ;;  %v1295_v31 = vpop.f32.mrb[1].mxu0 }
 0x174   : > { %v1765_v32 = vmul.f32 %v1670_v30, %v1293_v29  ;;  %v1672_v33 = vpop.f32.mrb[1].mxu1 }
 0x175   : > { %v1766_v34 = vmul.f32 %v1672_v33, %v1295_v31 }
 0x176   : > { %v1299_v37 = vpop.f32.mrb[2].mxu0 }
 0x177   : > { %v1676_v35 = vpop.f32.mrb[2].mxu1  ;;  %v1301_v36 = vpop.f32.mrb[3].mxu0 }
 0x178   : > { %v1767_v38 = vmul.f32 %v1676_v35, %v1299_v37  ;;  %v1678_v12 = vpop.f32.mrb[3].mxu1 }
 0x179   : > { %v1768_v39 = vmul.f32 %v1678_v12, %v1301_v36 }
 0x17a   : > { %v1797_v40 = vadd.f32 %v1767_v38, %v1765_v32  ;;  %v1305_v41 = vpop.f32.mrb[4].mxu0 }
 0x17b   : > { %v1818_v14 = vadd.f32 %v1768_v39, %v1766_v34  ;;  %v1682_v15 = vpop.f32.mrb[4].mxu1  ;;  %v1307_v42 = vpop.f32.mrb[5].mxu0 }
 0x17c   : > { %v1769_v43 = vmul.f32 %v1682_v15, %v1305_v41  ;;  %v1684_v44 = vpop.f32.mrb[5].mxu1 }
 0x17d   : > { %v1770_v45 = vmul.f32 %v1684_v44, %v1307_v42 }
 0x17e   : > { %v1798_v46 = vadd.f32 %v1797_v40, %v1769_v43  ;;  %v1311_v47 = vpop.f32.mrb[6].mxu0 }
 0x17f   : > { %v1819_v48 = vadd.f32 %v1818_v14, %v1770_v45  ;;  %v1688_v51 = vpop.f32.mrb[6].mxu1  ;;  %v1313_v52 = vpop.f32.mrb[7].mxu0 }
 0x180   : > { %v1771_v53 = vmul.f32 %v1688_v51, %v1311_v47  ;;  %v1690_v11 = vpop.f32.mrb[7].mxu1 }
 0x181   : > { %v1772_v50 = vmul.f32 %v1690_v11, %v1313_v52 }
 0x182   : > { %v1799_v13 = vadd.f32 %v1798_v46, %v1771_v53  ;;  %v1317_v49 = vpop.f32.mrb[8].mxu0 }
 0x183   : > { %v1820_v54 = vadd.f32 %v1819_v48, %v1772_v50  ;;  %v1694_v55 = vpop.f32.mrb[8].mxu1  ;;  %v1319_v56 = vpop.f32.mrb[9].mxu0 }
 0x184   : > { %v1773_v57 = vmul.f32 %v1694_v55, %v1317_v49  ;;  %v1696_v58 = vpop.f32.mrb[9].mxu1 }
 0x185   : > { %v1774_v59 = vmul.f32 %v1696_v58, %v1319_v56 }
 0x186   : > { %v1800_v60 = vadd.f32 %v1799_v13, %v1773_v57  ;;  %v1323_v61 = vpop.f32.mrb[10].mxu0 }
 0x187   : > { %v1821_v62 = vadd.f32 %v1820_v54, %v1774_v59  ;;  %v1700_v63 = vpop.f32.mrb[10].mxu1  ;;  %v1325_v1 = vpop.f32.mrb[11].mxu0 }
 0x188   : > { %v1775_v2 = vmul.f32 %v1700_v63, %v1323_v61  ;;  %v1702_v4 = vpop.f32.mrb[11].mxu1 }
 0x189   : > { %v1776_v5 = vmul.f32 %v1702_v4, %v1325_v1 }
 0x18a   : > { %v1801_v6 = vadd.f32 %v1800_v60, %v1775_v2  ;;  %v1329_v7 = vpop.f32.mrb[12].mxu0 }
 0x18b   : > { %v1822_v8 = vadd.f32 %v1821_v62, %v1776_v5  ;;  %v1706_v9 = vpop.f32.mrb[12].mxu1  ;;  %v1331_v10 = vpop.f32.mrb[13].mxu0 }
 0x18c   : > { %v1777_v16 = vmul.f32 %v1706_v9, %v1329_v7  ;;  %v1708_v17 = vpop.f32.mrb[13].mxu1 }
 0x18d   : > { %v1778_v18 = vmul.f32 %v1708_v17, %v1331_v10 }
 0x18e   : > { %v1802_v19 = vadd.f32 %v1801_v6, %v1777_v16  ;;  %v1335_v20 = vpop.f32.mrb[14].mxu0 }
 0x18f   : > { %v1823_v21 = vadd.f32 %v1822_v8, %v1778_v18  ;;  %v1712_v22 = vpop.f32.mrb[14].mxu1  ;;  %v1337_v23 = vpop.f32.mrb[15].mxu0 }
 0x190   : > { %v1779_v24 = vmul.f32 %v1712_v22, %v1335_v20  ;;  %v1714_v25 = vpop.f32.mrb[15].mxu1 }
 0x191   : > { %v1780_v26 = vmul.f32 %v1714_v25, %v1337_v23 }
 0x192   : > { %v1803_v27 = vadd.f32 %v1802_v19, %v1779_v24  ;;  %v1341_v28 = vpop.f32.mrb[16].mxu0 }
 0x193   : > { %v1824_v29 = vadd.f32 %v1823_v21, %v1780_v26  ;;  %v1718_v30 = vpop.f32.mrb[16].mxu1  ;;  %v1343_v31 = vpop.f32.mrb[17].mxu0 }
 0x194   : > { %v1781_v32 = vmul.f32 %v1718_v30, %v1341_v28  ;;  %v1720_v33 = vpop.f32.mrb[17].mxu1 }
 0x195   : > { %v1782_v34 = vmul.f32 %v1720_v33, %v1343_v31 }
 0x196   : > { %v1804_v37 = vadd.f32 %v1803_v27, %v1781_v32  ;;  %v1347_v35 = vpop.f32.mrb[18].mxu0 }
 0x197   : > { %v1825_v36 = vadd.f32 %v1824_v29, %v1782_v34  ;;  %v1724_v38 = vpop.f32.mrb[18].mxu1  ;;  %v1349_v12 = vpop.f32.mrb[19].mxu0 }
 0x198   : > { %v1783_v39 = vmul.f32 %v1724_v38, %v1347_v35  ;;  %v1726_v40 = vpop.f32.mrb[19].mxu1 }
 0x199   : > { %v1784_v41 = vmul.f32 %v1726_v40, %v1349_v12 }
 0x19a   : > { %v1805_v14 = vadd.f32 %v1804_v37, %v1783_v39  ;;  %v1353_v15 = vpop.f32.mrb[20].mxu0  ;;  %v2773_v37 = vmov 1966171168  }
 0x19b   : > { %v1826_v42 = vadd.f32 %v1825_v36, %v1784_v41  ;;  %v1730_v43 = vpop.f32.mrb[20].mxu1  ;;  %v1355_v44 = vpop.f32.mrb[21].mxu0  ;;  %v1843_v35 = vunpack.c.l.s4 %v2773_v37 }
 0x19c   : > { %v1785_v45 = vmul.f32 %v1730_v43, %v1353_v15  ;;  %v1732_v46 = vpop.f32.mrb[21].mxu1 }
 0x19d   : > { %v1786_v47 = vmul.f32 %v1732_v46, %v1355_v44  ;;  %v1844_v40 = vunpack.c.0.s8 %v1843_v35 }
 0x19e   : > { %v1806_v48 = vadd.f32 %v1805_v14, %v1785_v45  ;;  %v1359_v51 = vpop.f32.mrb[22].mxu0 }
 0x19f   : > { %v1827_v52 = vadd.f32 %v1826_v42, %v1786_v47  ;;  %v1736_v53 = vpop.f32.mrb[22].mxu1  ;;  %v1361_v11 = vpop.f32.mrb[23].mxu0  ;;  %v1847_v43 = vsub.s32 %v1844_v40, %v2857_v3 }
 0x1a0   : > { %v1787_v50 = vmul.f32 %v1736_v53, %v1359_v51  ;;  %v1738_v13 = vpop.f32.mrb[23].mxu1 }
 0x1a1   : > { %v1788_v49 = vmul.f32 %v1738_v13, %v1361_v11 }
 0x1a2   : > { %v1807_v54 = vadd.f32 %v1806_v48, %v1787_v50  ;;  %v1365_v55 = vpop.f32.mrb[24].mxu0 }
 0x1a3   : > { %v1828_v56 = vadd.f32 %v1827_v52, %v1788_v49  ;;  %v1742_v57 = vpop.f32.mrb[24].mxu1  ;;  %v1367_v58 = vpop.f32.mrb[25].mxu0 }
 0x1a4   : > { %v1789_v59 = vmul.f32 %v1742_v57, %v1365_v55  ;;  %v1744_v60 = vpop.f32.mrb[25].mxu1 }
 0x1a5   : > { %v1790_v61 = vmul.f32 %v1744_v60, %v1367_v58 }
 0x1a6   : > { %v1808_v62 = vadd.f32 %v1807_v54, %v1789_v59  ;;  %v1371_v63 = vpop.f32.mrb[26].mxu0 }
 0x1a7   : > { %v1829_v1 = vadd.f32 %v1828_v56, %v1790_v61  ;;  %v1748_v2 = vpop.f32.mrb[26].mxu1  ;;  %v1373_v4 = vpop.f32.mrb[27].mxu0 }
 0x1a8   : > { %v1791_v5 = vmul.f32 %v1748_v2, %v1371_v63  ;;  %v1750_v6 = vpop.f32.mrb[27].mxu1 }
 0x1a9   : > { %v1792_v7 = vmul.f32 %v1750_v6, %v1373_v4 }
 0x1aa   : > { %v1809_v8 = vadd.f32 %v1808_v62, %v1791_v5  ;;  %v1377_v9 = vpop.f32.mrb[28].mxu0 }
 0x1ab   : > { %v1830_v10 = vadd.f32 %v1829_v1, %v1792_v7  ;;  %v1754_v16 = vpop.f32.mrb[28].mxu1  ;;  %v1379_v17 = vpop.f32.mrb[29].mxu0 }
 0x1ac   : > { %v1793_v18 = vmul.f32 %v1754_v16, %v1377_v9  ;;  %v1756_v19 = vpop.f32.mrb[29].mxu1 }
 0x1ad   : > { %v1794_v20 = vmul.f32 %v1756_v19, %v1379_v17 }
 0x1ae   : > { %v1810_v21 = vadd.f32 %v1809_v8, %v1793_v18  ;;  %v1383_v22 = vpop.f32.mrb[30].mxu0 }
 0x1af   : > { %v1831_v23 = vadd.f32 %v1830_v10, %v1794_v20  ;;  %v1760_v24 = vpop.f32.mrb[30].mxu1  ;;  %v1385_v25 = vpop.f32.mrb[31].mxu0 }
 0x1b0   : > { %v1795_v26 = vmul.f32 %v1760_v24, %v1383_v22  ;;  %v1762_v27 = vpop.f32.mrb[31].mxu1 }
 0x1b1   : > { %v1796_v28 = vmul.f32 %v1762_v27, %v1385_v25 }
 0x1b2   : > { %v1811_v29 = vadd.f32 %v1810_v21, %v1795_v26 }
 0x1b3   : > { %v1832_v30 = vadd.f32 %v1831_v23, %v1796_v28 }
 0x1b4   : > { %v1812_v31 = vrot.slane %v1811_v29, 4 }
 0x1b5   : > { %v1833_v32 = vrot.slane %v1832_v30, 4 }
 0x1b6   : > { %v1813_v33 = vadd.f32 %v1812_v31, %v1811_v29 }
 0x1b7   : > { %v1834_v34 = vadd.f32 %v1833_v32, %v1832_v30 }
 0x1b8   : > { %v1814_v36 = vrot.slane %v1813_v33, 2 }
 0x1b9   : > { %v1835_v38 = vrot.slane %v1834_v34, 2 }
 0x1ba   : > { %v1815_v12 = vadd.f32 %v1814_v36, %v1813_v33 }
 0x1bb   : > { %v1836_v39 = vadd.f32 %v1835_v38, %v1834_v34 }
 0x1bc   : > { %v1816_v41 = vrot.slane %v1815_v12, 1 }
 0x1bd   : > { %v1837_v14 = vrot.slane %v1836_v39, 1 }
 0x1be   : > { %v1817_v15 = vadd.f32 %v1816_v41, %v1815_v12 }
 0x1bf   : > { %v1838_v42 = vadd.f32 %v1837_v14, %v1836_v39 }
 0x1c1   : > { %v1841_v44 = vcombine.low %v1817_v15, %v1838_v42 }
 0x1c3   : > { %v1848_v45 = vrot.slane %v1841_v44, %v1847_v43 }
 0x1c5   : > { %v1855_v46 = vrot.slane %v1848_v45, %v1847_v43 }
 0x1c7   : > { %1861 = vst.msk [vmem:[%s201_s20] sm:$0x3] %vm1859_vm8, %v1855_v46 }
 0x1c8   : > { %2719 = shalt.err (!%p2716_p3)
}
 0x1c9   : > { %s2720_s7 = scalar_lea.hbm %s3824_s28, 32  ;;  %s2724_s10 = scalar_lea.hbm %s3870_s4, 64 }
 0x1ca   : > { %p2721_p4 = scmp.ne.s32.totalorder %s3824_s28, %s2720_s7  ;;  %p2725_p9 = scmp.lt.u32.totalorder %s3824_s28, %s3870_s4 }
 0x1cb   : > { %p2726_p10 = scmp.lt.u32.totalorder %s2724_s10, %s2720_s7  ;;  %p2728_p12 = scmp.lt.u32.totalorder %s2720_s7, %s3824_s28 }
 0x1cc   : > { %p2722_p7 = pnand %p2721_p4, %p2838_p5 }
 0x1cd   : > { %p2727_p11 = por %p2726_p10, %p2725_p9 }
 0x1ce   : > { %p2723_p8 = pneg %p2722_p7 }
 0x1cf   : > { %p2729_p13 = por %p2728_p12, %p2727_p11 }
 0x1d1   : > { %p2730_p0 = pnand %p2729_p13, %p2723_p8 }
 0x1d3   : > { %2733 = shalt.err (!%p2730_p0)
}
 0x1d4   : > { %2663 = dma.vmem_to_hbm [thread:$0]  (%p2838_p5), %s3826_s22, 32, %s3824_s28, %s1863_s29  }
 0x1d5 PF: > { %p2669_p1 = scmp.ge.s32.totalorder %s2768_s18, 2  ;;  %s1889_s13 = sand.u32 1, %s2756_s15  }
 0x1d6   : > { %s1890_s14 = scalar_lea.sflag [#allocation3], %s1889_s13 }
 0x1d7   : > { %p2666_p2 = pnand %p2669_p1, %p2842_p6 }
 0x1d9   : > { %2751 = dma.done.wait (!%p2666_p2), %s1890_s14, 32  }
 0x1da   : > { %2753 = vsyncadd (!%p2666_p2), %s1890_s14, 4294967264  ;;  %p14_p3 = scmp.ge.s32.totalorder %s2825_s21, 4   ;;  %s3899_s15 = smov %s2760_s16 }
 0x1db   : > { %s3900_s16 = smov %s2764_s17  ;;  %s3901_s17 = smov %s2836_s24 }
 0x1dc   : > { %s3902_s18 = smov %s2825_s21  ;;  %16 = sbr.rel (!%p14_p3) target bundleno = 3 (0x3), region = 74 }
 0x1e3   :  { %1895 = vsyncpa [#allocation3], 1 }
 0x1e4   :  { %1897 = vsyncpa [#allocation3 + $0x1], 1 }

// kernel: tpu_custom_call.1
= control target key start
LH: loop header
LB: loop body
LE: loop exit
PB: predicated region body
PF: predicated region fallthrough
CT: control target
= control target key end

     0   :  { %9 = vsyncpa [#allocation3], 0  ;;  %s3866_s0 = inlined_call_operand.vmem [shape: s32[2,1,256], index: 0, kind: input, shape index: {}]   ;;  %s3867_s1 = inlined_call_operand.vmem [shape: s32[2,1,256], index: 1, kind: input, shape index: {}]   ;;  %s3868_s2 = inlined_call_operand.vmem [shape: f32[128,300], index: 2, kind: input, shape index: {}]   ;;  %s3869_s3 = inlined_call_operand.vmem [shape: f32[128,500], index: 3, kind: input, shape index: {}]   ;;  %s3870_s4 = inlined_call_operand.hbm [shape: f32[2,1,256], index: 4, kind: output, shape index: {}]  }
   0x1   :  { %11 = vsyncpa [#allocation3 + $0x1], 0  ;;  %s2800_s15 = smov 0   ;;  %s2802_s16 = smov 0  }
   0x2   :  { %s2804_s17 = smov 0   ;;  %s2806_s18 = smov 0  }
   0x3 LB: > { %s2821_s19 = sadd.s32 4294967295, %s2768_s18   ;;  %s1948_s20 = sadd.s32 4294967294, %s2768_s18   ;;  %s2768_s18 = sphi %s2806_s18, %s3902_s18   ;;  %s2764_s17 = sphi %s2804_s17, %s3901_s17   ;;  %s2760_s16 = sphi %s2802_s16, %s3900_s16   ;;  %s2756_s15 = sphi %s2800_s15, %s3899_s15  }
   0x4   : > { %s2825_s21 = sadd.s32 1, %s2768_s18   ;;  %s118_s22 = sadd.s32 1, %s2764_s17 }
   0x5   : > { %s115_s23 = ssub.s32 %s2768_s18, %s2825_s21  ;;  %p128_p0 = scmp.ne.s32.totalorder %s2764_s17, %s2760_s16 }
   0x6   : > { %p116_p1 = scmp.eq.s32.totalorder %s115_s23, 0  ;;  %p129_p2 = scmp.eq.s32.totalorder %s2821_s19, 1 }
   0x7   : > { %p134_p3 = scmp.ne.s32.totalorder %s2760_s16, %s2756_s15  ;;  %p135_p4 = scmp.eq.s32.totalorder %s1948_s20, 1 }
   0x8   : > { %s2836_s24 = scalar_select %p116_p1, %s2764_s17, %s118_s22  }
   0x9   : > { %p2838_p5 = por %p129_p2, %p128_p0  ;;  %p2842_p6 = por %p135_p4, %p134_p3 }
   0xa   : > { %p1951_p7 = scmp.ge.s32.totalorder %s2768_s18, 1  ;;  %p173_p8 = scmp.lt.s32.totalorder %s2768_s18, 3 }
   0xc   : > { %p174_p9 = pnand %p1951_p7, %p173_p8 }
   0xd   : > { %p202_p10 = scmp.lt.s32.totalorder (!%p174_p9), %s2821_s19, 1  ;;  %v324_v0 = vlaneseq (!%p174_p9)  ;;  %v213_v1 = vld [vmem:[%s3868_s2 + $0x8] sm:$0xff] (!%p174_p9)  ;;  %v2770_v15 = vmov (!%p174_p9), 1.0|1.0   ;;  %v212_v48 = vld [vmem:[%s3868_s2] sm:$0xff] (!%p174_p9)  ;;  %v215_v54 = vld [vmem:[%s3868_s2 + $0x18] sm:$0xff] (!%p174_p9) }
   0xe   : > { %177 = sbr.rel (%p174_p9) target bundleno = 469 (0x1d5), region = 36  ;;  %v261_v2 = vld [vmem:[%s3869_s3 + $0x8] sm:$0xff] (!%p174_p9)  ;;  %1130 = vmatprep.mubr.f32.mxu0 (!%p174_p9), %v213_v1  ;;  %v260_v51 = vld [vmem:[%s3869_s3] sm:$0xff] (!%p174_p9)  ;;  %v219_v58 = vld [vmem:[%s3868_s2 + $0x38] sm:$0xff] (!%p174_p9)  ;;  %s2396_s14 = sshll.u32 (!%p174_p9), %s2821_s19, 5 }
   0xf   : > { %1507 = vmatprep.mubr.f32.mxu1 (!%p174_p9), %v261_v2  ;;  %v2857_v3 = vshrl.u32 (!%p174_p9), %v324_v0, 7  ;;  %v216_v52 = vld [vmem:[%s3868_s2 + $0x20] sm:$0xff] (!%p174_p9)  ;;  %v265_v53 = vld [vmem:[%s3869_s3 + $0x28] sm:$0xff] (!%p174_p9)  ;;  %v218_v62 = vld [vmem:[%s3868_s2 + $0x30] sm:$0xff] (!%p174_p9)  ;;  %s3824_s28 = scalar_lea.hbm (!%p174_p9), %s3870_s4, %s2396_s14 }
  0x10   : > { %v264_v57 = vld [vmem:[%s3869_s3 + $0x20] sm:$0xff] (!%p174_p9)  ;;  %v269_v59 = vld [vmem:[%s3869_s3 + $0x48] sm:$0xff] (!%p174_p9)  ;;  %v222_v1 = vld [vmem:[%s3868_s2 + $0x50] sm:$0xff] (!%p174_p9) }
  0x11   : > { %v369_v4 = vsub.s32 (!%p174_p9), 1, %v2857_v3  ;;  %v365_v5 = vsub.s32 (!%p174_p9), 0, %v2857_v3  ;;  %v326_v6 = vadd.s32 (!%p174_p9), 8, %v2857_v3  ;;  %v327_v9 = vadd.s32 (!%p174_p9), 16, %v2857_v3  ;;  %v268_v63 = vld [vmem:[%s3869_s3 + $0x40] sm:$0xff] (!%p174_p9)  ;;  %v273_v2 = vld [vmem:[%s3869_s3 + $0x68] sm:$0xff] (!%p174_p9) }
  0x12   : > { %v328_v10 = vadd.s32 (!%p174_p9), 24, %v2857_v3  ;;  %v329_v16 = vadd.s32 (!%p174_p9), 32, %v2857_v3  ;;  %v330_v17 = vadd.s32 (!%p174_p9), 40, %v2857_v3  ;;  %v331_v18 = vadd.s32 (!%p174_p9), 48, %v2857_v3 }
  0x13   : > { %v332_v19 = vadd.s32 (!%p174_p9), 56, %v2857_v3  ;;  %v333_v20 = vadd.s32 (!%p174_p9), 64, %v2857_v3  ;;  %v334_v21 = vadd.s32 (!%p174_p9), 72, %v2857_v3  ;;  %v335_v22 = vadd.s32 (!%p174_p9), 80, %v2857_v3 }
  0x14   : > { %v336_v23 = vadd.s32 (!%p174_p9), 88, %v2857_v3  ;;  %v337_v24 = vadd.s32 (!%p174_p9), 96, %v2857_v3  ;;  %v338_v25 = vadd.s32 (!%p174_p9), 104, %v2857_v3  ;;  %v339_v26 = vadd.s32 (!%p174_p9), 112, %v2857_v3 }
  0x15   : > { %s203_s5 = scalar_select %p202_p10, %s2821_s19, 1  ;;  %v340_v27 = vadd.s32 120, %v2857_v3  ;;  %v341_v28 = vadd.s32 128, %v2857_v3  ;;  %v342_v29 = vadd.s32 136, %v2857_v3  ;;  %v343_v30 = vadd.s32 144, %v2857_v3 }
  0x16   : > { %v344_v31 = vadd.s32 152, %v2857_v3  ;;  %v345_v32 = vadd.s32 160, %v2857_v3  ;;  %v346_v33 = vadd.s32 168, %v2857_v3  ;;  %v347_v34 = vadd.s32 176, %v2857_v3  ;;  %s2774_s19 = smov [#allocation2]  }
  0x17   : > { %s1953_s6 = sshll.u32 %s203_s5, 1  ;;  %v348_v35 = vadd.s32 184, %v2857_v3  ;;  %v349_v36 = vadd.s32 192, %v2857_v3  ;;  %v350_v37 = vadd.s32 200, %v2857_v3  ;;  %v351_v38 = vadd.s32 208, %v2857_v3  ;;  %s2710_s5 = sshll.u32 %s2774_s19, 4  ;;  %s2711_s5 = int_to_ptr.vmem [resolvable:$false] %s2710_s5 }
  0x18   : > { %s205_s9 = scalar_lea.vmem %s3866_s0, %s1953_s6  ;;  %s209_s12 = scalar_lea.vmem %s3867_s1, %s1953_s6  ;;  %v352_v39 = vadd.s32 216, %v2857_v3  ;;  %v353_v40 = vadd.s32 224, %v2857_v3  ;;  %v354_v41 = vadd.s32 232, %v2857_v3  ;;  %v355_v42 = vadd.s32 240, %v2857_v3 }
  0x19   : > { %v210_v7 = vld [vmem:[%s205_s9] sm:$0x3]  ;;  %v356_v43 = vadd.s32 248, %v2857_v3  ;;  %v357_v44 = vadd.s32 256, %v2857_v3  ;;  %v358_v45 = vadd.s32 264, %v2857_v3  ;;  %v3104_v46 = vadd.s32 272, %v2857_v3 }
  0x1a   : > { %v211_v8 = vld [vmem:[%s209_s12] sm:$0x3]  ;;  %v2870_v11 = vrot.slane %v210_v7, %v369_v4  ;;  %v2874_v13 = vrot.slane %v210_v7, %v365_v5  ;;  %v3107_v47 = vadd.s32 280, %v2857_v3  ;;  %v3119_v49 = vadd.s32 288, %v2857_v3  ;;  %s199_s12 = sand.u32 1, %s2760_s16   ;;  %s2712_s6 = scalar_lea.vmem %s2711_s5, 64 }
  0x1b   : > { %v2872_v12 = vrot.slane %v211_v8, %v369_v4  ;;  %v2876_v14 = vrot.slane %v211_v8, %v365_v5  ;;  %v3122_v50 = vadd.s32 296, %v2857_v3  ;;  %v599_v55 = vadd.s32 304, %v2857_v3  ;;  %v272_v7 = vld [vmem:[%s3869_s3 + $0x60] sm:$0xff]  ;;  %s1952_s13 = sshll.u32 %s199_s12, 1  ;;  %s1863_s29 = scalar_lea.sflag [#allocation3], %s199_s12 }
  0x1c   : > { %vm372_vm0 = vcmp.eq.s32.totalorder %v2857_v3, %v2870_v11  ;;  %vm374_vm1 = vcmp.eq.s32.totalorder %v326_v6, %v2870_v11  ;;  %vm371_vm5 = vcmp.eq.s32.totalorder %v2857_v3, %v2874_v13  ;;  %vm373_vm6 = vcmp.eq.s32.totalorder %v326_v6, %v2874_v13  ;;  %s201_s20 = scalar_lea.vmem [#allocation2], %s1952_s13 }
  0x1d   : > { %vm633_vm2 = vcmp.eq.s32.totalorder %v2857_v3, %v2872_v12  ;;  %vm635_vm3 = vcmp.eq.s32.totalorder %v326_v6, %v2872_v12  ;;  %vm2397_vm4 = vmpackc.low %vm374_vm1, %vm372_vm0  ;;  %vm632_vm7 = vcmp.eq.s32.totalorder %v2857_v3, %v2876_v14  ;;  %vm634_vm8 = vcmp.eq.s32.totalorder %v326_v6, %v2876_v14  ;;  %v221_v6 = vld [vmem:[%s3868_s2 + $0x48] sm:$0xff]  ;;  %s1877_s22 = sshll.u32 %s201_s20, 4  ;;  %s3826_s22 = int_to_ptr.vmem [resolvable:$true] %s1877_s22 }
  0x1e   : > { %2398 = vmatprep.subr.msk.bf16.mxu0 %vm2397_vm4, %v2770_v15  ;;  %vm2475_vm9 = vmpackc.low %vm635_vm3, %vm633_vm2  ;;  %vm376_vm10 = vcmp.eq.s32.totalorder %v327_v9, %v2870_v11  ;;  %vm378_vm11 = vcmp.eq.s32.totalorder %v328_v10, %v2870_v11  ;;  %vm637_vm13 = vcmp.eq.s32.totalorder %v327_v9, %v2872_v12  ;;  %vm639_vm14 = vcmp.eq.s32.totalorder %v328_v10, %v2872_v12  ;;  %s2706_s30 = scalar_lea.vmem %s3826_s22, 32  ;;  %p2713_p0 = scmp.lt.s32.totalorder %s3826_s22, %s2711_s5 }
  0x1f   : > { %2476 = vmatprep.subr.msk.bf16.mxu1 %vm2475_vm9, %v2770_v15  ;;  %vm2399_vm12 = vmpackc.low %vm373_vm6, %vm371_vm5  ;;  %vm375_vm0 = vcmp.eq.s32.totalorder %v327_v9, %v2874_v13  ;;  %vm377_vm1 = vcmp.eq.s32.totalorder %v328_v10, %v2874_v13  ;;  %vm636_vm3 = vcmp.eq.s32.totalorder %v327_v9, %v2876_v14  ;;  %vm638_vm4 = vcmp.eq.s32.totalorder %v328_v10, %v2876_v14  ;;  %v225_v9 = vld [vmem:[%s3868_s2 + $0x68] sm:$0xff]  ;;  %p2707_p11 = scmp.ne.s32.totalorder %s3826_s22, %s2706_s30  ;;  %p2714_p1 = scmp.lt.s32.totalorder %s2712_s6, %s2706_s30 }
  0x20   : > { %2400 = vmatpush1.bf16.msk.msra.mxu0 %vm2399_vm12, %v2770_v15  ;;  %vm2477_vm15 = vmpackc.low %vm634_vm8, %vm632_vm7  ;;  %vm380_vm6 = vcmp.eq.s32.totalorder %v329_v16, %v2870_v11  ;;  %vm382_vm9 = vcmp.eq.s32.totalorder %v330_v17, %v2870_v11  ;;  %vm641_vm8 = vcmp.eq.s32.totalorder %v329_v16, %v2872_v12  ;;  %vm379_vm12 = vcmp.eq.s32.totalorder %v329_v16, %v2874_v13  ;;  %v277_v10 = vld [vmem:[%s3869_s3 + $0x88] sm:$0xff] }
  0x21   : > { %2478 = vmatpush1.bf16.msk.msra.mxu1 %vm2477_vm15, %v2770_v15  ;;  %vm2401_vm2 = vmpackc.low %vm378_vm11, %vm376_vm10  ;;  %vm643_vm10 = vcmp.eq.s32.totalorder %v330_v17, %v2872_v12  ;;  %vm640_vm15 = vcmp.eq.s32.totalorder %v329_v16, %v2876_v14  ;;  %v600_v56 = vadd.s32 312, %v2857_v3  ;;  %v601_v60 = vadd.s32 320, %v2857_v3  ;;  %v305_v16 = vld [vmem:[%s3869_s3 + $0x168] sm:$0xff]  ;;  %p2708_p12 = pnand %p2707_p11, %p2838_p5  ;;  %p2715_p2 = por %p2714_p1, %p2713_p0 }
  0x22   : > { %2402 = vmatprep.subr.msk.bf16.mxu0 %vm2401_vm2, %v2770_v15  ;;  %vm2479_vm5 = vmpackc.low %vm639_vm14, %vm637_vm13  ;;  %vm381_vm13 = vcmp.eq.s32.totalorder %v330_v17, %v2874_v13  ;;  %vm642_vm2 = vcmp.eq.s32.totalorder %v330_v17, %v2876_v14  ;;  %v602_v61 = vadd.s32 328, %v2857_v3  ;;  %v603_v4 = vadd.s32 336, %v2857_v3  ;;  %v245_v17 = vld [vmem:[%s3868_s2 + $0x108] sm:$0xff] }
  0x23   : > { %2480 = vmatprep.subr.msk.bf16.mxu1 %vm2479_vm5, %v2770_v15  ;;  %vm2403_vm7 = vmpackc.low %vm377_vm1, %vm375_vm0  ;;  %vm384_vm1 = vcmp.eq.s32.totalorder %v331_v18, %v2870_v11  ;;  %vm386_vm5 = vcmp.eq.s32.totalorder %v332_v19, %v2870_v11  ;;  %v604_v5 = vadd.s32 344, %v2857_v3  ;;  %v618_v8 = vadd.s32 456, %v2857_v3  ;;  %p2709_p13 = pneg %p2708_p12 }
  0x24   : > { %2404 = vmatpush1.bf16.msk.msra.mxu0 %vm2403_vm7, %v2770_v15  ;;  %vm2481_vm11 = vmpackc.low %vm638_vm4, %vm636_vm3  ;;  %vm645_vm4 = vcmp.eq.s32.totalorder %v331_v18, %v2872_v12  ;;  %vm383_vm7 = vcmp.eq.s32.totalorder %v331_v18, %v2874_v13 }
  0x25   : > { %2482 = vmatpush1.bf16.msk.msra.mxu1 %vm2481_vm11, %v2770_v15  ;;  %vm2405_vm14 = vmpackc.low %vm382_vm9, %vm380_vm6  ;;  %vm647_vm6 = vcmp.eq.s32.totalorder %v332_v19, %v2872_v12  ;;  %vm644_vm11 = vcmp.eq.s32.totalorder %v331_v18, %v2876_v14  ;;  %v224_v18 = vld [vmem:[%s3868_s2 + $0x60] sm:$0xff]  ;;  %p2716_p3 = pnand %p2715_p2, %p2709_p13 }
  0x26   : > { %2406 = vmatprep.subr.msk.bf16.mxu0 %vm2405_vm14, %v2770_v15  ;;  %vm2483_vm0 = vmpackc.low %vm643_vm10, %vm641_vm8  ;;  %vm385_vm8 = vcmp.eq.s32.totalorder %v332_v19, %v2874_v13  ;;  %vm646_vm14 = vcmp.eq.s32.totalorder %v332_v19, %v2876_v14  ;;  %v605_v19 = vadd.s32 352, %v2857_v3 }
  0x27   : > { %2484 = vmatprep.subr.msk.bf16.mxu1 %vm2483_vm0, %v2770_v15  ;;  %vm2407_vm3 = vmpackc.low %vm381_vm13, %vm379_vm12  ;;  %vm388_vm13 = vcmp.eq.s32.totalorder %v333_v20, %v2870_v11  ;;  %vm390_vm0 = vcmp.eq.s32.totalorder %v334_v21, %v2870_v11 }
  0x28   : > { %2408 = vmatpush1.bf16.msk.msra.mxu0 %vm2407_vm3, %v2770_v15  ;;  %vm2485_vm9 = vmpackc.low %vm642_vm2, %vm640_vm15  ;;  %vm649_vm2 = vcmp.eq.s32.totalorder %v333_v20, %v2872_v12  ;;  %vm387_vm3 = vcmp.eq.s32.totalorder %v333_v20, %v2874_v13 }
  0x29   : > { %2486 = vmatpush1.bf16.msk.msra.mxu1 %vm2485_vm9, %v2770_v15  ;;  %vm2409_vm10 = vmpackc.low %vm386_vm5, %vm384_vm1  ;;  %vm651_vm1 = vcmp.eq.s32.totalorder %v334_v21, %v2872_v12  ;;  %vm648_vm9 = vcmp.eq.s32.totalorder %v333_v20, %v2876_v14  ;;  %v606_v20 = vadd.s32 360, %v2857_v3 }
  0x2a   : > { %2410 = vmatprep.subr.msk.bf16.mxu0 %vm2409_vm10, %v2770_v15  ;;  %vm2487_vm12 = vmpackc.low %vm647_vm6, %vm645_vm4  ;;  %vm389_vm4 = vcmp.eq.s32.totalorder %v334_v21, %v2874_v13  ;;  %vm650_vm10 = vcmp.eq.s32.totalorder %v334_v21, %v2876_v14  ;;  %v276_v21 = vld [vmem:[%s3869_s3 + $0x80] sm:$0xff] }
  0x2b   : > { %2488 = vmatprep.subr.msk.bf16.mxu1 %vm2487_vm12, %v2770_v15  ;;  %vm2411_vm15 = vmpackc.low %vm385_vm8, %vm383_vm7  ;;  %vm392_vm8 = vcmp.eq.s32.totalorder %v335_v22, %v2870_v11  ;;  %vm394_vm12 = vcmp.eq.s32.totalorder %v336_v23, %v2870_v11 }
  0x2c   : > { %2412 = vmatpush1.bf16.msk.msra.mxu0 %vm2411_vm15, %v2770_v15  ;;  %vm2489_vm5 = vmpackc.low %vm646_vm14, %vm644_vm11  ;;  %vm653_vm14 = vcmp.eq.s32.totalorder %v335_v22, %v2872_v12  ;;  %vm391_vm15 = vcmp.eq.s32.totalorder %v335_v22, %v2874_v13 }
  0x2d   : > { %2490 = vmatpush1.bf16.msk.msra.mxu1 %vm2489_vm5, %v2770_v15  ;;  %vm2413_vm6 = vmpackc.low %vm390_vm0, %vm388_vm13  ;;  %vm655_vm13 = vcmp.eq.s32.totalorder %v336_v23, %v2872_v12  ;;  %vm652_vm5 = vcmp.eq.s32.totalorder %v335_v22, %v2876_v14  ;;  %v309_v22 = vld [vmem:[%s3869_s3 + $0x188] sm:$0xff] }
  0x2e   : > { %2414 = vmatprep.subr.msk.bf16.mxu0 %vm2413_vm6, %v2770_v15  ;;  %vm2491_vm7 = vmpackc.low %vm651_vm1, %vm649_vm2  ;;  %vm393_vm2 = vcmp.eq.s32.totalorder %v336_v23, %v2874_v13  ;;  %vm654_vm6 = vcmp.eq.s32.totalorder %v336_v23, %v2876_v14  ;;  %v228_v23 = vld [vmem:[%s3868_s2 + $0x80] sm:$0xff] }
  0x2f   : > { %2492 = vmatprep.subr.msk.bf16.mxu1 %vm2491_vm7, %v2770_v15  ;;  %vm2415_vm11 = vmpackc.low %vm389_vm4, %vm387_vm3  ;;  %vm396_vm4 = vcmp.eq.s32.totalorder %v337_v24, %v2870_v11  ;;  %vm398_vm7 = vcmp.eq.s32.totalorder %v338_v25, %v2870_v11 }
  0x30   : > { %2416 = vmatpush1.bf16.msk.msra.mxu0 %vm2415_vm11, %v2770_v15  ;;  %vm2493_vm0 = vmpackc.low %vm650_vm10, %vm648_vm9  ;;  %vm657_vm10 = vcmp.eq.s32.totalorder %v337_v24, %v2872_v12  ;;  %vm395_vm11 = vcmp.eq.s32.totalorder %v337_v24, %v2874_v13 }
  0x31   : > { %2494 = vmatpush1.bf16.msk.msra.mxu1 %vm2493_vm0, %v2770_v15  ;;  %vm2417_vm1 = vmpackc.low %vm394_vm12, %vm392_vm8  ;;  %vm659_vm8 = vcmp.eq.s32.totalorder %v338_v25, %v2872_v12  ;;  %vm656_vm0 = vcmp.eq.s32.totalorder %v337_v24, %v2876_v14  ;;  %v281_v24 = vld [vmem:[%s3869_s3 + $0xa8] sm:$0xff] }
  0x32   : > { %2418 = vmatprep.subr.msk.bf16.mxu0 %vm2417_vm1, %v2770_v15  ;;  %vm2495_vm3 = vmpackc.low %vm655_vm13, %vm653_vm14  ;;  %vm397_vm14 = vcmp.eq.s32.totalorder %v338_v25, %v2874_v13  ;;  %vm658_vm1 = vcmp.eq.s32.totalorder %v338_v25, %v2876_v14  ;;  %v622_v25 = vadd.s32 488, %v2857_v3 }
  0x33   : > { %2496 = vmatprep.subr.msk.bf16.mxu1 %vm2495_vm3, %v2770_v15  ;;  %vm2419_vm9 = vmpackc.low %vm393_vm2, %vm391_vm15  ;;  %vm400_vm2 = vcmp.eq.s32.totalorder %v339_v26, %v2870_v11  ;;  %vm402_vm3 = vcmp.eq.s32.totalorder %v340_v27, %v2870_v11 }
  0x34   : > { %2420 = vmatpush1.bf16.msk.msra.mxu0 %vm2419_vm9, %v2770_v15  ;;  %vm2497_vm12 = vmpackc.low %vm654_vm6, %vm652_vm5  ;;  %vm661_vm6 = vcmp.eq.s32.totalorder %v339_v26, %v2872_v12  ;;  %vm399_vm9 = vcmp.eq.s32.totalorder %v339_v26, %v2874_v13 }
  0x35   : > { %2498 = vmatpush1.bf16.msk.msra.mxu1 %vm2497_vm12, %v2770_v15  ;;  %vm2421_vm13 = vmpackc.low %vm398_vm7, %vm396_vm4  ;;  %vm663_vm4 = vcmp.eq.s32.totalorder %v340_v27, %v2872_v12  ;;  %vm660_vm12 = vcmp.eq.s32.totalorder %v339_v26, %v2876_v14  ;;  %v308_v26 = vld [vmem:[%s3869_s3 + $0x180] sm:$0xff] }
  0x36   : > { %2422 = vmatprep.subr.msk.bf16.mxu0 %vm2421_vm13, %v2770_v15  ;;  %vm2499_vm15 = vmpackc.low %vm659_vm8, %vm657_vm10  ;;  %vm401_vm10 = vcmp.eq.s32.totalorder %v340_v27, %v2874_v13  ;;  %vm662_vm13 = vcmp.eq.s32.totalorder %v340_v27, %v2876_v14  ;;  %v607_v27 = vadd.s32 368, %v2857_v3 }
  0x37   : > { %2500 = vmatprep.subr.msk.bf16.mxu1 %vm2499_vm15, %v2770_v15  ;;  %vm2423_vm5 = vmpackc.low %vm397_vm14, %vm395_vm11  ;;  %vm404_vm14 = vcmp.eq.s32.totalorder %v341_v28, %v2870_v11  ;;  %vm406_vm15 = vcmp.eq.s32.totalorder %v342_v29, %v2870_v11 }
  0x38   : > { %2424 = vmatpush1.bf16.msk.msra.mxu0 %vm2423_vm5, %v2770_v15  ;;  %vm2501_vm7 = vmpackc.low %vm658_vm1, %vm656_vm0  ;;  %vm665_vm1 = vcmp.eq.s32.totalorder %v341_v28, %v2872_v12  ;;  %vm403_vm5 = vcmp.eq.s32.totalorder %v341_v28, %v2874_v13 }
  0x39   : > { %2502 = vmatpush1.bf16.msk.msra.mxu1 %vm2501_vm7, %v2770_v15  ;;  %vm2425_vm8 = vmpackc.low %vm402_vm3, %vm400_vm2  ;;  %vm667_vm2 = vcmp.eq.s32.totalorder %v342_v29, %v2872_v12  ;;  %vm664_vm7 = vcmp.eq.s32.totalorder %v341_v28, %v2876_v14  ;;  %v608_v28 = vadd.s32 376, %v2857_v3 }
  0x3a   : > { %2426 = vmatprep.subr.msk.bf16.mxu0 %vm2425_vm8, %v2770_v15  ;;  %vm2503_vm11 = vmpackc.low %vm663_vm4, %vm661_vm6  ;;  %vm405_vm6 = vcmp.eq.s32.totalorder %v342_v29, %v2874_v13  ;;  %vm666_vm8 = vcmp.eq.s32.totalorder %v342_v29, %v2876_v14  ;;  %v227_v29 = vld [vmem:[%s3868_s2 + $0x78] sm:$0xff] }
  0x3b   : > { %2504 = vmatprep.subr.msk.bf16.mxu1 %vm2503_vm11, %v2770_v15  ;;  %vm2427_vm0 = vmpackc.low %vm401_vm10, %vm399_vm9  ;;  %vm408_vm10 = vcmp.eq.s32.totalorder %v343_v30, %v2870_v11  ;;  %vm410_vm11 = vcmp.eq.s32.totalorder %v344_v31, %v2870_v11 }
  0x3c   : > { %2428 = vmatpush1.bf16.msk.msra.mxu0 %vm2427_vm0, %v2770_v15  ;;  %vm2505_vm3 = vmpackc.low %vm662_vm13, %vm660_vm12  ;;  %vm669_vm13 = vcmp.eq.s32.totalorder %v343_v30, %v2872_v12  ;;  %vm407_vm0 = vcmp.eq.s32.totalorder %v343_v30, %v2874_v13 }
  0x3d   : > { %2506 = vmatpush1.bf16.msk.msra.mxu1 %vm2505_vm3, %v2770_v15  ;;  %vm2429_vm4 = vmpackc.low %vm406_vm15, %vm404_vm14  ;;  %vm671_vm14 = vcmp.eq.s32.totalorder %v344_v31, %v2872_v12  ;;  %vm668_vm3 = vcmp.eq.s32.totalorder %v343_v30, %v2876_v14  ;;  %v280_v30 = vld [vmem:[%s3869_s3 + $0xa0] sm:$0xff] }
  0x3e   : > { %2430 = vmatprep.subr.msk.bf16.mxu0 %vm2429_vm4, %v2770_v15  ;;  %vm2507_vm9 = vmpackc.low %vm667_vm2, %vm665_vm1  ;;  %vm409_vm1 = vcmp.eq.s32.totalorder %v344_v31, %v2874_v13  ;;  %vm670_vm4 = vcmp.eq.s32.totalorder %v344_v31, %v2876_v14  ;;  %v231_v31 = vld [vmem:[%s3868_s2 + $0x98] sm:$0xff] }
  0x3f   : > { %2508 = vmatprep.subr.msk.bf16.mxu1 %vm2507_vm9, %v2770_v15  ;;  %vm2431_vm12 = vmpackc.low %vm405_vm6, %vm403_vm5  ;;  %vm412_vm6 = vcmp.eq.s32.totalorder %v345_v32, %v2870_v11  ;;  %vm414_vm9 = vcmp.eq.s32.totalorder %v346_v33, %v2870_v11 }
  0x40   : > { %2432 = vmatpush1.bf16.msk.msra.mxu0 %vm2431_vm12, %v2770_v15  ;;  %vm2509_vm15 = vmpackc.low %vm666_vm8, %vm664_vm7  ;;  %vm673_vm8 = vcmp.eq.s32.totalorder %v345_v32, %v2872_v12  ;;  %vm411_vm12 = vcmp.eq.s32.totalorder %v345_v32, %v2874_v13 }
  0x41   : > { %2510 = vmatpush1.bf16.msk.msra.mxu1 %vm2509_vm15, %v2770_v15  ;;  %vm2433_vm2 = vmpackc.low %vm410_vm11, %vm408_vm10  ;;  %vm675_vm10 = vcmp.eq.s32.totalorder %v346_v33, %v2872_v12  ;;  %vm672_vm15 = vcmp.eq.s32.totalorder %v345_v32, %v2876_v14  ;;  %v255_v32 = vld [vmem:[%s3868_s2 + $0x158] sm:$0xff] }
  0x42   : > { %2434 = vmatprep.subr.msk.bf16.mxu0 %vm2433_vm2, %v2770_v15  ;;  %vm2511_vm5 = vmpackc.low %vm671_vm14, %vm669_vm13  ;;  %vm413_vm13 = vcmp.eq.s32.totalorder %v346_v33, %v2874_v13  ;;  %vm674_vm2 = vcmp.eq.s32.totalorder %v346_v33, %v2876_v14  ;;  %v285_v33 = vld [vmem:[%s3869_s3 + $0xc8] sm:$0xff] }
  0x43   : > { %2512 = vmatprep.subr.msk.bf16.mxu1 %vm2511_vm5, %v2770_v15  ;;  %vm2435_vm7 = vmpackc.low %vm409_vm1, %vm407_vm0  ;;  %vm416_vm1 = vcmp.eq.s32.totalorder %v347_v34, %v2870_v11  ;;  %vm418_vm5 = vcmp.eq.s32.totalorder %v348_v35, %v2870_v11 }
  0x44   : > { %2436 = vmatpush1.bf16.msk.msra.mxu0 %vm2435_vm7, %v2770_v15  ;;  %vm2513_vm11 = vmpackc.low %vm670_vm4, %vm668_vm3  ;;  %vm677_vm4 = vcmp.eq.s32.totalorder %v347_v34, %v2872_v12  ;;  %vm415_vm7 = vcmp.eq.s32.totalorder %v347_v34, %v2874_v13 }
  0x45   : > { %2514 = vmatpush1.bf16.msk.msra.mxu1 %vm2513_vm11, %v2770_v15  ;;  %vm2437_vm14 = vmpackc.low %vm414_vm9, %vm412_vm6  ;;  %vm679_vm6 = vcmp.eq.s32.totalorder %v348_v35, %v2872_v12  ;;  %vm676_vm11 = vcmp.eq.s32.totalorder %v347_v34, %v2876_v14  ;;  %v3357_v34 = vadd.s32 384, %v2857_v3 }
  0x46   : > { %2438 = vmatprep.subr.msk.bf16.mxu0 %vm2437_vm14, %v2770_v15  ;;  %vm2515_vm0 = vmpackc.low %vm675_vm10, %vm673_vm8  ;;  %vm417_vm8 = vcmp.eq.s32.totalorder %v348_v35, %v2874_v13  ;;  %vm678_vm14 = vcmp.eq.s32.totalorder %v348_v35, %v2876_v14  ;;  %v316_v35 = vld [vmem:[%s3869_s3 + $0x1c0] sm:$0xff] }
  0x47   : > { %2516 = vmatprep.subr.msk.bf16.mxu1 %vm2515_vm0, %v2770_v15  ;;  %vm2439_vm3 = vmpackc.low %vm413_vm13, %vm411_vm12  ;;  %vm420_vm13 = vcmp.eq.s32.totalorder %v349_v36, %v2870_v11  ;;  %vm422_vm0 = vcmp.eq.s32.totalorder %v350_v37, %v2870_v11 }
  0x48   : > { %2440 = vmatpush1.bf16.msk.msra.mxu0 %vm2439_vm3, %v2770_v15  ;;  %vm2517_vm9 = vmpackc.low %vm674_vm2, %vm672_vm15  ;;  %vm681_vm2 = vcmp.eq.s32.totalorder %v349_v36, %v2872_v12  ;;  %vm419_vm3 = vcmp.eq.s32.totalorder %v349_v36, %v2874_v13 }
  0x49   : > { %2518 = vmatpush1.bf16.msk.msra.mxu1 %vm2517_vm9, %v2770_v15  ;;  %vm2441_vm10 = vmpackc.low %vm418_vm5, %vm416_vm1  ;;  %vm683_vm1 = vcmp.eq.s32.totalorder %v350_v37, %v2872_v12  ;;  %vm680_vm9 = vcmp.eq.s32.totalorder %v349_v36, %v2876_v14  ;;  %v610_v36 = vadd.s32 392, %v2857_v3 }
  0x4a   : > { %2442 = vmatprep.subr.msk.bf16.mxu0 %vm2441_vm10, %v2770_v15  ;;  %vm2519_vm12 = vmpackc.low %vm679_vm6, %vm677_vm4  ;;  %vm421_vm4 = vcmp.eq.s32.totalorder %v350_v37, %v2874_v13  ;;  %vm682_vm10 = vcmp.eq.s32.totalorder %v350_v37, %v2876_v14  ;;  %v2771_v37 = vmov 0.0  }
  0x4b   : > { %2520 = vmatprep.subr.msk.bf16.mxu1 %vm2519_vm12, %v2770_v15  ;;  %vm2443_vm15 = vmpackc.low %vm417_vm8, %vm415_vm7  ;;  %vm424_vm8 = vcmp.eq.s32.totalorder %v351_v38, %v2870_v11  ;;  %vm426_vm12 = vcmp.eq.s32.totalorder %v352_v39, %v2870_v11 }
  0x4c   : > { %2444 = vmatpush1.bf16.msk.msra.mxu0 %vm2443_vm15, %v2770_v15  ;;  %vm2521_vm5 = vmpackc.low %vm678_vm14, %vm676_vm11  ;;  %vm685_vm14 = vcmp.eq.s32.totalorder %v351_v38, %v2872_v12  ;;  %vm423_vm15 = vcmp.eq.s32.totalorder %v351_v38, %v2874_v13 }
  0x4d   : > { %2522 = vmatpush1.bf16.msk.msra.mxu1 %vm2521_vm5, %v2770_v15  ;;  %vm2445_vm6 = vmpackc.low %vm422_vm0, %vm420_vm13  ;;  %vm687_vm13 = vcmp.eq.s32.totalorder %v352_v39, %v2872_v12  ;;  %vm684_vm5 = vcmp.eq.s32.totalorder %v351_v38, %v2876_v14 }
  0x4e   : > { %2446 = vmatprep.subr.msk.bf16.mxu0 %vm2445_vm6, %v2770_v15  ;;  %vm2523_vm7 = vmpackc.low %vm683_vm1, %vm681_vm2  ;;  %vm425_vm2 = vcmp.eq.s32.totalorder %v352_v39, %v2874_v13  ;;  %vm686_vm6 = vcmp.eq.s32.totalorder %v352_v39, %v2876_v14  ;;  %v230_v39 = vld [vmem:[%s3868_s2 + $0x90] sm:$0xff] }
  0x4f   : > { %2524 = vmatprep.subr.msk.bf16.mxu1 %vm2523_vm7, %v2770_v15  ;;  %vm2447_vm11 = vmpackc.low %vm421_vm4, %vm419_vm3  ;;  %vm428_vm4 = vcmp.eq.s32.totalorder %v353_v40, %v2870_v11  ;;  %vm430_vm7 = vcmp.eq.s32.totalorder %v354_v41, %v2870_v11 }
  0x50   : > { %2448 = vmatpush1.bf16.msk.msra.mxu0 %vm2447_vm11, %v2770_v15  ;;  %vm2525_vm0 = vmpackc.low %vm682_vm10, %vm680_vm9  ;;  %vm689_vm10 = vcmp.eq.s32.totalorder %v353_v40, %v2872_v12  ;;  %vm427_vm11 = vcmp.eq.s32.totalorder %v353_v40, %v2874_v13 }
  0x51   : > { %2526 = vmatpush1.bf16.msk.msra.mxu1 %vm2525_vm0, %v2770_v15  ;;  %vm2449_vm1 = vmpackc.low %vm426_vm12, %vm424_vm8  ;;  %vm691_vm8 = vcmp.eq.s32.totalorder %v354_v41, %v2872_v12  ;;  %vm688_vm0 = vcmp.eq.s32.totalorder %v353_v40, %v2876_v14  ;;  %v284_v40 = vld [vmem:[%s3869_s3 + $0xc0] sm:$0xff] }
  0x52   : > { %2450 = vmatprep.subr.msk.bf16.mxu0 %vm2449_vm1, %v2770_v15  ;;  %vm2527_vm3 = vmpackc.low %vm687_vm13, %vm685_vm14  ;;  %vm429_vm14 = vcmp.eq.s32.totalorder %v354_v41, %v2874_v13  ;;  %vm690_vm1 = vcmp.eq.s32.totalorder %v354_v41, %v2876_v14 }
  0x53   : > { %2528 = vmatprep.subr.msk.bf16.mxu1 %vm2527_vm3, %v2770_v15  ;;  %vm2451_vm9 = vmpackc.low %vm425_vm2, %vm423_vm15  ;;  %vm432_vm2 = vcmp.eq.s32.totalorder %v355_v42, %v2870_v11  ;;  %vm434_vm3 = vcmp.eq.s32.totalorder %v356_v43, %v2870_v11 }
  0x54   : > { %2452 = vmatpush1.bf16.msk.msra.mxu0 %vm2451_vm9, %v2770_v15  ;;  %vm2529_vm12 = vmpackc.low %vm686_vm6, %vm684_vm5  ;;  %vm693_vm6 = vcmp.eq.s32.totalorder %v355_v42, %v2872_v12  ;;  %vm695_vm9 = vcmp.eq.s32.totalorder %v356_v43, %v2872_v12 }
  0x55   : > { %2530 = vmatpush1.bf16.msk.msra.mxu1 %vm2529_vm12, %v2770_v15  ;;  %vm2453_vm13 = vmpackc.low %vm430_vm7, %vm428_vm4  ;;  %vm431_vm7 = vcmp.eq.s32.totalorder %v355_v42, %v2874_v13  ;;  %vm692_vm12 = vcmp.eq.s32.totalorder %v355_v42, %v2876_v14  ;;  %v234_v42 = vld [vmem:[%s3868_s2 + $0xb0] sm:$0xff] }
  0x56   : > { %2454 = vmatprep.subr.msk.bf16.mxu0 %vm2453_vm13, %v2770_v15  ;;  %vm2531_vm15 = vmpackc.low %vm691_vm8, %vm689_vm10  ;;  %vm433_vm10 = vcmp.eq.s32.totalorder %v356_v43, %v2874_v13  ;;  %vm436_vm13 = vcmp.eq.s32.totalorder %v357_v44, %v2870_v11 }
  0x57   : > { %2532 = vmatprep.subr.msk.bf16.mxu1 %vm2531_vm15, %v2770_v15  ;;  %vm2455_vm5 = vmpackc.low %vm429_vm14, %vm427_vm11  ;;  %vm694_vm11 = vcmp.eq.s32.totalorder %v356_v43, %v2876_v14  ;;  %vm438_vm15 = vcmp.eq.s32.totalorder %v358_v45, %v2870_v11  ;;  %v289_v43 = vld [vmem:[%s3869_s3 + $0xe8] sm:$0xff] }
  0x58   : > { %2456 = vmatpush1.bf16.msk.msra.mxu0 %vm2455_vm5, %v2770_v15  ;;  %vm2533_vm4 = vmpackc.low %vm690_vm1, %vm688_vm0  ;;  %vm697_vm1 = vcmp.eq.s32.totalorder %v357_v44, %v2872_v12  ;;  %vm435_vm5 = vcmp.eq.s32.totalorder %v357_v44, %v2874_v13 }
  0x59   : > { %2534 = vmatpush1.bf16.msk.msra.mxu1 %vm2533_vm4, %v2770_v15  ;;  %vm2457_vm8 = vmpackc.low %vm434_vm3, %vm432_vm2  ;;  %vm699_vm2 = vcmp.eq.s32.totalorder %v358_v45, %v2872_v12  ;;  %vm696_vm4 = vcmp.eq.s32.totalorder %v357_v44, %v2876_v14  ;;  %v217_v44 = vld [vmem:[%s3868_s2 + $0x28] sm:$0xff] }
  0x5a   : > { %2458 = vmatprep.subr.msk.bf16.mxu0 %vm2457_vm8, %v2770_v15  ;;  %vm2535_vm14 = vmpackc.low %vm695_vm9, %vm693_vm6  ;;  %vm437_vm6 = vcmp.eq.s32.totalorder %v358_v45, %v2874_v13  ;;  %vm701_vm8 = vcmp.eq.s32.totalorder %v3104_v46, %v2872_v12 }
  0x5b   : > { %2536 = vmatprep.subr.msk.bf16.mxu1 %vm2535_vm14, %v2770_v15  ;;  %vm2459_vm0 = vmpackc.low %vm433_vm10, %vm431_vm7  ;;  %vm698_vm7 = vcmp.eq.s32.totalorder %v358_v45, %v2876_v14  ;;  %vm700_vm14 = vcmp.eq.s32.totalorder %v3104_v46, %v2876_v14  ;;  %v2772_v45 = vmov 1.0  }
  0x5c   : > { %2460 = vmatpush1.bf16.msk.msra.mxu0 %vm2459_vm0, %v2770_v15  ;;  %vm2537_vm3 = vmpackc.low %vm694_vm11, %vm692_vm12  ;;  %vm703_vm12 = vcmp.eq.s32.totalorder %v3107_v47, %v2872_v12  ;;  %vm705_vm0 = vcmp.eq.s32.totalorder %v3119_v49, %v2872_v12 }
  0x5d   : > { %2538 = vmatpush1.bf16.msk.msra.mxu1 %vm2537_vm3, %v2770_v15  ;;  %vm2461_vm9 = vmpackc.low %vm438_vm15, %vm436_vm13  ;;  %vm702_vm13 = vcmp.eq.s32.totalorder %v3107_v47, %v2876_v14 }
  0x5e   : > { %2462 = vmatprep.subr.msk.bf16.mxu0 %vm2461_vm9, %v2770_v15  ;;  %vm2539_vm10 = vmpackc.low %vm699_vm2, %vm697_vm1  ;;  %vm707_vm1 = vcmp.eq.s32.totalorder %v3122_v50, %v2872_v12  ;;  %vm706_vm9 = vcmp.eq.s32.totalorder %v3122_v50, %v2876_v14 }
  0x5f   : > { %1131 = vmatmul.mubr.f32.vlgmr.msra.gmra.mrb[0].mxu0 %v212_v48  ;;  %2540 = vmatprep.subr.msk.bf16.mxu1 %vm2539_vm10, %v2770_v15  ;;  %vm2463_vm11 = vmpackc.low %vm437_vm6, %vm435_vm5  ;;  %vm704_vm6 = vcmp.eq.s32.totalorder %v3119_v49, %v2876_v14  ;;  %v270_v48 = vld [vmem:[%s3869_s3 + $0x50] sm:$0xff] }
  0x60   : > { %1508 = vmatmul.mubr.f32.vlgmr.msra.gmra.mrb[0].mxu1 %v260_v51  ;;  %2464 = vmatpush1.bf16.msk.msra.mxu0 %vm2463_vm11, %v2770_v15  ;;  %vm2541_vm15 = vmpackc.low %vm698_vm7, %vm696_vm4  ;;  %vm709_vm4 = vcmp.eq.s32.totalorder %v599_v55, %v2872_v12  ;;  %vm711_vm7 = vcmp.eq.s32.totalorder %v600_v56, %v2872_v12  ;;  %v233_v51 = vld [vmem:[%s3868_s2 + $0xa8] sm:$0xff] }
  0x61   : > { %2542 = vmatpush1.bf16.msk.msra.mxu1 %vm2541_vm15, %v2770_v15  ;;  %1136 = vmatprep.mubr.f32.mxu0 %v216_v52  ;;  %vm2543_vm2 = vmpackc.low %vm703_vm12, %vm701_vm8  ;;  %vm708_vm8 = vcmp.eq.s32.totalorder %v599_v55, %v2876_v14  ;;  %vm710_vm12 = vcmp.eq.s32.totalorder %v600_v56, %v2876_v14  ;;  %vm440_vm15 = vcmp.eq.s32.totalorder %v3104_v46, %v2870_v11  ;;  %v611_v52 = vadd.s32 400, %v2857_v3  ;;  %v236_v56 = vld [vmem:[%s3868_s2 + $0xc0] sm:$0xff] }
  0x62   : > { %1513 = vmatprep.mubr.f32.mxu1 %v265_v53  ;;  %2544 = vmatprep.subr.msk.bf16.mxu1 %vm2543_vm2, %v2770_v15  ;;  %vm2545_vm3 = vmpackc.low %vm702_vm13, %vm700_vm14  ;;  %vm713_vm14 = vcmp.eq.s32.totalorder %v601_v60, %v2872_v12  ;;  %vm715_vm13 = vcmp.eq.s32.totalorder %v602_v61, %v2872_v12  ;;  %v612_v53 = vadd.s32 408, %v2857_v3 }
  0x63   : > { %1137 = vmatmul.mubr.f32.gmra.mrb[2].mxu0 %v215_v54  ;;  %vm2547_vm5 = vmpackc.low %vm707_vm1, %vm705_vm0  ;;  %vm442_vm0 = vcmp.eq.s32.totalorder %v3107_v47, %v2870_v11  ;;  %v229_v54 = vld [vmem:[%s3868_s2 + $0x88] sm:$0xff] }
  0x64   : > { %1514 = vmatmul.mubr.f32.gmra.mrb[2].mxu1 %v264_v57  ;;  %1142 = vmatprep.mubr.f32.mxu0 %v219_v58  ;;  %vm2549_vm10 = vmpackc.low %vm706_vm9, %vm704_vm6  ;;  %vm717_vm6 = vcmp.eq.s32.totalorder %v603_v4, %v2872_v12  ;;  %vm719_vm9 = vcmp.eq.s32.totalorder %v604_v5, %v2872_v12  ;;  %v613_v57 = vadd.s32 416, %v2857_v3  ;;  %v614_v58 = vadd.s32 424, %v2857_v3 }
  0x65   : > { %2546 = vmatpush1.bf16.msk.msra.mxu1 %vm2545_vm3, %v2770_v15  ;;  %1519 = vmatprep.mubr.f32.mxu1 %v269_v59  ;;  %vm2551_vm11 = vmpackc.low %vm711_vm7, %vm709_vm4  ;;  %vm712_vm3 = vcmp.eq.s32.totalorder %v601_v60, %v2876_v14  ;;  %vm439_vm7 = vcmp.eq.s32.totalorder %v3104_v46, %v2874_v13  ;;  %v292_v59 = vld [vmem:[%s3869_s3 + $0x100] sm:$0xff] }
  0x66   : > { %2548 = vmatprep.subr.msk.bf16.mxu1 %vm2547_vm5, %v2770_v15  ;;  %vm3234_vm1 = vmpackc.low %vm710_vm12, %vm708_vm8  ;;  %vm714_vm5 = vcmp.eq.s32.totalorder %v602_v61, %v2876_v14  ;;  %v240_v60 = vld [vmem:[%s3868_s2 + $0xe0] sm:$0xff]  ;;  %v297_v61 = vld [vmem:[%s3869_s3 + $0x128] sm:$0xff] }
  0x67   : > { %1143 = vmatmul.mubr.f32.gmra.mrb[4].mxu0 %v218_v62  ;;  %vm3249_vm2 = vmpackc.low %vm715_vm13, %vm713_vm14  ;;  %vm718_vm14 = vcmp.eq.s32.totalorder %v604_v5, %v2876_v14  ;;  %v239_v62 = vld [vmem:[%s3868_s2 + $0xd8] sm:$0xff]  ;;  %v301_v5 = vld [vmem:[%s3869_s3 + $0x148] sm:$0xff] }
  0x68   : > { %1520 = vmatmul.mubr.f32.gmra.mrb[4].mxu1 %v268_v63  ;;  %1148 = vmatprep.mubr.f32.mxu0 %v222_v1  ;;  %vm3260_vm4 = vmpackc.low %vm442_vm0, %vm440_vm15  ;;  %vm721_vm15 = vcmp.eq.s32.totalorder %v605_v19, %v2872_v12  ;;  %vm723_vm0 = vcmp.eq.s32.totalorder %v606_v20, %v2872_v12  ;;  %v615_v63 = vadd.s32 432, %v2857_v3  ;;  %v616_v1 = vadd.s32 440, %v2857_v3 }
  0x69   : > { %2550 = vmatpush1.bf16.msk.msra.mxu1 %vm2549_vm10, %v2770_v15  ;;  %1525 = vmatprep.mubr.f32.mxu1 %v273_v2  ;;  %vm441_vm10 = vcmp.eq.s32.totalorder %v3107_v47, %v2874_v13  ;;  %vm3283_vm8 = vmpackc.low %vm714_vm5, %vm712_vm3  ;;  %vm720_vm3 = vcmp.eq.s32.totalorder %v605_v19, %v2876_v14  ;;  %vm722_vm5 = vcmp.eq.s32.totalorder %v606_v20, %v2876_v14  ;;  %v296_v2 = vld [vmem:[%s3869_s3 + $0x120] sm:$0xff]  ;;  %v620_v19 = vadd.s32 472, %v2857_v3 }
  0x6a   : > { %2552 = vmatprep.subr.msk.bf16.mxu1 %vm2551_vm11, %v2770_v15  ;;  %vm3300_vm12 = vmpackc.low %vm719_vm9, %vm717_vm6  ;;  %2466 = vmatprep.subr.msk.bf16.mxu0 %vm3260_vm4, %v2770_v15  ;;  %vm716_vm11 = vcmp.eq.s32.totalorder %v603_v4, %v2876_v14  ;;  %vm725_vm9 = vcmp.eq.s32.totalorder %v607_v27, %v2872_v12  ;;  %vm727_vm4 = vcmp.eq.s32.totalorder %v608_v28, %v2872_v12  ;;  %v243_v4 = vld [vmem:[%s3868_s2 + $0xf8] sm:$0xff]  ;;  %v304_v20 = vld [vmem:[%s3869_s3 + $0x160] sm:$0xff] }
  0x6b   : > { %1149 = vmatmul.mubr.f32.gmra.mrb[6].mxu0 %v221_v6  ;;  %vm3315_vm13 = vmpackc.low %vm441_vm10, %vm439_vm7  ;;  %vm444_vm7 = vcmp.eq.s32.totalorder %v3119_v49, %v2870_v11  ;;  %vm445_vm10 = vcmp.eq.s32.totalorder %v3122_v50, %v2874_v13  ;;  %v242_v6 = vld [vmem:[%s3868_s2 + $0xf0] sm:$0xff] }
  0x6c   : > { %1526 = vmatmul.mubr.f32.gmra.mrb[6].mxu1 %v272_v7  ;;  %1154 = vmatprep.mubr.f32.mxu0 %v225_v9  ;;  %vm3361_vm6 = vmpackc.low %vm723_vm0, %vm721_vm15  ;;  %vm729_vm15 = vcmp.eq.s32.totalorder %v3357_v34, %v2872_v12  ;;  %vm731_vm0 = vcmp.eq.s32.totalorder %v610_v36, %v2872_v12  ;;  %v2029_v47 = vsel %vm445_vm10, 1.0, %v2771_v37  ;;  %vm735_vm10 = vcmp.eq.s32.totalorder %v612_v53, %v2872_v12  ;;  %v300_v9 = vld [vmem:[%s3869_s3 + $0x140] sm:$0xff] }
  0x6d   : > { %2554 = vmatpush1.bf16.msk.msra.mxu1 %vm3234_vm1, %v2770_v15  ;;  %1531 = vmatprep.mubr.f32.mxu1 %v277_v10  ;;  %vm446_vm1 = vcmp.eq.s32.totalorder %v3122_v50, %v2870_v11  ;;  %v288_v11 = vld [vmem:[%s3869_s3 + $0xe0] sm:$0xff]  ;;  %v2472_v55 = vpack.c.bf16 %v2029_v47, %v2772_v45  ;;  %v617_v7 = vadd.s32 448, %v2857_v3  ;;  %v246_v10 = vld [vmem:[%s3868_s2 + $0x110] sm:$0xff] }
  0x6e   : > { %2556 = vmatprep.subr.msk.bf16.mxu1 %vm3249_vm2, %v2770_v15  ;;  %vm3344_vm2 = vmpackc.low %vm718_vm14, %vm716_vm11  ;;  %2468 = vmatpush1.bf16.msk.msra.mxu0 %vm3315_vm13, %v2770_v15  ;;  %v2030_v38 = vsel %vm446_vm1, 1.0, %v2771_v37  ;;  %vm724_vm14 = vcmp.eq.s32.totalorder %v607_v27, %v2876_v14  ;;  %vm726_vm13 = vcmp.eq.s32.totalorder %v608_v28, %v2876_v14  ;;  %v252_v27 = vld [vmem:[%s3868_s2 + $0x140] sm:$0xff]  ;;  %v313_v28 = vld [vmem:[%s3869_s3 + $0x1a8] sm:$0xff] }
  0x6f   : > { %1155 = vmatmul.mubr.f32.gmra.mrb[8].mxu0 %v224_v18  ;;  %vm3406_vm11 = vmpackc.low %vm727_vm4, %vm725_vm9  ;;  %v2469_v46 = vpack.c.bf16 %v2030_v38, %v2772_v45  ;;  %vm730_vm9 = vcmp.eq.s32.totalorder %v610_v36, %v2876_v14  ;;  %v619_v18 = vadd.s32 464, %v2857_v3  ;;  %v258_v36 = vld [vmem:[%s3868_s2 + $0x170] sm:$0xff]  ;;  %v321_v38 = vld [vmem:[%s3869_s3 + $0x1e8] sm:$0xff] }
  0x70   : > { %1532 = vmatmul.mubr.f32.gmra.mrb[8].mxu1 %v276_v21  ;;  %1160 = vmatprep.mubr.f32.mxu0 %v228_v23  ;;  %v249_v21 = vld [vmem:[%s3868_s2 + $0x128] sm:$0xff]  ;;  %v248_v23 = vld [vmem:[%s3868_s2 + $0x120] sm:$0xff]  ;;  %v266_v45 = vld [vmem:[%s3869_s3 + $0x30] sm:$0xff] }
  0x71   : > { %2558 = vmatpush1.bf16.msk.msra.mxu1 %vm3283_vm8, %v2770_v15  ;;  %1537 = vmatprep.mubr.f32.mxu1 %v281_v24  ;;  %vm1059_vm8 = vcmask 1043456   ;;  %v621_v24 = vadd.s32 480, %v2857_v3  ;;  %v220_v47 = vld [vmem:[%s3868_s2 + $0x40] sm:$0xff]  ;;  %v226_v50 = vld [vmem:[%s3868_s2 + $0x70] sm:$0xff] }
  0x72   : > { %2560 = vmatprep.subr.msk.bf16.mxu1 %vm3300_vm12, %v2770_v15  ;;  %vm3389_vm12 = vmpackc.low %vm722_vm5, %vm720_vm3 }
  0x73   : > { %1161 = vmatmul.mubr.f32.gmra.mrb[10].mxu0 %v227_v29  ;;  %vm3423_vm1 = vmpackc.low %vm1059_vm8, %vm444_vm7  ;;  %vm733_vm7 = vcmp.eq.s32.totalorder %v611_v52, %v2872_v12  ;;  %v251_v29 = vld [vmem:[%s3868_s2 + $0x138] sm:$0xff] }
  0x74   : > { %1538 = vmatmul.mubr.f32.gmra.mrb[10].mxu1 %v280_v30  ;;  %1166 = vmatprep.mubr.f32.mxu0 %v231_v31  ;;  %vm3444_vm3 = vmpackc.low %vm726_vm13, %vm724_vm14  ;;  %vm732_vm14 = vcmp.eq.s32.totalorder %v611_v52, %v2876_v14  ;;  %vm734_vm13 = vcmp.eq.s32.totalorder %v612_v53, %v2876_v14  ;;  %v623_v30 = vadd.s32 496, %v2857_v3  ;;  %v312_v31 = vld [vmem:[%s3869_s3 + $0x1a0] sm:$0xff]  ;;  %v223_v52 = vld [vmem:[%s3868_s2 + $0x58] sm:$0xff] }
  0x75   : > { %2562 = vmatpush1.bf16.msk.msra.mxu1 %vm3344_vm2, %v2770_v15  ;;  %1543 = vmatprep.mubr.f32.mxu1 %v285_v33  ;;  %vm443_vm2 = vcmp.eq.s32.totalorder %v3119_v49, %v2874_v13  ;;  %v237_v13 = vld [vmem:[%s3868_s2 + $0xc8] sm:$0xff]  ;;  %vm3462_vm5 = vmpackc.low %vm731_vm0, %vm729_vm15  ;;  %vm737_vm15 = vcmp.eq.s32.totalorder %v613_v57, %v2872_v12  ;;  %vm739_vm0 = vcmp.eq.s32.totalorder %v614_v58, %v2872_v12  ;;  %v274_v53 = vld [vmem:[%s3869_s3 + $0x70] sm:$0xff] }
  0x76   : > { %2564 = vmatprep.subr.msk.bf16.mxu1 %vm3361_vm6, %v2770_v15  ;;  %v293_v49 = vld [vmem:[%s3869_s3 + $0x108] sm:$0xff]  ;;  %2471 = vmatprep.subr.msk.bf16.mxu0 %vm3423_vm1, %v2469_v46  ;;  %vm728_vm6 = vcmp.eq.s32.totalorder %v3357_v34, %v2876_v14  ;;  %vm2473_vm4 = vmpackc.low %vm1059_vm8, %vm443_vm2  ;;  %v254_v34 = vld [vmem:[%s3868_s2 + $0x150] sm:$0xff] }
  0x77   : > { %1167 = vmatmul.mubr.f32.gmra.mrb[12].mxu0 %v230_v39  ;;  %vm2577_vm1 = vmpackc.low %vm734_vm13, %vm732_vm14  ;;  %vm747_vm14 = vcmp.eq.s32.totalorder %v618_v8, %v2872_v12  ;;  %v317_v33 = vld [vmem:[%s3869_s3 + $0x1c8] sm:$0xff]  ;;  %v271_v46 = vld [vmem:[%s3869_s3 + $0x58] sm:$0xff] }
  0x78   : > { %1544 = vmatmul.mubr.f32.gmra.mrb[12].mxu1 %v284_v40  ;;  %1172 = vmatprep.mubr.f32.mxu0 %v234_v42  ;;  %vm2579_vm2 = vmpackc.low %vm739_vm0, %vm737_vm15  ;;  %vm744_vm0 = vcmp.eq.s32.totalorder %v617_v7, %v2876_v14  ;;  %v257_v39 = vld [vmem:[%s3868_s2 + $0x168] sm:$0xff]  ;;  %v320_v40 = vld [vmem:[%s3869_s3 + $0x1e0] sm:$0xff] }
  0x79   : > { %2566 = vmatpush1.bf16.msk.msra.mxu1 %vm3389_vm12, %v2770_v15  ;;  %1549 = vmatprep.mubr.f32.mxu1 %v289_v43  ;;  %vm2573_vm12 = vmpackc.low %vm730_vm9, %vm728_vm6  ;;  %vm741_vm6 = vcmp.eq.s32.totalorder %v615_v63, %v2872_v12  ;;  %vm743_vm9 = vcmp.eq.s32.totalorder %v616_v1, %v2872_v12  ;;  %v262_v42 = vld [vmem:[%s3869_s3 + $0x10] sm:$0xff]  ;;  %v267_v43 = vld [vmem:[%s3869_s3 + $0x38] sm:$0xff] }
  0x7a   : > { %2568 = vmatprep.subr.msk.bf16.mxu1 %vm3406_vm11, %v2770_v15  ;;  %2474 = vmatpush1.bf16.msk.msra.mxu0 %vm2473_vm4, %v2472_v55  ;;  %vm2575_vm11 = vmpackc.low %vm735_vm10, %vm733_vm7  ;;  %vm740_vm10 = vcmp.eq.s32.totalorder %v615_v63, %v2876_v14  ;;  %v282_v55 = vld [vmem:[%s3869_s3 + $0xb0] sm:$0xff] }
  0x7b   : > { %1173 = vmatmul.mubr.f32.gmra.mrb[14].mxu0 %v233_v51  ;;  %vm2583_vm7 = vmpackc.low %vm743_vm9, %vm741_vm6  ;;  %vm748_vm9 = vcmp.eq.s32.totalorder %v619_v18, %v2876_v14  ;;  %v275_v51 = vld [vmem:[%s3869_s3 + $0x78] sm:$0xff]  ;;  %v238_v63 = vld [vmem:[%s3868_s2 + $0xd0] sm:$0xff] }
  0x7c   : > { %1550 = vmatmul.mubr.f32.gmra.mrb[14].mxu1 %v288_v11  ;;  %1178 = vmatprep.mubr.f32.mxu0 %v237_v13  ;;  %v279_v11 = vld [vmem:[%s3869_s3 + $0x98] sm:$0xff]  ;;  %v278_v13 = vld [vmem:[%s3869_s3 + $0x90] sm:$0xff] }
  0x7d   : > { %2570 = vmatpush1.bf16.msk.msra.mxu1 %vm3444_vm3, %v2770_v15  ;;  %1555 = vmatprep.mubr.f32.mxu1 %v293_v49  ;;  %vm736_vm3 = vcmp.eq.s32.totalorder %v613_v57, %v2876_v14  ;;  %v283_v49 = vld [vmem:[%s3869_s3 + $0xb8] sm:$0xff]  ;;  %v232_v57 = vld [vmem:[%s3868_s2 + $0xa0] sm:$0xff] }
  0x7e   : > { %2572 = vmatprep.subr.msk.bf16.mxu1 %vm3462_vm5, %v2770_v15  ;;  %vm738_vm5 = vcmp.eq.s32.totalorder %v614_v58, %v2876_v14  ;;  %v286_v58 = vld [vmem:[%s3869_s3 + $0xd0] sm:$0xff] }
  0x7f   : > { %1179 = vmatmul.mubr.f32.gmra.mrb[16].mxu0 %v236_v56  ;;  %vm2581_vm4 = vmpackc.low %vm738_vm5, %vm736_vm3  ;;  %vm751_vm3 = vcmp.eq.s32.totalorder %v620_v19, %v2872_v12  ;;  %v287_v56 = vld [vmem:[%s3869_s3 + $0xd8] sm:$0xff] }
  0x80   : > { %1556 = vmatmul.mubr.f32.gmra.mrb[16].mxu1 %v292_v59  ;;  %1184 = vmatprep.mubr.f32.mxu0 %v240_v60  ;;  %v291_v59 = vld [vmem:[%s3869_s3 + $0xf8] sm:$0xff] }
  0x81   : > { %2574 = vmatpush1.bf16.msk.msra.mxu1 %vm2573_vm12, %v2770_v15  ;;  %1561 = vmatprep.mubr.f32.mxu1 %v297_v61  ;;  %vm742_vm12 = vcmp.eq.s32.totalorder %v616_v1, %v2876_v14  ;;  %v235_v60 = vld [vmem:[%s3868_s2 + $0xb8] sm:$0xff]  ;;  %v290_v61 = vld [vmem:[%s3869_s3 + $0xf0] sm:$0xff] }
  0x82   : > { %2576 = vmatprep.subr.msk.bf16.mxu1 %vm2575_vm11, %v2770_v15  ;;  %vm745_vm11 = vcmp.eq.s32.totalorder %v617_v7, %v2872_v12  ;;  %vm2585_vm13 = vmpackc.low %vm742_vm12, %vm740_vm10  ;;  %vm755_vm10 = vcmp.eq.s32.totalorder %v622_v25, %v2872_v12  ;;  %v294_v1 = vld [vmem:[%s3869_s3 + $0x110] sm:$0xff]  ;;  %v244_v7 = vld [vmem:[%s3868_s2 + $0x100] sm:$0xff] }
  0x83   : > { %1185 = vmatmul.mubr.f32.gmra.mrb[18].mxu0 %v239_v62  ;;  %vm2587_vm15 = vmpackc.low %vm747_vm14, %vm745_vm11  ;;  %vm752_vm14 = vcmp.eq.s32.totalorder %v621_v24, %v2876_v14  ;;  %v295_v62 = vld [vmem:[%s3869_s3 + $0x118] sm:$0xff] }
  0x84   : > { %1562 = vmatmul.mubr.f32.gmra.mrb[18].mxu1 %v296_v2  ;;  %1190 = vmatprep.mubr.f32.mxu0 %v243_v4  ;;  %v299_v2 = vld [vmem:[%s3869_s3 + $0x138] sm:$0xff]  ;;  %v241_v4 = vld [vmem:[%s3868_s2 + $0xe8] sm:$0xff] }
  0x85   : > { %2578 = vmatpush1.bf16.msk.msra.mxu1 %vm2577_vm1, %v2770_v15  ;;  %1567 = vmatprep.mubr.f32.mxu1 %v301_v5  ;;  %vm746_vm1 = vcmp.eq.s32.totalorder %v618_v8, %v2876_v14  ;;  %v298_v5 = vld [vmem:[%s3869_s3 + $0x130] sm:$0xff] }
  0x86   : > { %2580 = vmatprep.subr.msk.bf16.mxu1 %vm2579_vm2, %v2770_v15  ;;  %vm749_vm2 = vcmp.eq.s32.totalorder %v619_v18, %v2872_v12  ;;  %vm2589_vm5 = vmpackc.low %vm746_vm1, %vm744_vm0  ;;  %vm756_vm1 = vcmp.eq.s32.totalorder %v623_v30, %v2876_v14  ;;  %v302_v8 = vld [vmem:[%s3869_s3 + $0x150] sm:$0xff] }
  0x87   : > { %1191 = vmatmul.mubr.f32.gmra.mrb[20].mxu0 %v242_v6  ;;  %vm2591_vm6 = vmpackc.low %vm751_vm3, %vm749_vm2  ;;  %v2155_v41 = vsel %vm756_vm1, 1.0, %v2771_v37  ;;  %vm1388_vm2 = vcmask 949248   ;;  %vm1010_vm3 = vcmask 359424   ;;  %v303_v6 = vld [vmem:[%s3869_s3 + $0x158] sm:$0xff]  ;;  %v250_v18 = vld [vmem:[%s3868_s2 + $0x130] sm:$0xff] }
  0x88   : > { %1568 = vmatmul.mubr.f32.gmra.mrb[20].mxu1 %v300_v9  ;;  %1196 = vmatprep.mubr.f32.mxu0 %v246_v10  ;;  %v307_v9 = vld [vmem:[%s3869_s3 + $0x178] sm:$0xff] }
  0x89   : > { %2582 = vmatpush1.bf16.msk.msra.mxu1 %vm2581_vm4, %v2770_v15  ;;  %1573 = vmatprep.mubr.f32.mxu1 %v305_v16  ;;  %vm750_vm4 = vcmp.eq.s32.totalorder %v620_v19, %v2876_v14  ;;  %v247_v10 = vld [vmem:[%s3868_s2 + $0x118] sm:$0xff]  ;;  %v306_v16 = vld [vmem:[%s3869_s3 + $0x170] sm:$0xff] }
  0x8a   : > { %2584 = vmatprep.subr.msk.bf16.mxu1 %vm2583_vm7, %v2770_v15  ;;  %vm753_vm7 = vcmp.eq.s32.totalorder %v621_v24, %v2872_v12  ;;  %vm2593_vm12 = vmpackc.low %vm750_vm4, %vm748_vm9  ;;  %v310_v19 = vld [vmem:[%s3869_s3 + $0x190] sm:$0xff]  ;;  %v256_v24 = vld [vmem:[%s3868_s2 + $0x160] sm:$0xff] }
  0x8b   : > { %1197 = vmatmul.mubr.f32.gmra.mrb[22].mxu0 %v245_v17  ;;  %vm2595_vm11 = vmpackc.low %vm755_vm10, %vm753_vm7  ;;  %v311_v17 = vld [vmem:[%s3869_s3 + $0x198] sm:$0xff] }
  0x8c   : > { %1574 = vmatmul.mubr.f32.gmra.mrb[22].mxu1 %v304_v20  ;;  %1202 = vmatprep.mubr.f32.mxu0 %v249_v21  ;;  %v315_v20 = vld [vmem:[%s3869_s3 + $0x1b8] sm:$0xff]  ;;  %v253_v21 = vld [vmem:[%s3868_s2 + $0x148] sm:$0xff] }
  0x8d   : > { %2586 = vmatpush1.bf16.msk.msra.mxu1 %vm2585_vm13, %v2770_v15  ;;  %1579 = vmatprep.mubr.f32.mxu1 %v309_v22  ;;  %vm754_vm13 = vcmp.eq.s32.totalorder %v622_v25, %v2876_v14  ;;  %v263_v14 = vld [vmem:[%s3869_s3 + $0x18] sm:$0xff]  ;;  %v314_v22 = vld [vmem:[%s3869_s3 + $0x1b0] sm:$0xff] }
  0x8e   : > { %2588 = vmatprep.subr.msk.bf16.mxu1 %vm2587_vm15, %v2770_v15  ;;  %vm757_vm15 = vcmp.eq.s32.totalorder %v623_v30, %v2872_v12  ;;  %vm2597_vm0 = vmpackc.low %vm754_vm13, %vm752_vm14  ;;  %v318_v25 = vld [vmem:[%s3869_s3 + $0x1d0] sm:$0xff] }
  0x8f   : > { %1203 = vmatmul.mubr.f32.gmra.mrb[24].mxu0 %v248_v23  ;;  %v2156_v12 = vsel %vm757_vm15, 1.0, %v2771_v37  ;;  %v319_v23 = vld [vmem:[%s3869_s3 + $0x1d8] sm:$0xff] }
  0x90   : > { %1580 = vmatmul.mubr.f32.gmra.mrb[24].mxu1 %v308_v26  ;;  %1208 = vmatprep.mubr.f32.mxu0 %v252_v27  ;;  %v323_v26 = vld [vmem:[%s3869_s3 + $0x1f8] sm:$0xff] }
  0x91   : > { %2590 = vmatpush1.bf16.msk.msra.mxu1 %vm2589_vm5, %v2770_v15  ;;  %1585 = vmatprep.mubr.f32.mxu1 %v313_v28  ;;  %v259_v27 = vld [vmem:[%s3868_s2 + $0x178] sm:$0xff]  ;;  %v322_v28 = vld [vmem:[%s3869_s3 + $0x1f0] sm:$0xff] }
  0x92   : > { %2592 = vmatprep.subr.msk.bf16.mxu1 %vm2591_vm6, %v2770_v15 }
  0x93   : > { %1209 = vmatmul.mubr.f32.gmra.mrb[26].mxu0 %v251_v29 }
  0x94   : > { %1586 = vmatmul.mubr.f32.gmra.mrb[26].mxu1 %v312_v31  ;;  %1214 = vmatprep.mubr.f32.mxu0 %v255_v32 }
  0x95   : > { %2594 = vmatpush1.bf16.msk.msra.mxu1 %vm2593_vm12, %v2770_v15  ;;  %1591 = vmatprep.mubr.f32.mxu1 %v317_v33 }
  0x96   : > { %2596 = vmatprep.subr.msk.bf16.mxu1 %vm2595_vm11, %v2770_v15 }
  0x97   : > { %1215 = vmatmul.mubr.f32.gmra.mrb[28].mxu0 %v254_v34 }
  0x98   : > { %1592 = vmatmul.mubr.f32.gmra.mrb[28].mxu1 %v316_v35  ;;  %1220 = vmatprep.mubr.f32.mxu0 %v258_v36 }
  0x99   : > { %2598 = vmatpush1.bf16.msk.msra.mxu1 %vm2597_vm0, %v2770_v15  ;;  %1597 = vmatprep.mubr.f32.mxu1 %v321_v38  ;;  %v214_v15 = vld [vmem:[%s3868_s2 + $0x10] sm:$0xff] }
  0x9a   : > { %2373 = vmatprep.subr.msk.mxu1 %vm1059_vm8, %v2156_v12 }
  0x9b   : > { %1221 = vmatmul.mubr.f32.gmra.mrb[30].mxu0 %v257_v39 }
  0x9c   : > { %1598 = vmatmul.mubr.f32.gmra.mrb[30].mxu1 %v320_v40  ;;  %1291 = vmatprep.mubr.f32.mxu0 %v2771_v37 }
  0x9d   : > { %2374 = vmatpush1.msk.msra.mxu1 %vm1059_vm8, %v2155_v41  ;;  %2375 = vmatprep.mubr.msk.f32.mxu1 %vm1388_vm2, %v263_v14  ;;  %vm1859_vm8 = vcmp.lt.s32.totalorder %v324_v0, 256 }
  0x9f   : > { %2233 = vmatmul.mubr.msk.f32.vlgmr.msra.gmra.mrb[0].mxu0 %vm1010_vm3, %v214_v15 }
  0xa0   : > { %1669 = vmatmul.mubr.f32.vlgmr.msra.gmra.mrb[0].mxu1 %v262_v42  ;;  %1297 = vmatprep.mubr.f32.mxu0 %v2771_v37 }
  0xa1   : > { %2376 = vmatprep.mubr.msk.f32.mxu1 %vm1388_vm2, %v267_v43 }
  0xa3   : > { %2234 = vmatmul.mubr.msk.f32.gmra.mrb[2].mxu0 %vm1010_vm3, %v217_v44 }
  0xa4   : > { %1675 = vmatmul.mubr.f32.gmra.mrb[2].mxu1 %v266_v45  ;;  %1303 = vmatprep.mubr.f32.mxu0 %v2771_v37 }
  0xa5   : > { %2377 = vmatprep.mubr.msk.f32.mxu1 %vm1388_vm2, %v271_v46 }
  0xa7   : > { %2235 = vmatmul.mubr.msk.f32.gmra.mrb[4].mxu0 %vm1010_vm3, %v220_v47 }
  0xa8   : > { %1681 = vmatmul.mubr.f32.gmra.mrb[4].mxu1 %v270_v48  ;;  %1309 = vmatprep.mubr.f32.mxu0 %v2771_v37 }
  0xa9   : > { %2378 = vmatprep.mubr.msk.f32.mxu1 %vm1388_vm2, %v275_v51 }
  0xab   : > { %2236 = vmatmul.mubr.msk.f32.gmra.mrb[6].mxu0 %vm1010_vm3, %v223_v52 }
  0xac   : > { %1687 = vmatmul.mubr.f32.gmra.mrb[6].mxu1 %v274_v53  ;;  %1315 = vmatprep.mubr.f32.mxu0 %v2771_v37 }
  0xad   : > { %2379 = vmatprep.mubr.msk.f32.mxu1 %vm1388_vm2, %v279_v11 }
  0xaf   : > { %2237 = vmatmul.mubr.msk.f32.gmra.mrb[8].mxu0 %vm1010_vm3, %v226_v50 }
  0xb0   : > { %1693 = vmatmul.mubr.f32.gmra.mrb[8].mxu1 %v278_v13  ;;  %1321 = vmatprep.mubr.f32.mxu0 %v2771_v37 }
  0xb1   : > { %2380 = vmatprep.mubr.msk.f32.mxu1 %vm1388_vm2, %v283_v49 }
  0xb3   : > { %2238 = vmatmul.mubr.msk.f32.gmra.mrb[10].mxu0 %vm1010_vm3, %v229_v54 }
  0xb4   : > { %1699 = vmatmul.mubr.f32.gmra.mrb[10].mxu1 %v282_v55  ;;  %1327 = vmatprep.mubr.f32.mxu0 %v2771_v37 }
  0xb5   : > { %2381 = vmatprep.mubr.msk.f32.mxu1 %vm1388_vm2, %v287_v56 }
  0xb7   : > { %2239 = vmatmul.mubr.msk.f32.gmra.mrb[12].mxu0 %vm1010_vm3, %v232_v57 }
  0xb8   : > { %1705 = vmatmul.mubr.f32.gmra.mrb[12].mxu1 %v286_v58  ;;  %1333 = vmatprep.mubr.f32.mxu0 %v2771_v37 }
  0xb9   : > { %2382 = vmatprep.mubr.msk.f32.mxu1 %vm1388_vm2, %v291_v59 }
  0xbb   : > { %2240 = vmatmul.mubr.msk.f32.gmra.mrb[14].mxu0 %vm1010_vm3, %v235_v60 }
  0xbc   : > { %1711 = vmatmul.mubr.f32.gmra.mrb[14].mxu1 %v290_v61  ;;  %1339 = vmatprep.mubr.f32.mxu0 %v2771_v37 }
  0xbd   : > { %2383 = vmatprep.mubr.msk.f32.mxu1 %vm1388_vm2, %v295_v62 }
  0xbf   : > { %2241 = vmatmul.mubr.msk.f32.gmra.mrb[16].mxu0 %vm1010_vm3, %v238_v63 }
  0xc0   : > { %1717 = vmatmul.mubr.f32.gmra.mrb[16].mxu1 %v294_v1  ;;  %1345 = vmatprep.mubr.f32.mxu0 %v2771_v37 }
  0xc1   : > { %2384 = vmatprep.mubr.msk.f32.mxu1 %vm1388_vm2, %v299_v2 }
  0xc3   : > { %2242 = vmatmul.mubr.msk.f32.gmra.mrb[18].mxu0 %vm1010_vm3, %v241_v4 }
  0xc4   : > { %1723 = vmatmul.mubr.f32.gmra.mrb[18].mxu1 %v298_v5  ;;  %1351 = vmatprep.mubr.f32.mxu0 %v2771_v37 }
  0xc5   : > { %2385 = vmatprep.mubr.msk.f32.mxu1 %vm1388_vm2, %v303_v6 }
  0xc7   : > { %2243 = vmatmul.mubr.msk.f32.gmra.mrb[20].mxu0 %vm1010_vm3, %v244_v7 }
  0xc8   : > { %1729 = vmatmul.mubr.f32.gmra.mrb[20].mxu1 %v302_v8  ;;  %1357 = vmatprep.mubr.f32.mxu0 %v2771_v37 }
  0xc9   : > { %2386 = vmatprep.mubr.msk.f32.mxu1 %vm1388_vm2, %v307_v9 }
  0xcb   : > { %2244 = vmatmul.mubr.msk.f32.gmra.mrb[22].mxu0 %vm1010_vm3, %v247_v10 }
  0xcc   : > { %1735 = vmatmul.mubr.f32.gmra.mrb[22].mxu1 %v306_v16  ;;  %1363 = vmatprep.mubr.f32.mxu0 %v2771_v37 }
  0xcd   : > { %2387 = vmatprep.mubr.msk.f32.mxu1 %vm1388_vm2, %v311_v17 }
  0xcf   : > { %2245 = vmatmul.mubr.msk.f32.gmra.mrb[24].mxu0 %vm1010_vm3, %v250_v18 }
  0xd0   : > { %1741 = vmatmul.mubr.f32.gmra.mrb[24].mxu1 %v310_v19  ;;  %1369 = vmatprep.mubr.f32.mxu0 %v2771_v37 }
  0xd1   : > { %2388 = vmatprep.mubr.msk.f32.mxu1 %vm1388_vm2, %v315_v20 }
  0xd3   : > { %2246 = vmatmul.mubr.msk.f32.gmra.mrb[26].mxu0 %vm1010_vm3, %v253_v21 }
  0xd4   : > { %1747 = vmatmul.mubr.f32.gmra.mrb[26].mxu1 %v314_v22  ;;  %1375 = vmatprep.mubr.f32.mxu0 %v2771_v37 }
  0xd5   : > { %2389 = vmatprep.mubr.msk.f32.mxu1 %vm1388_vm2, %v319_v23 }
  0xd7   : > { %2247 = vmatmul.mubr.msk.f32.gmra.mrb[28].mxu0 %vm1010_vm3, %v256_v24 }
  0xd8   : > { %1753 = vmatmul.mubr.f32.gmra.mrb[28].mxu1 %v318_v25  ;;  %1381 = vmatprep.mubr.f32.mxu0 %v2771_v37 }
  0xd9   : > { %2390 = vmatprep.mubr.msk.f32.mxu1 %vm1388_vm2, %v323_v26 }
  0xdb   : > { %2248 = vmatmul.mubr.msk.f32.gmra.mrb[30].mxu0 %vm1010_vm3, %v259_v27 }
  0xdc   : > { %1759 = vmatmul.mubr.f32.gmra.mrb[30].mxu1 %v322_v28 }
 0x172   : > { %v1293_v29 = vpop.f32.mrb[0].mxu0 }
 0x173   : > { %v1670_v30 = vpop.f32.mrb[0].mxu1  ;;  %v1295_v31 = vpop.f32.mrb[1].mxu0 }
 0x174   : > { %v1765_v32 = vmul.f32 %v1670_v30, %v1293_v29  ;;  %v1672_v33 = vpop.f32.mrb[1].mxu1 }
 0x175   : > { %v1766_v34 = vmul.f32 %v1672_v33, %v1295_v31 }
 0x176   : > { %v1299_v37 = vpop.f32.mrb[2].mxu0 }
 0x177   : > { %v1676_v35 = vpop.f32.mrb[2].mxu1  ;;  %v1301_v36 = vpop.f32.mrb[3].mxu0 }
 0x178   : > { %v1767_v38 = vmul.f32 %v1676_v35, %v1299_v37  ;;  %v1678_v12 = vpop.f32.mrb[3].mxu1 }
 0x179   : > { %v1768_v39 = vmul.f32 %v1678_v12, %v1301_v36 }
 0x17a   : > { %v1797_v40 = vadd.f32 %v1767_v38, %v1765_v32  ;;  %v1305_v41 = vpop.f32.mrb[4].mxu0 }
 0x17b   : > { %v1818_v14 = vadd.f32 %v1768_v39, %v1766_v34  ;;  %v1682_v15 = vpop.f32.mrb[4].mxu1  ;;  %v1307_v42 = vpop.f32.mrb[5].mxu0 }
 0x17c   : > { %v1769_v43 = vmul.f32 %v1682_v15, %v1305_v41  ;;  %v1684_v44 = vpop.f32.mrb[5].mxu1 }
 0x17d   : > { %v1770_v45 = vmul.f32 %v1684_v44, %v1307_v42 }
 0x17e   : > { %v1798_v46 = vadd.f32 %v1797_v40, %v1769_v43  ;;  %v1311_v47 = vpop.f32.mrb[6].mxu0 }
 0x17f   : > { %v1819_v48 = vadd.f32 %v1818_v14, %v1770_v45  ;;  %v1688_v51 = vpop.f32.mrb[6].mxu1  ;;  %v1313_v52 = vpop.f32.mrb[7].mxu0 }
 0x180   : > { %v1771_v53 = vmul.f32 %v1688_v51, %v1311_v47  ;;  %v1690_v11 = vpop.f32.mrb[7].mxu1 }
 0x181   : > { %v1772_v50 = vmul.f32 %v1690_v11, %v1313_v52 }
 0x182   : > { %v1799_v13 = vadd.f32 %v1798_v46, %v1771_v53  ;;  %v1317_v49 = vpop.f32.mrb[8].mxu0 }
 0x183   : > { %v1820_v54 = vadd.f32 %v1819_v48, %v1772_v50  ;;  %v1694_v55 = vpop.f32.mrb[8].mxu1  ;;  %v1319_v56 = vpop.f32.mrb[9].mxu0 }
 0x184   : > { %v1773_v57 = vmul.f32 %v1694_v55, %v1317_v49  ;;  %v1696_v58 = vpop.f32.mrb[9].mxu1 }
 0x185   : > { %v1774_v59 = vmul.f32 %v1696_v58, %v1319_v56 }
 0x186   : > { %v1800_v60 = vadd.f32 %v1799_v13, %v1773_v57  ;;  %v1323_v61 = vpop.f32.mrb[10].mxu0 }
 0x187   : > { %v1821_v62 = vadd.f32 %v1820_v54, %v1774_v59  ;;  %v1700_v63 = vpop.f32.mrb[10].mxu1  ;;  %v1325_v1 = vpop.f32.mrb[11].mxu0 }
 0x188   : > { %v1775_v2 = vmul.f32 %v1700_v63, %v1323_v61  ;;  %v1702_v4 = vpop.f32.mrb[11].mxu1 }
 0x189   : > { %v1776_v5 = vmul.f32 %v1702_v4, %v1325_v1 }
 0x18a   : > { %v1801_v6 = vadd.f32 %v1800_v60, %v1775_v2  ;;  %v1329_v7 = vpop.f32.mrb[12].mxu0 }
 0x18b   : > { %v1822_v8 = vadd.f32 %v1821_v62, %v1776_v5  ;;  %v1706_v9 = vpop.f32.mrb[12].mxu1  ;;  %v1331_v10 = vpop.f32.mrb[13].mxu0 }
 0x18c   : > { %v1777_v16 = vmul.f32 %v1706_v9, %v1329_v7  ;;  %v1708_v17 = vpop.f32.mrb[13].mxu1 }
 0x18d   : > { %v1778_v18 = vmul.f32 %v1708_v17, %v1331_v10 }
 0x18e   : > { %v1802_v19 = vadd.f32 %v1801_v6, %v1777_v16  ;;  %v1335_v20 = vpop.f32.mrb[14].mxu0 }
 0x18f   : > { %v1823_v21 = vadd.f32 %v1822_v8, %v1778_v18  ;;  %v1712_v22 = vpop.f32.mrb[14].mxu1  ;;  %v1337_v23 = vpop.f32.mrb[15].mxu0 }
 0x190   : > { %v1779_v24 = vmul.f32 %v1712_v22, %v1335_v20  ;;  %v1714_v25 = vpop.f32.mrb[15].mxu1 }
 0x191   : > { %v1780_v26 = vmul.f32 %v1714_v25, %v1337_v23 }
 0x192   : > { %v1803_v27 = vadd.f32 %v1802_v19, %v1779_v24  ;;  %v1341_v28 = vpop.f32.mrb[16].mxu0 }
 0x193   : > { %v1824_v29 = vadd.f32 %v1823_v21, %v1780_v26  ;;  %v1718_v30 = vpop.f32.mrb[16].mxu1  ;;  %v1343_v31 = vpop.f32.mrb[17].mxu0 }
 0x194   : > { %v1781_v32 = vmul.f32 %v1718_v30, %v1341_v28  ;;  %v1720_v33 = vpop.f32.mrb[17].mxu1 }
 0x195   : > { %v1782_v34 = vmul.f32 %v1720_v33, %v1343_v31 }
 0x196   : > { %v1804_v37 = vadd.f32 %v1803_v27, %v1781_v32  ;;  %v1347_v35 = vpop.f32.mrb[18].mxu0 }
 0x197   : > { %v1825_v36 = vadd.f32 %v1824_v29, %v1782_v34  ;;  %v1724_v38 = vpop.f32.mrb[18].mxu1  ;;  %v1349_v12 = vpop.f32.mrb[19].mxu0 }
 0x198   : > { %v1783_v39 = vmul.f32 %v1724_v38, %v1347_v35  ;;  %v1726_v40 = vpop.f32.mrb[19].mxu1 }
 0x199   : > { %v1784_v41 = vmul.f32 %v1726_v40, %v1349_v12 }
 0x19a   : > { %v1805_v14 = vadd.f32 %v1804_v37, %v1783_v39  ;;  %v1353_v15 = vpop.f32.mrb[20].mxu0  ;;  %v2773_v37 = vmov 1966171168  }
 0x19b   : > { %v1826_v42 = vadd.f32 %v1825_v36, %v1784_v41  ;;  %v1730_v43 = vpop.f32.mrb[20].mxu1  ;;  %v1355_v44 = vpop.f32.mrb[21].mxu0  ;;  %v1843_v35 = vunpack.c.l.s4 %v2773_v37 }
 0x19c   : > { %v1785_v45 = vmul.f32 %v1730_v43, %v1353_v15  ;;  %v1732_v46 = vpop.f32.mrb[21].mxu1 }
 0x19d   : > { %v1786_v47 = vmul.f32 %v1732_v46, %v1355_v44  ;;  %v1844_v40 = vunpack.c.0.s8 %v1843_v35 }
 0x19e   : > { %v1806_v48 = vadd.f32 %v1805_v14, %v1785_v45  ;;  %v1359_v51 = vpop.f32.mrb[22].mxu0 }
 0x19f   : > { %v1827_v52 = vadd.f32 %v1826_v42, %v1786_v47  ;;  %v1736_v53 = vpop.f32.mrb[22].mxu1  ;;  %v1361_v11 = vpop.f32.mrb[23].mxu0  ;;  %v1847_v43 = vsub.s32 %v1844_v40, %v2857_v3 }
 0x1a0   : > { %v1787_v50 = vmul.f32 %v1736_v53, %v1359_v51  ;;  %v1738_v13 = vpop.f32.mrb[23].mxu1 }
 0x1a1   : > { %v1788_v49 = vmul.f32 %v1738_v13, %v1361_v11 }
 0x1a2   : > { %v1807_v54 = vadd.f32 %v1806_v48, %v1787_v50  ;;  %v1365_v55 = vpop.f32.mrb[24].mxu0 }
 0x1a3   : > { %v1828_v56 = vadd.f32 %v1827_v52, %v1788_v49  ;;  %v1742_v57 = vpop.f32.mrb[24].mxu1  ;;  %v1367_v58 = vpop.f32.mrb[25].mxu0 }
 0x1a4   : > { %v1789_v59 = vmul.f32 %v1742_v57, %v1365_v55  ;;  %v1744_v60 = vpop.f32.mrb[25].mxu1 }
 0x1a5   : > { %v1790_v61 = vmul.f32 %v1744_v60, %v1367_v58 }
 0x1a6   : > { %v1808_v62 = vadd.f32 %v1807_v54, %v1789_v59  ;;  %v1371_v63 = vpop.f32.mrb[26].mxu0 }
 0x1a7   : > { %v1829_v1 = vadd.f32 %v1828_v56, %v1790_v61  ;;  %v1748_v2 = vpop.f32.mrb[26].mxu1  ;;  %v1373_v4 = vpop.f32.mrb[27].mxu0 }
 0x1a8   : > { %v1791_v5 = vmul.f32 %v1748_v2, %v1371_v63  ;;  %v1750_v6 = vpop.f32.mrb[27].mxu1 }
 0x1a9   : > { %v1792_v7 = vmul.f32 %v1750_v6, %v1373_v4 }
 0x1aa   : > { %v1809_v8 = vadd.f32 %v1808_v62, %v1791_v5  ;;  %v1377_v9 = vpop.f32.mrb[28].mxu0 }
 0x1ab   : > { %v1830_v10 = vadd.f32 %v1829_v1, %v1792_v7  ;;  %v1754_v16 = vpop.f32.mrb[28].mxu1  ;;  %v1379_v17 = vpop.f32.mrb[29].mxu0 }
 0x1ac   : > { %v1793_v18 = vmul.f32 %v1754_v16, %v1377_v9  ;;  %v1756_v19 = vpop.f32.mrb[29].mxu1 }
 0x1ad   : > { %v1794_v20 = vmul.f32 %v1756_v19, %v1379_v17 }
 0x1ae   : > { %v1810_v21 = vadd.f32 %v1809_v8, %v1793_v18  ;;  %v1383_v22 = vpop.f32.mrb[30].mxu0 }
 0x1af   : > { %v1831_v23 = vadd.f32 %v1830_v10, %v1794_v20  ;;  %v1760_v24 = vpop.f32.mrb[30].mxu1  ;;  %v1385_v25 = vpop.f32.mrb[31].mxu0 }
 0x1b0   : > { %v1795_v26 = vmul.f32 %v1760_v24, %v1383_v22  ;;  %v1762_v27 = vpop.f32.mrb[31].mxu1 }
 0x1b1   : > { %v1796_v28 = vmul.f32 %v1762_v27, %v1385_v25 }
 0x1b2   : > { %v1811_v29 = vadd.f32 %v1810_v21, %v1795_v26 }
 0x1b3   : > { %v1832_v30 = vadd.f32 %v1831_v23, %v1796_v28 }
 0x1b4   : > { %v1812_v31 = vrot.slane %v1811_v29, 4 }
 0x1b5   : > { %v1833_v32 = vrot.slane %v1832_v30, 4 }
 0x1b6   : > { %v1813_v33 = vadd.f32 %v1812_v31, %v1811_v29 }
 0x1b7   : > { %v1834_v34 = vadd.f32 %v1833_v32, %v1832_v30 }
 0x1b8   : > { %v1814_v36 = vrot.slane %v1813_v33, 2 }
 0x1b9   : > { %v1835_v38 = vrot.slane %v1834_v34, 2 }
 0x1ba   : > { %v1815_v12 = vadd.f32 %v1814_v36, %v1813_v33 }
 0x1bb   : > { %v1836_v39 = vadd.f32 %v1835_v38, %v1834_v34 }
 0x1bc   : > { %v1816_v41 = vrot.slane %v1815_v12, 1 }
 0x1bd   : > { %v1837_v14 = vrot.slane %v1836_v39, 1 }
 0x1be   : > { %v1817_v15 = vadd.f32 %v1816_v41, %v1815_v12 }
 0x1bf   : > { %v1838_v42 = vadd.f32 %v1837_v14, %v1836_v39 }
 0x1c1   : > { %v1841_v44 = vcombine.low %v1817_v15, %v1838_v42 }
 0x1c3   : > { %v1848_v45 = vrot.slane %v1841_v44, %v1847_v43 }
 0x1c5   : > { %v1855_v46 = vrot.slane %v1848_v45, %v1847_v43 }
 0x1c7   : > { %1861 = vst.msk [vmem:[%s201_s20] sm:$0x3] %vm1859_vm8, %v1855_v46 }
 0x1c8   : > { %2719 = shalt.err (!%p2716_p3)
}
 0x1c9   : > { %s2720_s7 = scalar_lea.hbm %s3824_s28, 32  ;;  %s2724_s10 = scalar_lea.hbm %s3870_s4, 64 }
 0x1ca   : > { %p2721_p4 = scmp.ne.s32.totalorder %s3824_s28, %s2720_s7  ;;  %p2725_p9 = scmp.lt.u32.totalorder %s3824_s28, %s3870_s4 }
 0x1cb   : > { %p2726_p10 = scmp.lt.u32.totalorder %s2724_s10, %s2720_s7  ;;  %p2728_p12 = scmp.lt.u32.totalorder %s2720_s7, %s3824_s28 }
 0x1cc   : > { %p2722_p7 = pnand %p2721_p4, %p2838_p5 }
 0x1cd   : > { %p2727_p11 = por %p2726_p10, %p2725_p9 }
 0x1ce   : > { %p2723_p8 = pneg %p2722_p7 }
 0x1cf   : > { %p2729_p13 = por %p2728_p12, %p2727_p11 }
 0x1d1   : > { %p2730_p0 = pnand %p2729_p13, %p2723_p8 }
 0x1d3   : > { %2733 = shalt.err (!%p2730_p0)
}
 0x1d4   : > { %2663 = dma.vmem_to_hbm [thread:$0]  (%p2838_p5), %s3826_s22, 32, %s3824_s28, %s1863_s29  }
 0x1d5 PF: > { %p2669_p1 = scmp.ge.s32.totalorder %s2768_s18, 2  ;;  %s1889_s13 = sand.u32 1, %s2756_s15  }
 0x1d6   : > { %s1890_s14 = scalar_lea.sflag [#allocation3], %s1889_s13 }
 0x1d7   : > { %p2666_p2 = pnand %p2669_p1, %p2842_p6 }
 0x1d9   : > { %2751 = dma.done.wait (!%p2666_p2), %s1890_s14, 32  }
 0x1da   : > { %2753 = vsyncadd (!%p2666_p2), %s1890_s14, 4294967264  ;;  %p14_p3 = scmp.ge.s32.totalorder %s2825_s21, 4   ;;  %s3899_s15 = smov %s2760_s16 }
 0x1db   : > { %s3900_s16 = smov %s2764_s17  ;;  %s3901_s17 = smov %s2836_s24 }
 0x1dc   : > { %s3902_s18 = smov %s2825_s21  ;;  %16 = sbr.rel (!%p14_p3) target bundleno = 3 (0x3), region = 74 }
 0x1e3   :  { %1895 = vsyncpa [#allocation3], 1 }
 0x1e4   :  { %1897 = vsyncpa [#allocation3 + $0x1], 1 }

</bundles_post_ra>
